<compile_context>
chip_gen: v6e
topology: v6e:2x2x1
jax: 0.10.0
libtpu: 0.0.40
codegen_flags: <defaults>
</compile_context>

<pallas_src>
import functools

import jax
import jax.numpy as jnp
from jax.experimental import pallas as pl
from jax.experimental.pallas import tpu as pltpu


def _round_up(n, m):
    return ((n + m - 1) // m) * m


def _fused_lstm_fc_kernel(num_layers, B, T, x_ref, *refs):
    """Fused multi-layer LSTM + (eval) Dropout + Linear + ReLU.

    x_ref : (T*B, I)  time-major input rows (row = t*B + b)
    refs  : [w_ih_0, w_hh_0, b_0, ..., w_ih_{L-1}, w_hh_{L-1}, b_{L-1},
             w_fc, b_fc,            # fused classifier head
             out_ref,               # (B, op) lane-dense output
             gx_ref,                # VMEM scratch (T*B, 4*gp): hoisted x-projection
             seq_ref]               # VMEM scratch (T*B, gp): current layer h-sequence
    """
    layer_refs = refs[: 3 * num_layers]
    w_fc_ref, b_fc_ref, out_ref, gx_ref, seq_ref = refs[3 * num_layers:]
    gp = layer_refs[1].shape[0]  # lane-padded hidden width (multiple of 128)

    h_last = None
    for l in range(num_layers):
        w_ih_ref, w_hh_ref, b_ref = layer_refs[3 * l: 3 * l + 3]
        is_last = l == num_layers - 1

        # ---- hoisted, time-invariant input projection: ONE big MXU matmul ----
        xin = x_ref[...] if l == 0 else seq_ref[...]              # (T*B, I or gp)
        gx_ref[...] = (jnp.dot(xin, w_ih_ref[...],
                               preferred_element_type=jnp.float32)
                       + b_ref[...])                              # (T*B, 4*gp)

        # ---- recurrence: only h @ W_hh remains on the sequential path ----
        def step(t, carry, w_hh_ref=w_hh_ref, is_last=is_last):
            h, c = carry
            g = (gx_ref[pl.ds(t * B, B), :]
                 + jnp.dot(h, w_hh_ref[...], preferred_element_type=jnp.float32))
            i_g = jax.nn.sigmoid(g[:, 0 * gp:1 * gp])   # vreg-aligned gate blocks
            f_g = jax.nn.sigmoid(g[:, 1 * gp:2 * gp])
            g_g = jnp.tanh(g[:, 2 * gp:3 * gp])
            o_g = jax.nn.sigmoid(g[:, 3 * gp:4 * gp])
            c_new = f_g * c + i_g * g_g
            h_new = o_g * jnp.tanh(c_new)
            if not is_last:
                # Feed the next layer directly from VMEM; last layer needs only h_T.
                seq_ref[pl.ds(t * B, B), :] = h_new
            return h_new, c_new

        h0 = jnp.zeros((B, gp), jnp.float32)
        c0 = jnp.zeros((B, gp), jnp.float32)
        h_last, _ = jax.lax.fori_loop(0, T, step, (h0, c0), unroll=True)

    # ---- epilogue: Dropout (identity at inference) -> Linear -> ReLU ----
    y = (jnp.dot(h_last, w_fc_ref[...], preferred_element_type=jnp.float32)
         + b_fc_ref[...])
    out_ref[...] = jnp.maximum(y, 0.0)                            # lane-dense store


def lstm_fc_forward(x, params, *, out_features):
    """x: (B, T, I), batch_first (PyTorch layout). Returns (B, out_features)."""
    B, T, I = x.shape
    num_layers = len(params["layers"])
    gp = params["layers"][0][1].shape[0]     # padded hidden width
    op = params["w_fc"].shape[1]             # padded output width

    # Time-major 2D layout so the per-layer input projection is one matmul and
    # per-step reads are contiguous row blocks (layout plumbing stays in XLA).
    x2d = jnp.transpose(x, (1, 0, 2)).reshape(T * B, I)

    flat = []
    for (w_ih, w_hh, b) in params["layers"]:
        flat += [w_ih, w_hh, b]
    flat += [params["w_fc"], params["b_fc"]]

    kernel = functools.partial(_fused_lstm_fc_kernel, num_layers, B, T)
    n_in = 1 + len(flat)

    # TODO(synk): for production-scale (B, T), stream x / h with grid=(T,) BlockSpecs
    # (double-buffered DMA), use bf16 storage with f32 accumulation (keep c in f32),
    # and shard a batch axis across the two v7x TensorCores; at these shapes
    # everything fits VMEM and single-call fusion dominates wall clock.
    y_pad = pl.pallas_call(
        kernel,
        out_shape=jax.ShapeDtypeStruct((B, op), jnp.float32),
        in_specs=[pl.BlockSpec(memory_space=pltpu.MemorySpace.VMEM)] * n_in,
        out_specs=pl.BlockSpec(memory_space=pltpu.MemorySpace.VMEM),
        scratch_shapes=[
            pltpu.VMEM((T * B, 4 * gp), jnp.float32),  # hoisted x-projection gates
            pltpu.VMEM((T * B, gp), jnp.float32),      # current layer's h sequence
        ],
        compiler_params=pltpu.CompilerParams(vmem_limit_bytes=32 * 1024 * 1024),
    )(x2d, *flat)

    return y_pad[:, :out_features]   # drop the lane padding outside the kernel


def init_params(key, input_size, hidden_size, output_size, num_layers):
    """PyTorch-style U(-1/sqrt(H), 1/sqrt(H)) init, stored in the lane-padded layout."""
    H = hidden_size
    gp = _round_up(H, 128)              # per-gate / hidden lane padding
    op = _round_up(output_size, 128)    # lane-dense classifier output
    k = 1.0 / float(H) ** 0.5
    layers = []
    for l in range(num_layers):
        in_real = input_size if l == 0 else H
        in_pad = input_size if l == 0 else gp   # layers > 0 consume the padded h
        key, k1, k2, k3, k4 = jax.random.split(key, 5)
        w_ih = jax.random.uniform(k1, (in_real, 4 * H), jnp.float32, -k, k)
        w_hh = jax.random.uniform(k2, (H, 4 * H), jnp.float32, -k, k)
        b = (jax.random.uniform(k3, (4 * H,), jnp.float32, -k, k)
             + jax.random.uniform(k4, (4 * H,), jnp.float32, -k, k))
        w_ih_p = jnp.zeros((in_pad, 4 * gp), jnp.float32)
        w_hh_p = jnp.zeros((gp, 4 * gp), jnp.float32)
        b_p = jnp.zeros((1, 4 * gp), jnp.float32)
        for g in range(4):
            w_ih_p = w_ih_p.at[:in_real, g * gp:g * gp + H].set(w_ih[:, g * H:(g + 1) * H])
            w_hh_p = w_hh_p.at[:H, g * gp:g * gp + H].set(w_hh[:, g * H:(g + 1) * H])
            b_p = b_p.at[0, g * gp:g * gp + H].set(b[g * H:(g + 1) * H])
        layers.append((w_ih_p, w_hh_p, b_p))

    key, k5, k6 = jax.random.split(key, 3)
    w_fc = jax.random.uniform(k5, (H, output_size), jnp.float32, -k, k)
    b_fc = jax.random.uniform(k6, (output_size,), jnp.float32, -k, k)
    w_fc_p = jnp.zeros((gp, op), jnp.float32).at[:H, :output_size].set(w_fc)
    b_fc_p = jnp.zeros((1, op), jnp.float32).at[0, :output_size].set(b_fc)
    return {"layers": layers, "w_fc": w_fc_p, "b_fc": b_fc_p}


if __name__ == "__main__":
    input_size, hidden_size, output_size, num_layers = 16, 32, 4, 2
    batch, seq = 2, 8

    key = jax.random.PRNGKey(0)
    key_x, key_p = jax.random.split(key)
    x = jax.random.normal(key_x, (batch, seq, input_size), jnp.float32)
    params = init_params(key_p, input_size, hidden_size, output_size, num_layers)

    forward = jax.jit(functools.partial(lstm_fc_forward, out_features=output_size))
    y = forward(x, params)
    jax.block_until_ready(y)
    assert y.shape == (batch, output_size)
    assert bool(jnp.all(jnp.isfinite(y)))
    print("KERNEL_OK")
</pallas_src>

<mosaic_0001>
module attributes {stable_mosaic.version = 11 : i64} {
  func.func @_fused_lstm_fc_kernel(%arg0: memref<16x16xf32, #tpu.memory_space<vmem>>, %arg1: memref<16x512xf32, #tpu.memory_space<vmem>>, %arg2: memref<128x512xf32, #tpu.memory_space<vmem>>, %arg3: memref<1x512xf32, #tpu.memory_space<vmem>>, %arg4: memref<128x512xf32, #tpu.memory_space<vmem>>, %arg5: memref<128x512xf32, #tpu.memory_space<vmem>>, %arg6: memref<1x512xf32, #tpu.memory_space<vmem>>, %arg7: memref<128x128xf32, #tpu.memory_space<vmem>>, %arg8: memref<1x128xf32, #tpu.memory_space<vmem>>, %arg9: memref<2x128xf32, #tpu.memory_space<vmem>>, %arg10: memref<16x512xf32, #tpu.memory_space<vmem>>, %arg11: memref<16x128xf32, #tpu.memory_space<vmem>>) attributes {dimension_semantics = [], scalar_prefetch = 0 : i64, scratch_operands = 2 : i64, tpu.core_type = #tpu.core_type<tc>} {
    %c0 = arith.constant 0 : index
    %c0_0 = arith.constant 0 : index
    %0 = vector.load %arg0[%c0, %c0_0] : memref<16x16xf32, #tpu.memory_space<vmem>>, vector<16x16xf32>
    %c0_1 = arith.constant 0 : index
    %c0_2 = arith.constant 0 : index
    %1 = vector.load %arg1[%c0_1, %c0_2] : memref<16x512xf32, #tpu.memory_space<vmem>>, vector<16x512xf32>
    %cst = arith.constant dense<0.000000e+00> : vector<16x512xf32>
    %2 = tpu.matmul %0, %1, %cst {dimension_numbers = #tpu.dot_dimension_numbers<[1], [0], [0], [1], [0, 0, 1, 1], [], []>} : vector<16x16xf32>, vector<16x512xf32>, vector<16x512xf32> -> vector<16x512xf32>
    %c0_3 = arith.constant 0 : index
    %c0_4 = arith.constant 0 : index
    %3 = vector.load %arg3[%c0_3, %c0_4] : memref<1x512xf32, #tpu.memory_space<vmem>>, vector<1x512xf32>
    %4 = vector.broadcast %3 : vector<1x512xf32> to vector<16x512xf32>
    %5 = arith.addf %2, %4 : vector<16x512xf32>
    %c0_5 = arith.constant 0 : index
    %c0_6 = arith.constant 0 : index
    %6 = vector.load %arg10[%c0_5, %c0_6] : memref<16x512xf32, #tpu.memory_space<vmem>>, vector<16x512xf32>
    tpu.vector_store %arg10[%c0_5, %c0_6], %5 {strides = array<i32>} : memref<16x512xf32, #tpu.memory_space<vmem>>, vector<16x512xf32>,
    %cst_7 = arith.constant 0.000000e+00 : f32
    %7 = vector.broadcast %cst_7 : f32 to vector<2x128xf32>
    %cst_8 = arith.constant 0.000000e+00 : f32
    %8 = vector.broadcast %cst_8 : f32 to vector<2x128xf32>
    %c0_i32 = arith.constant 0 : i32
    %c2_i32 = arith.constant 2 : i32
    %9 = arith.muli %c0_i32, %c2_i32 : i32
    %10 = arith.index_cast %9 : i32 to index
    %c0_9 = arith.constant 0 : index
    %11 = vector.load %arg10[%10, %c0_9] : memref<16x512xf32, #tpu.memory_space<vmem>>, vector<2x512xf32>
    %c0_10 = arith.constant 0 : index
    %c0_11 = arith.constant 0 : index
    %12 = vector.load %arg2[%c0_10, %c0_11] : memref<128x512xf32, #tpu.memory_space<vmem>>, vector<128x512xf32>
    %cst_12 = arith.constant dense<0.000000e+00> : vector<2x512xf32>
    %13 = tpu.matmul %7, %12, %cst_12 {dimension_numbers = #tpu.dot_dimension_numbers<[1], [0], [0], [1], [0, 0, 1, 1], [], []>} : vector<2x128xf32>, vector<128x512xf32>, vector<2x512xf32> -> vector<2x512xf32>
    %14 = arith.addf %11, %13 : vector<2x512xf32>
    %15 = vector.extract_strided_slice %14 {offsets = [0, 0], sizes = [2, 128], strides = [1, 1]} : vector<2x512xf32> to vector<2x128xf32>
    %16 = arith.negf %15 : vector<2x128xf32>
    %17 = math.exp %16 : vector<2x128xf32>
    %cst_13 = arith.constant 1.000000e+00 : f32
    %18 = vector.broadcast %cst_13 : f32 to vector<2x128xf32>
    %19 = arith.addf %18, %17 : vector<2x128xf32>
    %20 = arith.divf %18, %19 : vector<2x128xf32>
    %21 = vector.extract_strided_slice %14 {offsets = [0, 128], sizes = [2, 128], strides = [1, 1]} : vector<2x512xf32> to vector<2x128xf32>
    %22 = arith.negf %21 : vector<2x128xf32>
    %23 = math.exp %22 : vector<2x128xf32>
    %cst_14 = arith.constant 1.000000e+00 : f32
    %24 = vector.broadcast %cst_14 : f32 to vector<2x128xf32>
    %25 = arith.addf %24, %23 : vector<2x128xf32>
    %26 = arith.divf %24, %25 : vector<2x128xf32>
    %27 = vector.extract_strided_slice %14 {offsets = [0, 256], sizes = [2, 128], strides = [1, 1]} : vector<2x512xf32> to vector<2x128xf32>
    %28 = math.tanh %27 : vector<2x128xf32>
    %29 = vector.extract_strided_slice %14 {offsets = [0, 384], sizes = [2, 128], strides = [1, 1]} : vector<2x512xf32> to vector<2x128xf32>
    %30 = arith.negf %29 : vector<2x128xf32>
    %31 = math.exp %30 : vector<2x128xf32>
    %cst_15 = arith.constant 1.000000e+00 : f32
    %32 = vector.broadcast %cst_15 : f32 to vector<2x128xf32>
    %33 = arith.addf %32, %31 : vector<2x128xf32>
    %34 = arith.divf %32, %33 : vector<2x128xf32>
    %35 = arith.mulf %26, %8 : vector<2x128xf32>
    %36 = arith.mulf %20, %28 : vector<2x128xf32>
    %37 = arith.addf %35, %36 : vector<2x128xf32>
    %38 = math.tanh %37 : vector<2x128xf32>
    %39 = arith.mulf %34, %38 : vector<2x128xf32>
    %c2_i32_16 = arith.constant 2 : i32
    %40 = arith.muli %c0_i32, %c2_i32_16 : i32
    %41 = arith.index_cast %40 : i32 to index
    %c0_17 = arith.constant 0 : index
    %42 = vector.load %arg11[%41, %c0_17] : memref<16x128xf32, #tpu.memory_space<vmem>>, vector<2x128xf32>
    tpu.vector_store %arg11[%41, %c0_17], %39 {strides = array<i32>} : memref<16x128xf32, #tpu.memory_space<vmem>>, vector<2x128xf32>,
    %c1_i32 = arith.constant 1 : i32
    %c2_i32_18 = arith.constant 2 : i32
    %43 = arith.muli %c1_i32, %c2_i32_18 : i32
    %44 = arith.index_cast %43 : i32 to index
    %c0_19 = arith.constant 0 : index
    %45 = vector.load %arg10[%44, %c0_19] : memref<16x512xf32, #tpu.memory_space<vmem>>, vector<2x512xf32>
    %c0_20 = arith.constant 0 : index
    %c0_21 = arith.constant 0 : index
    %46 = vector.load %arg2[%c0_20, %c0_21] : memref<128x512xf32, #tpu.memory_space<vmem>>, vector<128x512xf32>
    %cst_22 = arith.constant dense<0.000000e+00> : vector<2x512xf32>
    %47 = tpu.matmul %39, %46, %cst_22 {dimension_numbers = #tpu.dot_dimension_numbers<[1], [0], [0], [1], [0, 0, 1, 1], [], []>} : vector<2x128xf32>, vector<128x512xf32>, vector<2x512xf32> -> vector<2x512xf32>
    %48 = arith.addf %45, %47 : vector<2x512xf32>
    %49 = vector.extract_strided_slice %48 {offsets = [0, 0], sizes = [2, 128], strides = [1, 1]} : vector<2x512xf32> to vector<2x128xf32>
    %50 = arith.negf %49 : vector<2x128xf32>
    %51 = math.exp %50 : vector<2x128xf32>
    %cst_23 = arith.constant 1.000000e+00 : f32
    %52 = vector.broadcast %cst_23 : f32 to vector<2x128xf32>
    %53 = arith.addf %52, %51 : vector<2x128xf32>
    %54 = arith.divf %52, %53 : vector<2x128xf32>
    %55 = vector.extract_strided_slice %48 {offsets = [0, 128], sizes = [2, 128], strides = [1, 1]} : vector<2x512xf32> to vector<2x128xf32>
    %56 = arith.negf %55 : vector<2x128xf32>
    %57 = math.exp %56 : vector<2x128xf32>
    %cst_24 = arith.constant 1.000000e+00 : f32
    %58 = vector.broadcast %cst_24 : f32 to vector<2x128xf32>
    %59 = arith.addf %58, %57 : vector<2x128xf32>
    %60 = arith.divf %58, %59 : vector<2x128xf32>
    %61 = vector.extract_strided_slice %48 {offsets = [0, 256], sizes = [2, 128], strides = [1, 1]} : vector<2x512xf32> to vector<2x128xf32>
    %62 = math.tanh %61 : vector<2x128xf32>
    %63 = vector.extract_strided_slice %48 {offsets = [0, 384], sizes = [2, 128], strides = [1, 1]} : vector<2x512xf32> to vector<2x128xf32>
    %64 = arith.negf %63 : vector<2x128xf32>
    %65 = math.exp %64 : vector<2x128xf32>
    %cst_25 = arith.constant 1.000000e+00 : f32
    %66 = vector.broadcast %cst_25 : f32 to vector<2x128xf32>
    %67 = arith.addf %66, %65 : vector<2x128xf32>
    %68 = arith.divf %66, %67 : vector<2x128xf32>
    %69 = arith.mulf %60, %37 : vector<2x128xf32>
    %70 = arith.mulf %54, %62 : vector<2x128xf32>
    %71 = arith.addf %69, %70 : vector<2x128xf32>
    %72 = math.tanh %71 : vector<2x128xf32>
    %73 = arith.mulf %68, %72 : vector<2x128xf32>
    %c2_i32_26 = arith.constant 2 : i32
    %74 = arith.muli %c1_i32, %c2_i32_26 : i32
    %75 = arith.index_cast %74 : i32 to index
    %c0_27 = arith.constant 0 : index
    %76 = vector.load %arg11[%75, %c0_27] : memref<16x128xf32, #tpu.memory_space<vmem>>, vector<2x128xf32>
    tpu.vector_store %arg11[%75, %c0_27], %73 {strides = array<i32>} : memref<16x128xf32, #tpu.memory_space<vmem>>, vector<2x128xf32>,
    %c2_i32_28 = arith.constant 2 : i32
    %c2_i32_29 = arith.constant 2 : i32
    %77 = arith.muli %c2_i32_28, %c2_i32_29 : i32
    %78 = arith.index_cast %77 : i32 to index
    %c0_30 = arith.constant 0 : index
    %79 = vector.load %arg10[%78, %c0_30] : memref<16x512xf32, #tpu.memory_space<vmem>>, vector<2x512xf32>
    %c0_31 = arith.constant 0 : index
    %c0_32 = arith.constant 0 : index
    %80 = vector.load %arg2[%c0_31, %c0_32] : memref<128x512xf32, #tpu.memory_space<vmem>>, vector<128x512xf32>
    %cst_33 = arith.constant dense<0.000000e+00> : vector<2x512xf32>
    %81 = tpu.matmul %73, %80, %cst_33 {dimension_numbers = #tpu.dot_dimension_numbers<[1], [0], [0], [1], [0, 0, 1, 1], [], []>} : vector<2x128xf32>, vector<128x512xf32>, vector<2x512xf32> -> vector<2x512xf32>
    %82 = arith.addf %79, %81 : vector<2x512xf32>
    %83 = vector.extract_strided_slice %82 {offsets = [0, 0], sizes = [2, 128], strides = [1, 1]} : vector<2x512xf32> to vector<2x128xf32>
    %84 = arith.negf %83 : vector<2x128xf32>
    %85 = math.exp %84 : vector<2x128xf32>
    %cst_34 = arith.constant 1.000000e+00 : f32
    %86 = vector.broadcast %cst_34 : f32 to vector<2x128xf32>
    %87 = arith.addf %86, %85 : vector<2x128xf32>
    %88 = arith.divf %86, %87 : vector<2x128xf32>
    %89 = vector.extract_strided_slice %82 {offsets = [0, 128], sizes = [2, 128], strides = [1, 1]} : vector<2x512xf32> to vector<2x128xf32>
    %90 = arith.negf %89 : vector<2x128xf32>
    %91 = math.exp %90 : vector<2x128xf32>
    %cst_35 = arith.constant 1.000000e+00 : f32
    %92 = vector.broadcast %cst_35 : f32 to vector<2x128xf32>
    %93 = arith.addf %92, %91 : vector<2x128xf32>
    %94 = arith.divf %92, %93 : vector<2x128xf32>
    %95 = vector.extract_strided_slice %82 {offsets = [0, 256], sizes = [2, 128], strides = [1, 1]} : vector<2x512xf32> to vector<2x128xf32>
    %96 = math.tanh %95 : vector<2x128xf32>
    %97 = vector.extract_strided_slice %82 {offsets = [0, 384], sizes = [2, 128], strides = [1, 1]} : vector<2x512xf32> to vector<2x128xf32>
    %98 = arith.negf %97 : vector<2x128xf32>
    %99 = math.exp %98 : vector<2x128xf32>
    %cst_36 = arith.constant 1.000000e+00 : f32
    %100 = vector.broadcast %cst_36 : f32 to vector<2x128xf32>
    %101 = arith.addf %100, %99 : vector<2x128xf32>
    %102 = arith.divf %100, %101 : vector<2x128xf32>
    %103 = arith.mulf %94, %71 : vector<2x128xf32>
    %104 = arith.mulf %88, %96 : vector<2x128xf32>
    %105 = arith.addf %103, %104 : vector<2x128xf32>
    %106 = math.tanh %105 : vector<2x128xf32>
    %107 = arith.mulf %102, %106 : vector<2x128xf32>
    %c2_i32_37 = arith.constant 2 : i32
    %108 = arith.muli %c2_i32_28, %c2_i32_37 : i32
    %109 = arith.index_cast %108 : i32 to index
    %c0_38 = arith.constant 0 : index
    %110 = vector.load %arg11[%109, %c0_38] : memref<16x128xf32, #tpu.memory_space<vmem>>, vector<2x128xf32>
    tpu.vector_store %arg11[%109, %c0_38], %107 {strides = array<i32>} : memref<16x128xf32, #tpu.memory_space<vmem>>, vector<2x128xf32>,
    %c3_i32 = arith.constant 3 : i32
    %c2_i32_39 = arith.constant 2 : i32
    %111 = arith.muli %c3_i32, %c2_i32_39 : i32
    %112 = arith.index_cast %111 : i32 to index
    %c0_40 = arith.constant 0 : index
    %113 = vector.load %arg10[%112, %c0_40] : memref<16x512xf32, #tpu.memory_space<vmem>>, vector<2x512xf32>
    %c0_41 = arith.constant 0 : index
    %c0_42 = arith.constant 0 : index
    %114 = vector.load %arg2[%c0_41, %c0_42] : memref<128x512xf32, #tpu.memory_space<vmem>>, vector<128x512xf32>
    %cst_43 = arith.constant dense<0.000000e+00> : vector<2x512xf32>
    %115 = tpu.matmul %107, %114, %cst_43 {dimension_numbers = #tpu.dot_dimension_numbers<[1], [0], [0], [1], [0, 0, 1, 1], [], []>} : vector<2x128xf32>, vector<128x512xf32>, vector<2x512xf32> -> vector<2x512xf32>
    %116 = arith.addf %113, %115 : vector<2x512xf32>
    %117 = vector.extract_strided_slice %116 {offsets = [0, 0], sizes = [2, 128], strides = [1, 1]} : vector<2x512xf32> to vector<2x128xf32>
    %118 = arith.negf %117 : vector<2x128xf32>
    %119 = math.exp %118 : vector<2x128xf32>
    %cst_44 = arith.constant 1.000000e+00 : f32
    %120 = vector.broadcast %cst_44 : f32 to vector<2x128xf32>
    %121 = arith.addf %120, %119 : vector<2x128xf32>
    %122 = arith.divf %120, %121 : vector<2x128xf32>
    %123 = vector.extract_strided_slice %116 {offsets = [0, 128], sizes = [2, 128], strides = [1, 1]} : vector<2x512xf32> to vector<2x128xf32>
    %124 = arith.negf %123 : vector<2x128xf32>
    %125 = math.exp %124 : vector<2x128xf32>
    %cst_45 = arith.constant 1.000000e+00 : f32
    %126 = vector.broadcast %cst_45 : f32 to vector<2x128xf32>
    %127 = arith.addf %126, %125 : vector<2x128xf32>
    %128 = arith.divf %126, %127 : vector<2x128xf32>
    %129 = vector.extract_strided_slice %116 {offsets = [0, 256], sizes = [2, 128], strides = [1, 1]} : vector<2x512xf32> to vector<2x128xf32>
    %130 = math.tanh %129 : vector<2x128xf32>
    %131 = vector.extract_strided_slice %116 {offsets = [0, 384], sizes = [2, 128], strides = [1, 1]} : vector<2x512xf32> to vector<2x128xf32>
    %132 = arith.negf %131 : vector<2x128xf32>
    %133 = math.exp %132 : vector<2x128xf32>
    %cst_46 = arith.constant 1.000000e+00 : f32
    %134 = vector.broadcast %cst_46 : f32 to vector<2x128xf32>
    %135 = arith.addf %134, %133 : vector<2x128xf32>
    %136 = arith.divf %134, %135 : vector<2x128xf32>
    %137 = arith.mulf %128, %105 : vector<2x128xf32>
    %138 = arith.mulf %122, %130 : vector<2x128xf32>
    %139 = arith.addf %137, %138 : vector<2x128xf32>
    %140 = math.tanh %139 : vector<2x128xf32>
    %141 = arith.mulf %136, %140 : vector<2x128xf32>
    %c2_i32_47 = arith.constant 2 : i32
    %142 = arith.muli %c3_i32, %c2_i32_47 : i32
    %143 = arith.index_cast %142 : i32 to index
    %c0_48 = arith.constant 0 : index
    %144 = vector.load %arg11[%143, %c0_48] : memref<16x128xf32, #tpu.memory_space<vmem>>, vector<2x128xf32>
    tpu.vector_store %arg11[%143, %c0_48], %141 {strides = array<i32>} : memref<16x128xf32, #tpu.memory_space<vmem>>, vector<2x128xf32>,
    %c4_i32 = arith.constant 4 : i32
    %c2_i32_49 = arith.constant 2 : i32
    %145 = arith.muli %c4_i32, %c2_i32_49 : i32
    %146 = arith.index_cast %145 : i32 to index
    %c0_50 = arith.constant 0 : index
    %147 = vector.load %arg10[%146, %c0_50] : memref<16x512xf32, #tpu.memory_space<vmem>>, vector<2x512xf32>
    %c0_51 = arith.constant 0 : index
    %c0_52 = arith.constant 0 : index
    %148 = vector.load %arg2[%c0_51, %c0_52] : memref<128x512xf32, #tpu.memory_space<vmem>>, vector<128x512xf32>
    %cst_53 = arith.constant dense<0.000000e+00> : vector<2x512xf32>
    %149 = tpu.matmul %141, %148, %cst_53 {dimension_numbers = #tpu.dot_dimension_numbers<[1], [0], [0], [1], [0, 0, 1, 1], [], []>} : vector<2x128xf32>, vector<128x512xf32>, vector<2x512xf32> -> vector<2x512xf32>
    %150 = arith.addf %147, %149 : vector<2x512xf32>
    %151 = vector.extract_strided_slice %150 {offsets = [0, 0], sizes = [2, 128], strides = [1, 1]} : vector<2x512xf32> to vector<2x128xf32>
    %152 = arith.negf %151 : vector<2x128xf32>
    %153 = math.exp %152 : vector<2x128xf32>
    %cst_54 = arith.constant 1.000000e+00 : f32
    %154 = vector.broadcast %cst_54 : f32 to vector<2x128xf32>
    %155 = arith.addf %154, %153 : vector<2x128xf32>
    %156 = arith.divf %154, %155 : vector<2x128xf32>
    %157 = vector.extract_strided_slice %150 {offsets = [0, 128], sizes = [2, 128], strides = [1, 1]} : vector<2x512xf32> to vector<2x128xf32>
    %158 = arith.negf %157 : vector<2x128xf32>
    %159 = math.exp %158 : vector<2x128xf32>
    %cst_55 = arith.constant 1.000000e+00 : f32
    %160 = vector.broadcast %cst_55 : f32 to vector<2x128xf32>
    %161 = arith.addf %160, %159 : vector<2x128xf32>
    %162 = arith.divf %160, %161 : vector<2x128xf32>
    %163 = vector.extract_strided_slice %150 {offsets = [0, 256], sizes = [2, 128], strides = [1, 1]} : vector<2x512xf32> to vector<2x128xf32>
    %164 = math.tanh %163 : vector<2x128xf32>
    %165 = vector.extract_strided_slice %150 {offsets = [0, 384], sizes = [2, 128], strides = [1, 1]} : vector<2x512xf32> to vector<2x128xf32>
    %166 = arith.negf %165 : vector<2x128xf32>
    %167 = math.exp %166 : vector<2x128xf32>
    %cst_56 = arith.constant 1.000000e+00 : f32
    %168 = vector.broadcast %cst_56 : f32 to vector<2x128xf32>
    %169 = arith.addf %168, %167 : vector<2x128xf32>
    %170 = arith.divf %168, %169 : vector<2x128xf32>
    %171 = arith.mulf %162, %139 : vector<2x128xf32>
    %172 = arith.mulf %156, %164 : vector<2x128xf32>
    %173 = arith.addf %171, %172 : vector<2x128xf32>
    %174 = math.tanh %173 : vector<2x128xf32>
    %175 = arith.mulf %170, %174 : vector<2x128xf32>
    %c2_i32_57 = arith.constant 2 : i32
    %176 = arith.muli %c4_i32, %c2_i32_57 : i32
    %177 = arith.index_cast %176 : i32 to index
    %c0_58 = arith.constant 0 : index
    %178 = vector.load %arg11[%177, %c0_58] : memref<16x128xf32, #tpu.memory_space<vmem>>, vector<2x128xf32>
    tpu.vector_store %arg11[%177, %c0_58], %175 {strides = array<i32>} : memref<16x128xf32, #tpu.memory_space<vmem>>, vector<2x128xf32>,
    %c5_i32 = arith.constant 5 : i32
    %c2_i32_59 = arith.constant 2 : i32
    %179 = arith.muli %c5_i32, %c2_i32_59 : i32
    %180 = arith.index_cast %179 : i32 to index
    %c0_60 = arith.constant 0 : index
    %181 = vector.load %arg10[%180, %c0_60] : memref<16x512xf32, #tpu.memory_space<vmem>>, vector<2x512xf32>
    %c0_61 = arith.constant 0 : index
    %c0_62 = arith.constant 0 : index
    %182 = vector.load %arg2[%c0_61, %c0_62] : memref<128x512xf32, #tpu.memory_space<vmem>>, vector<128x512xf32>
    %cst_63 = arith.constant dense<0.000000e+00> : vector<2x512xf32>
    %183 = tpu.matmul %175, %182, %cst_63 {dimension_numbers = #tpu.dot_dimension_numbers<[1], [0], [0], [1], [0, 0, 1, 1], [], []>} : vector<2x128xf32>, vector<128x512xf32>, vector<2x512xf32> -> vector<2x512xf32>
    %184 = arith.addf %181, %183 : vector<2x512xf32>
    %185 = vector.extract_strided_slice %184 {offsets = [0, 0], sizes = [2, 128], strides = [1, 1]} : vector<2x512xf32> to vector<2x128xf32>
    %186 = arith.negf %185 : vector<2x128xf32>
    %187 = math.exp %186 : vector<2x128xf32>
    %cst_64 = arith.constant 1.000000e+00 : f32
    %188 = vector.broadcast %cst_64 : f32 to vector<2x128xf32>
    %189 = arith.addf %188, %187 : vector<2x128xf32>
    %190 = arith.divf %188, %189 : vector<2x128xf32>
    %191 = vector.extract_strided_slice %184 {offsets = [0, 128], sizes = [2, 128], strides = [1, 1]} : vector<2x512xf32> to vector<2x128xf32>
    %192 = arith.negf %191 : vector<2x128xf32>
    %193 = math.exp %192 : vector<2x128xf32>
    %cst_65 = arith.constant 1.000000e+00 : f32
    %194 = vector.broadcast %cst_65 : f32 to vector<2x128xf32>
    %195 = arith.addf %194, %193 : vector<2x128xf32>
    %196 = arith.divf %194, %195 : vector<2x128xf32>
    %197 = vector.extract_strided_slice %184 {offsets = [0, 256], sizes = [2, 128], strides = [1, 1]} : vector<2x512xf32> to vector<2x128xf32>
    %198 = math.tanh %197 : vector<2x128xf32>
    %199 = vector.extract_strided_slice %184 {offsets = [0, 384], sizes = [2, 128], strides = [1, 1]} : vector<2x512xf32> to vector<2x128xf32>
    %200 = arith.negf %199 : vector<2x128xf32>
    %201 = math.exp %200 : vector<2x128xf32>
    %cst_66 = arith.constant 1.000000e+00 : f32
    %202 = vector.broadcast %cst_66 : f32 to vector<2x128xf32>
    %203 = arith.addf %202, %201 : vector<2x128xf32>
    %204 = arith.divf %202, %203 : vector<2x128xf32>
    %205 = arith.mulf %196, %173 : vector<2x128xf32>
    %206 = arith.mulf %190, %198 : vector<2x128xf32>
    %207 = arith.addf %205, %206 : vector<2x128xf32>
    %208 = math.tanh %207 : vector<2x128xf32>
    %209 = arith.mulf %204, %208 : vector<2x128xf32>
    %c2_i32_67 = arith.constant 2 : i32
    %210 = arith.muli %c5_i32, %c2_i32_67 : i32
    %211 = arith.index_cast %210 : i32 to index
    %c0_68 = arith.constant 0 : index
    %212 = vector.load %arg11[%211, %c0_68] : memref<16x128xf32, #tpu.memory_space<vmem>>, vector<2x128xf32>
    tpu.vector_store %arg11[%211, %c0_68], %209 {strides = array<i32>} : memref<16x128xf32, #tpu.memory_space<vmem>>, vector<2x128xf32>,
    %c6_i32 = arith.constant 6 : i32
    %c2_i32_69 = arith.constant 2 : i32
    %213 = arith.muli %c6_i32, %c2_i32_69 : i32
    %214 = arith.index_cast %213 : i32 to index
    %c0_70 = arith.constant 0 : index
    %215 = vector.load %arg10[%214, %c0_70] : memref<16x512xf32, #tpu.memory_space<vmem>>, vector<2x512xf32>
    %c0_71 = arith.constant 0 : index
    %c0_72 = arith.constant 0 : index
    %216 = vector.load %arg2[%c0_71, %c0_72] : memref<128x512xf32, #tpu.memory_space<vmem>>, vector<128x512xf32>
    %cst_73 = arith.constant dense<0.000000e+00> : vector<2x512xf32>
    %217 = tpu.matmul %209, %216, %cst_73 {dimension_numbers = #tpu.dot_dimension_numbers<[1], [0], [0], [1], [0, 0, 1, 1], [], []>} : vector<2x128xf32>, vector<128x512xf32>, vector<2x512xf32> -> vector<2x512xf32>
    %218 = arith.addf %215, %217 : vector<2x512xf32>
    %219 = vector.extract_strided_slice %218 {offsets = [0, 0], sizes = [2, 128], strides = [1, 1]} : vector<2x512xf32> to vector<2x128xf32>
    %220 = arith.negf %219 : vector<2x128xf32>
    %221 = math.exp %220 : vector<2x128xf32>
    %cst_74 = arith.constant 1.000000e+00 : f32
    %222 = vector.broadcast %cst_74 : f32 to vector<2x128xf32>
    %223 = arith.addf %222, %221 : vector<2x128xf32>
    %224 = arith.divf %222, %223 : vector<2x128xf32>
    %225 = vector.extract_strided_slice %218 {offsets = [0, 128], sizes = [2, 128], strides = [1, 1]} : vector<2x512xf32> to vector<2x128xf32>
    %226 = arith.negf %225 : vector<2x128xf32>
    %227 = math.exp %226 : vector<2x128xf32>
    %cst_75 = arith.constant 1.000000e+00 : f32
    %228 = vector.broadcast %cst_75 : f32 to vector<2x128xf32>
    %229 = arith.addf %228, %227 : vector<2x128xf32>
    %230 = arith.divf %228, %229 : vector<2x128xf32>
    %231 = vector.extract_strided_slice %218 {offsets = [0, 256], sizes = [2, 128], strides = [1, 1]} : vector<2x512xf32> to vector<2x128xf32>
    %232 = math.tanh %231 : vector<2x128xf32>
    %233 = vector.extract_strided_slice %218 {offsets = [0, 384], sizes = [2, 128], strides = [1, 1]} : vector<2x512xf32> to vector<2x128xf32>
    %234 = arith.negf %233 : vector<2x128xf32>
    %235 = math.exp %234 : vector<2x128xf32>
    %cst_76 = arith.constant 1.000000e+00 : f32
    %236 = vector.broadcast %cst_76 : f32 to vector<2x128xf32>
    %237 = arith.addf %236, %235 : vector<2x128xf32>
    %238 = arith.divf %236, %237 : vector<2x128xf32>
    %239 = arith.mulf %230, %207 : vector<2x128xf32>
    %240 = arith.mulf %224, %232 : vector<2x128xf32>
    %241 = arith.addf %239, %240 : vector<2x128xf32>
    %242 = math.tanh %241 : vector<2x128xf32>
    %243 = arith.mulf %238, %242 : vector<2x128xf32>
    %c2_i32_77 = arith.constant 2 : i32
    %244 = arith.muli %c6_i32, %c2_i32_77 : i32
    %245 = arith.index_cast %244 : i32 to index
    %c0_78 = arith.constant 0 : index
    %246 = vector.load %arg11[%245, %c0_78] : memref<16x128xf32, #tpu.memory_space<vmem>>, vector<2x128xf32>
    tpu.vector_store %arg11[%245, %c0_78], %243 {strides = array<i32>} : memref<16x128xf32, #tpu.memory_space<vmem>>, vector<2x128xf32>,
    %c7_i32 = arith.constant 7 : i32
    %c2_i32_79 = arith.constant 2 : i32
    %247 = arith.muli %c7_i32, %c2_i32_79 : i32
    %248 = arith.index_cast %247 : i32 to index
    %c0_80 = arith.constant 0 : index
    %249 = vector.load %arg10[%248, %c0_80] : memref<16x512xf32, #tpu.memory_space<vmem>>, vector<2x512xf32>
    %c0_81 = arith.constant 0 : index
    %c0_82 = arith.constant 0 : index
    %250 = vector.load %arg2[%c0_81, %c0_82] : memref<128x512xf32, #tpu.memory_space<vmem>>, vector<128x512xf32>
    %cst_83 = arith.constant dense<0.000000e+00> : vector<2x512xf32>
    %251 = tpu.matmul %243, %250, %cst_83 {dimension_numbers = #tpu.dot_dimension_numbers<[1], [0], [0], [1], [0, 0, 1, 1], [], []>} : vector<2x128xf32>, vector<128x512xf32>, vector<2x512xf32> -> vector<2x512xf32>
    %252 = arith.addf %249, %251 : vector<2x512xf32>
    %253 = vector.extract_strided_slice %252 {offsets = [0, 0], sizes = [2, 128], strides = [1, 1]} : vector<2x512xf32> to vector<2x128xf32>
    %254 = arith.negf %253 : vector<2x128xf32>
    %255 = math.exp %254 : vector<2x128xf32>
    %cst_84 = arith.constant 1.000000e+00 : f32
    %256 = vector.broadcast %cst_84 : f32 to vector<2x128xf32>
    %257 = arith.addf %256, %255 : vector<2x128xf32>
    %258 = arith.divf %256, %257 : vector<2x128xf32>
    %259 = vector.extract_strided_slice %252 {offsets = [0, 128], sizes = [2, 128], strides = [1, 1]} : vector<2x512xf32> to vector<2x128xf32>
    %260 = arith.negf %259 : vector<2x128xf32>
    %261 = math.exp %260 : vector<2x128xf32>
    %cst_85 = arith.constant 1.000000e+00 : f32
    %262 = vector.broadcast %cst_85 : f32 to vector<2x128xf32>
    %263 = arith.addf %262, %261 : vector<2x128xf32>
    %264 = arith.divf %262, %263 : vector<2x128xf32>
    %265 = vector.extract_strided_slice %252 {offsets = [0, 256], sizes = [2, 128], strides = [1, 1]} : vector<2x512xf32> to vector<2x128xf32>
    %266 = math.tanh %265 : vector<2x128xf32>
    %267 = vector.extract_strided_slice %252 {offsets = [0, 384], sizes = [2, 128], strides = [1, 1]} : vector<2x512xf32> to vector<2x128xf32>
    %268 = arith.negf %267 : vector<2x128xf32>
    %269 = math.exp %268 : vector<2x128xf32>
    %cst_86 = arith.constant 1.000000e+00 : f32
    %270 = vector.broadcast %cst_86 : f32 to vector<2x128xf32>
    %271 = arith.addf %270, %269 : vector<2x128xf32>
    %272 = arith.divf %270, %271 : vector<2x128xf32>
    %273 = arith.mulf %264, %241 : vector<2x128xf32>
    %274 = arith.mulf %258, %266 : vector<2x128xf32>
    %275 = arith.addf %273, %274 : vector<2x128xf32>
    %276 = math.tanh %275 : vector<2x128xf32>
    %277 = arith.mulf %272, %276 : vector<2x128xf32>
    %c2_i32_87 = arith.constant 2 : i32
    %278 = arith.muli %c7_i32, %c2_i32_87 : i32
    %279 = arith.index_cast %278 : i32 to index
    %c0_88 = arith.constant 0 : index
    %280 = vector.load %arg11[%279, %c0_88] : memref<16x128xf32, #tpu.memory_space<vmem>>, vector<2x128xf32>
    tpu.vector_store %arg11[%279, %c0_88], %277 {strides = array<i32>} : memref<16x128xf32, #tpu.memory_space<vmem>>, vector<2x128xf32>,
    %c8_i32 = arith.constant 8 : i32
    %c0_89 = arith.constant 0 : index
    %c0_90 = arith.constant 0 : index
    %281 = vector.load %arg11[%c0_89, %c0_90] : memref<16x128xf32, #tpu.memory_space<vmem>>, vector<16x128xf32>
    %c0_91 = arith.constant 0 : index
    %c0_92 = arith.constant 0 : index
    %282 = vector.load %arg4[%c0_91, %c0_92] : memref<128x512xf32, #tpu.memory_space<vmem>>, vector<128x512xf32>
    %cst_93 = arith.constant dense<0.000000e+00> : vector<16x512xf32>
    %283 = tpu.matmul %281, %282, %cst_93 {dimension_numbers = #tpu.dot_dimension_numbers<[1], [0], [0], [1], [0, 0, 1, 1], [], []>} : vector<16x128xf32>, vector<128x512xf32>, vector<16x512xf32> -> vector<16x512xf32>
    %c0_94 = arith.constant 0 : index
    %c0_95 = arith.constant 0 : index
    %284 = vector.load %arg6[%c0_94, %c0_95] : memref<1x512xf32, #tpu.memory_space<vmem>>, vector<1x512xf32>
    %285 = vector.broadcast %284 : vector<1x512xf32> to vector<16x512xf32>
    %286 = arith.addf %283, %285 : vector<16x512xf32>
    %c0_96 = arith.constant 0 : index
    %c0_97 = arith.constant 0 : index
    %287 = vector.load %arg10[%c0_96, %c0_97] : memref<16x512xf32, #tpu.memory_space<vmem>>, vector<16x512xf32>
    tpu.vector_store %arg10[%c0_96, %c0_97], %286 {strides = array<i32>} : memref<16x512xf32, #tpu.memory_space<vmem>>, vector<16x512xf32>,
    %cst_98 = arith.constant 0.000000e+00 : f32
    %288 = vector.broadcast %cst_98 : f32 to vector<2x128xf32>
    %cst_99 = arith.constant 0.000000e+00 : f32
    %289 = vector.broadcast %cst_99 : f32 to vector<2x128xf32>
    %c0_i32_100 = arith.constant 0 : i32
    %c2_i32_101 = arith.constant 2 : i32
    %290 = arith.muli %c0_i32_100, %c2_i32_101 : i32
    %291 = arith.index_cast %290 : i32 to index
    %c0_102 = arith.constant 0 : index
    %292 = vector.load %arg10[%291, %c0_102] : memref<16x512xf32, #tpu.memory_space<vmem>>, vector<2x512xf32>
    %c0_103 = arith.constant 0 : index
    %c0_104 = arith.constant 0 : index
    %293 = vector.load %arg5[%c0_103, %c0_104] : memref<128x512xf32, #tpu.memory_space<vmem>>, vector<128x512xf32>
    %cst_105 = arith.constant dense<0.000000e+00> : vector<2x512xf32>
    %294 = tpu.matmul %288, %293, %cst_105 {dimension_numbers = #tpu.dot_dimension_numbers<[1], [0], [0], [1], [0, 0, 1, 1], [], []>} : vector<2x128xf32>, vector<128x512xf32>, vector<2x512xf32> -> vector<2x512xf32>
    %295 = arith.addf %292, %294 : vector<2x512xf32>
    %296 = vector.extract_strided_slice %295 {offsets = [0, 0], sizes = [2, 128], strides = [1, 1]} : vector<2x512xf32> to vector<2x128xf32>
    %297 = arith.negf %296 : vector<2x128xf32>
    %298 = math.exp %297 : vector<2x128xf32>
    %cst_106 = arith.constant 1.000000e+00 : f32
    %299 = vector.broadcast %cst_106 : f32 to vector<2x128xf32>
    %300 = arith.addf %299, %298 : vector<2x128xf32>
    %301 = arith.divf %299, %300 : vector<2x128xf32>
    %302 = vector.extract_strided_slice %295 {offsets = [0, 128], sizes = [2, 128], strides = [1, 1]} : vector<2x512xf32> to vector<2x128xf32>
    %303 = arith.negf %302 : vector<2x128xf32>
    %304 = math.exp %303 : vector<2x128xf32>
    %cst_107 = arith.constant 1.000000e+00 : f32
    %305 = vector.broadcast %cst_107 : f32 to vector<2x128xf32>
    %306 = arith.addf %305, %304 : vector<2x128xf32>
    %307 = arith.divf %305, %306 : vector<2x128xf32>
    %308 = vector.extract_strided_slice %295 {offsets = [0, 256], sizes = [2, 128], strides = [1, 1]} : vector<2x512xf32> to vector<2x128xf32>
    %309 = math.tanh %308 : vector<2x128xf32>
    %310 = vector.extract_strided_slice %295 {offsets = [0, 384], sizes = [2, 128], strides = [1, 1]} : vector<2x512xf32> to vector<2x128xf32>
    %311 = arith.negf %310 : vector<2x128xf32>
    %312 = math.exp %311 : vector<2x128xf32>
    %cst_108 = arith.constant 1.000000e+00 : f32
    %313 = vector.broadcast %cst_108 : f32 to vector<2x128xf32>
    %314 = arith.addf %313, %312 : vector<2x128xf32>
    %315 = arith.divf %313, %314 : vector<2x128xf32>
    %316 = arith.mulf %307, %289 : vector<2x128xf32>
    %317 = arith.mulf %301, %309 : vector<2x128xf32>
    %318 = arith.addf %316, %317 : vector<2x128xf32>
    %319 = math.tanh %318 : vector<2x128xf32>
    %320 = arith.mulf %315, %319 : vector<2x128xf32>
    %c1_i32_109 = arith.constant 1 : i32
    %c2_i32_110 = arith.constant 2 : i32
    %321 = arith.muli %c1_i32_109, %c2_i32_110 : i32
    %322 = arith.index_cast %321 : i32 to index
    %c0_111 = arith.constant 0 : index
    %323 = vector.load %arg10[%322, %c0_111] : memref<16x512xf32, #tpu.memory_space<vmem>>, vector<2x512xf32>
    %c0_112 = arith.constant 0 : index
    %c0_113 = arith.constant 0 : index
    %324 = vector.load %arg5[%c0_112, %c0_113] : memref<128x512xf32, #tpu.memory_space<vmem>>, vector<128x512xf32>
    %cst_114 = arith.constant dense<0.000000e+00> : vector<2x512xf32>
    %325 = tpu.matmul %320, %324, %cst_114 {dimension_numbers = #tpu.dot_dimension_numbers<[1], [0], [0], [1], [0, 0, 1, 1], [], []>} : vector<2x128xf32>, vector<128x512xf32>, vector<2x512xf32> -> vector<2x512xf32>
    %326 = arith.addf %323, %325 : vector<2x512xf32>
    %327 = vector.extract_strided_slice %326 {offsets = [0, 0], sizes = [2, 128], strides = [1, 1]} : vector<2x512xf32> to vector<2x128xf32>
    %328 = arith.negf %327 : vector<2x128xf32>
    %329 = math.exp %328 : vector<2x128xf32>
    %cst_115 = arith.constant 1.000000e+00 : f32
    %330 = vector.broadcast %cst_115 : f32 to vector<2x128xf32>
    %331 = arith.addf %330, %329 : vector<2x128xf32>
    %332 = arith.divf %330, %331 : vector<2x128xf32>
    %333 = vector.extract_strided_slice %326 {offsets = [0, 128], sizes = [2, 128], strides = [1, 1]} : vector<2x512xf32> to vector<2x128xf32>
    %334 = arith.negf %333 : vector<2x128xf32>
    %335 = math.exp %334 : vector<2x128xf32>
    %cst_116 = arith.constant 1.000000e+00 : f32
    %336 = vector.broadcast %cst_116 : f32 to vector<2x128xf32>
    %337 = arith.addf %336, %335 : vector<2x128xf32>
    %338 = arith.divf %336, %337 : vector<2x128xf32>
    %339 = vector.extract_strided_slice %326 {offsets = [0, 256], sizes = [2, 128], strides = [1, 1]} : vector<2x512xf32> to vector<2x128xf32>
    %340 = math.tanh %339 : vector<2x128xf32>
    %341 = vector.extract_strided_slice %326 {offsets = [0, 384], sizes = [2, 128], strides = [1, 1]} : vector<2x512xf32> to vector<2x128xf32>
    %342 = arith.negf %341 : vector<2x128xf32>
    %343 = math.exp %342 : vector<2x128xf32>
    %cst_117 = arith.constant 1.000000e+00 : f32
    %344 = vector.broadcast %cst_117 : f32 to vector<2x128xf32>
    %345 = arith.addf %344, %343 : vector<2x128xf32>
    %346 = arith.divf %344, %345 : vector<2x128xf32>
    %347 = arith.mulf %338, %318 : vector<2x128xf32>
    %348 = arith.mulf %332, %340 : vector<2x128xf32>
    %349 = arith.addf %347, %348 : vector<2x128xf32>
    %350 = math.tanh %349 : vector<2x128xf32>
    %351 = arith.mulf %346, %350 : vector<2x128xf32>
    %c2_i32_118 = arith.constant 2 : i32
    %c2_i32_119 = arith.constant 2 : i32
    %352 = arith.muli %c2_i32_118, %c2_i32_119 : i32
    %353 = arith.index_cast %352 : i32 to index
    %c0_120 = arith.constant 0 : index
    %354 = vector.load %arg10[%353, %c0_120] : memref<16x512xf32, #tpu.memory_space<vmem>>, vector<2x512xf32>
    %c0_121 = arith.constant 0 : index
    %c0_122 = arith.constant 0 : index
    %355 = vector.load %arg5[%c0_121, %c0_122] : memref<128x512xf32, #tpu.memory_space<vmem>>, vector<128x512xf32>
    %cst_123 = arith.constant dense<0.000000e+00> : vector<2x512xf32>
    %356 = tpu.matmul %351, %355, %cst_123 {dimension_numbers = #tpu.dot_dimension_numbers<[1], [0], [0], [1], [0, 0, 1, 1], [], []>} : vector<2x128xf32>, vector<128x512xf32>, vector<2x512xf32> -> vector<2x512xf32>
    %357 = arith.addf %354, %356 : vector<2x512xf32>
    %358 = vector.extract_strided_slice %357 {offsets = [0, 0], sizes = [2, 128], strides = [1, 1]} : vector<2x512xf32> to vector<2x128xf32>
    %359 = arith.negf %358 : vector<2x128xf32>
    %360 = math.exp %359 : vector<2x128xf32>
    %cst_124 = arith.constant 1.000000e+00 : f32
    %361 = vector.broadcast %cst_124 : f32 to vector<2x128xf32>
    %362 = arith.addf %361, %360 : vector<2x128xf32>
    %363 = arith.divf %361, %362 : vector<2x128xf32>
    %364 = vector.extract_strided_slice %357 {offsets = [0, 128], sizes = [2, 128], strides = [1, 1]} : vector<2x512xf32> to vector<2x128xf32>
    %365 = arith.negf %364 : vector<2x128xf32>
    %366 = math.exp %365 : vector<2x128xf32>
    %cst_125 = arith.constant 1.000000e+00 : f32
    %367 = vector.broadcast %cst_125 : f32 to vector<2x128xf32>
    %368 = arith.addf %367, %366 : vector<2x128xf32>
    %369 = arith.divf %367, %368 : vector<2x128xf32>
    %370 = vector.extract_strided_slice %357 {offsets = [0, 256], sizes = [2, 128], strides = [1, 1]} : vector<2x512xf32> to vector<2x128xf32>
    %371 = math.tanh %370 : vector<2x128xf32>
    %372 = vector.extract_strided_slice %357 {offsets = [0, 384], sizes = [2, 128], strides = [1, 1]} : vector<2x512xf32> to vector<2x128xf32>
    %373 = arith.negf %372 : vector<2x128xf32>
    %374 = math.exp %373 : vector<2x128xf32>
    %cst_126 = arith.constant 1.000000e+00 : f32
    %375 = vector.broadcast %cst_126 : f32 to vector<2x128xf32>
    %376 = arith.addf %375, %374 : vector<2x128xf32>
    %377 = arith.divf %375, %376 : vector<2x128xf32>
    %378 = arith.mulf %369, %349 : vector<2x128xf32>
    %379 = arith.mulf %363, %371 : vector<2x128xf32>
    %380 = arith.addf %378, %379 : vector<2x128xf32>
    %381 = math.tanh %380 : vector<2x128xf32>
    %382 = arith.mulf %377, %381 : vector<2x128xf32>
    %c3_i32_127 = arith.constant 3 : i32
    %c2_i32_128 = arith.constant 2 : i32
    %383 = arith.muli %c3_i32_127, %c2_i32_128 : i32
    %384 = arith.index_cast %383 : i32 to index
    %c0_129 = arith.constant 0 : index
    %385 = vector.load %arg10[%384, %c0_129] : memref<16x512xf32, #tpu.memory_space<vmem>>, vector<2x512xf32>
    %c0_130 = arith.constant 0 : index
    %c0_131 = arith.constant 0 : index
    %386 = vector.load %arg5[%c0_130, %c0_131] : memref<128x512xf32, #tpu.memory_space<vmem>>, vector<128x512xf32>
    %cst_132 = arith.constant dense<0.000000e+00> : vector<2x512xf32>
    %387 = tpu.matmul %382, %386, %cst_132 {dimension_numbers = #tpu.dot_dimension_numbers<[1], [0], [0], [1], [0, 0, 1, 1], [], []>} : vector<2x128xf32>, vector<128x512xf32>, vector<2x512xf32> -> vector<2x512xf32>
    %388 = arith.addf %385, %387 : vector<2x512xf32>
    %389 = vector.extract_strided_slice %388 {offsets = [0, 0], sizes = [2, 128], strides = [1, 1]} : vector<2x512xf32> to vector<2x128xf32>
    %390 = arith.negf %389 : vector<2x128xf32>
    %391 = math.exp %390 : vector<2x128xf32>
    %cst_133 = arith.constant 1.000000e+00 : f32
    %392 = vector.broadcast %cst_133 : f32 to vector<2x128xf32>
    %393 = arith.addf %392, %391 : vector<2x128xf32>
    %394 = arith.divf %392, %393 : vector<2x128xf32>
    %395 = vector.extract_strided_slice %388 {offsets = [0, 128], sizes = [2, 128], strides = [1, 1]} : vector<2x512xf32> to vector<2x128xf32>
    %396 = arith.negf %395 : vector<2x128xf32>
    %397 = math.exp %396 : vector<2x128xf32>
    %cst_134 = arith.constant 1.000000e+00 : f32
    %398 = vector.broadcast %cst_134 : f32 to vector<2x128xf32>
    %399 = arith.addf %398, %397 : vector<2x128xf32>
    %400 = arith.divf %398, %399 : vector<2x128xf32>
    %401 = vector.extract_strided_slice %388 {offsets = [0, 256], sizes = [2, 128], strides = [1, 1]} : vector<2x512xf32> to vector<2x128xf32>
    %402 = math.tanh %401 : vector<2x128xf32>
    %403 = vector.extract_strided_slice %388 {offsets = [0, 384], sizes = [2, 128], strides = [1, 1]} : vector<2x512xf32> to vector<2x128xf32>
    %404 = arith.negf %403 : vector<2x128xf32>
    %405 = math.exp %404 : vector<2x128xf32>
    %cst_135 = arith.constant 1.000000e+00 : f32
    %406 = vector.broadcast %cst_135 : f32 to vector<2x128xf32>
    %407 = arith.addf %406, %405 : vector<2x128xf32>
    %408 = arith.divf %406, %407 : vector<2x128xf32>
    %409 = arith.mulf %400, %380 : vector<2x128xf32>
    %410 = arith.mulf %394, %402 : vector<2x128xf32>
    %411 = arith.addf %409, %410 : vector<2x128xf32>
    %412 = math.tanh %411 : vector<2x128xf32>
    %413 = arith.mulf %408, %412 : vector<2x128xf32>
    %c4_i32_136 = arith.constant 4 : i32
    %c2_i32_137 = arith.constant 2 : i32
    %414 = arith.muli %c4_i32_136, %c2_i32_137 : i32
    %415 = arith.index_cast %414 : i32 to index
    %c0_138 = arith.constant 0 : index
    %416 = vector.load %arg10[%415, %c0_138] : memref<16x512xf32, #tpu.memory_space<vmem>>, vector<2x512xf32>
    %c0_139 = arith.constant 0 : index
    %c0_140 = arith.constant 0 : index
    %417 = vector.load %arg5[%c0_139, %c0_140] : memref<128x512xf32, #tpu.memory_space<vmem>>, vector<128x512xf32>
    %cst_141 = arith.constant dense<0.000000e+00> : vector<2x512xf32>
    %418 = tpu.matmul %413, %417, %cst_141 {dimension_numbers = #tpu.dot_dimension_numbers<[1], [0], [0], [1], [0, 0, 1, 1], [], []>} : vector<2x128xf32>, vector<128x512xf32>, vector<2x512xf32> -> vector<2x512xf32>
    %419 = arith.addf %416, %418 : vector<2x512xf32>
    %420 = vector.extract_strided_slice %419 {offsets = [0, 0], sizes = [2, 128], strides = [1, 1]} : vector<2x512xf32> to vector<2x128xf32>
    %421 = arith.negf %420 : vector<2x128xf32>
    %422 = math.exp %421 : vector<2x128xf32>
    %cst_142 = arith.constant 1.000000e+00 : f32
    %423 = vector.broadcast %cst_142 : f32 to vector<2x128xf32>
    %424 = arith.addf %423, %422 : vector<2x128xf32>
    %425 = arith.divf %423, %424 : vector<2x128xf32>
    %426 = vector.extract_strided_slice %419 {offsets = [0, 128], sizes = [2, 128], strides = [1, 1]} : vector<2x512xf32> to vector<2x128xf32>
    %427 = arith.negf %426 : vector<2x128xf32>
    %428 = math.exp %427 : vector<2x128xf32>
    %cst_143 = arith.constant 1.000000e+00 : f32
    %429 = vector.broadcast %cst_143 : f32 to vector<2x128xf32>
    %430 = arith.addf %429, %428 : vector<2x128xf32>
    %431 = arith.divf %429, %430 : vector<2x128xf32>
    %432 = vector.extract_strided_slice %419 {offsets = [0, 256], sizes = [2, 128], strides = [1, 1]} : vector<2x512xf32> to vector<2x128xf32>
    %433 = math.tanh %432 : vector<2x128xf32>
    %434 = vector.extract_strided_slice %419 {offsets = [0, 384], sizes = [2, 128], strides = [1, 1]} : vector<2x512xf32> to vector<2x128xf32>
    %435 = arith.negf %434 : vector<2x128xf32>
    %436 = math.exp %435 : vector<2x128xf32>
    %cst_144 = arith.constant 1.000000e+00 : f32
    %437 = vector.broadcast %cst_144 : f32 to vector<2x128xf32>
    %438 = arith.addf %437, %436 : vector<2x128xf32>
    %439 = arith.divf %437, %438 : vector<2x128xf32>
    %440 = arith.mulf %431, %411 : vector<2x128xf32>
    %441 = arith.mulf %425, %433 : vector<2x128xf32>
    %442 = arith.addf %440, %441 : vector<2x128xf32>
    %443 = math.tanh %442 : vector<2x128xf32>
    %444 = arith.mulf %439, %443 : vector<2x128xf32>
    %c5_i32_145 = arith.constant 5 : i32
    %c2_i32_146 = arith.constant 2 : i32
    %445 = arith.muli %c5_i32_145, %c2_i32_146 : i32
    %446 = arith.index_cast %445 : i32 to index
    %c0_147 = arith.constant 0 : index
    %447 = vector.load %arg10[%446, %c0_147] : memref<16x512xf32, #tpu.memory_space<vmem>>, vector<2x512xf32>
    %c0_148 = arith.constant 0 : index
    %c0_149 = arith.constant 0 : index
    %448 = vector.load %arg5[%c0_148, %c0_149] : memref<128x512xf32, #tpu.memory_space<vmem>>, vector<128x512xf32>
    %cst_150 = arith.constant dense<0.000000e+00> : vector<2x512xf32>
    %449 = tpu.matmul %444, %448, %cst_150 {dimension_numbers = #tpu.dot_dimension_numbers<[1], [0], [0], [1], [0, 0, 1, 1], [], []>} : vector<2x128xf32>, vector<128x512xf32>, vector<2x512xf32> -> vector<2x512xf32>
    %450 = arith.addf %447, %449 : vector<2x512xf32>
    %451 = vector.extract_strided_slice %450 {offsets = [0, 0], sizes = [2, 128], strides = [1, 1]} : vector<2x512xf32> to vector<2x128xf32>
    %452 = arith.negf %451 : vector<2x128xf32>
    %453 = math.exp %452 : vector<2x128xf32>
    %cst_151 = arith.constant 1.000000e+00 : f32
    %454 = vector.broadcast %cst_151 : f32 to vector<2x128xf32>
    %455 = arith.addf %454, %453 : vector<2x128xf32>
    %456 = arith.divf %454, %455 : vector<2x128xf32>
    %457 = vector.extract_strided_slice %450 {offsets = [0, 128], sizes = [2, 128], strides = [1, 1]} : vector<2x512xf32> to vector<2x128xf32>
    %458 = arith.negf %457 : vector<2x128xf32>
    %459 = math.exp %458 : vector<2x128xf32>
    %cst_152 = arith.constant 1.000000e+00 : f32
    %460 = vector.broadcast %cst_152 : f32 to vector<2x128xf32>
    %461 = arith.addf %460, %459 : vector<2x128xf32>
    %462 = arith.divf %460, %461 : vector<2x128xf32>
    %463 = vector.extract_strided_slice %450 {offsets = [0, 256], sizes = [2, 128], strides = [1, 1]} : vector<2x512xf32> to vector<2x128xf32>
    %464 = math.tanh %463 : vector<2x128xf32>
    %465 = vector.extract_strided_slice %450 {offsets = [0, 384], sizes = [2, 128], strides = [1, 1]} : vector<2x512xf32> to vector<2x128xf32>
    %466 = arith.negf %465 : vector<2x128xf32>
    %467 = math.exp %466 : vector<2x128xf32>
    %cst_153 = arith.constant 1.000000e+00 : f32
    %468 = vector.broadcast %cst_153 : f32 to vector<2x128xf32>
    %469 = arith.addf %468, %467 : vector<2x128xf32>
    %470 = arith.divf %468, %469 : vector<2x128xf32>
    %471 = arith.mulf %462, %442 : vector<2x128xf32>
    %472 = arith.mulf %456, %464 : vector<2x128xf32>
    %473 = arith.addf %471, %472 : vector<2x128xf32>
    %474 = math.tanh %473 : vector<2x128xf32>
    %475 = arith.mulf %470, %474 : vector<2x128xf32>
    %c6_i32_154 = arith.constant 6 : i32
    %c2_i32_155 = arith.constant 2 : i32
    %476 = arith.muli %c6_i32_154, %c2_i32_155 : i32
    %477 = arith.index_cast %476 : i32 to index
    %c0_156 = arith.constant 0 : index
    %478 = vector.load %arg10[%477, %c0_156] : memref<16x512xf32, #tpu.memory_space<vmem>>, vector<2x512xf32>
    %c0_157 = arith.constant 0 : index
    %c0_158 = arith.constant 0 : index
    %479 = vector.load %arg5[%c0_157, %c0_158] : memref<128x512xf32, #tpu.memory_space<vmem>>, vector<128x512xf32>
    %cst_159 = arith.constant dense<0.000000e+00> : vector<2x512xf32>
    %480 = tpu.matmul %475, %479, %cst_159 {dimension_numbers = #tpu.dot_dimension_numbers<[1], [0], [0], [1], [0, 0, 1, 1], [], []>} : vector<2x128xf32>, vector<128x512xf32>, vector<2x512xf32> -> vector<2x512xf32>
    %481 = arith.addf %478, %480 : vector<2x512xf32>
    %482 = vector.extract_strided_slice %481 {offsets = [0, 0], sizes = [2, 128], strides = [1, 1]} : vector<2x512xf32> to vector<2x128xf32>
    %483 = arith.negf %482 : vector<2x128xf32>
    %484 = math.exp %483 : vector<2x128xf32>
    %cst_160 = arith.constant 1.000000e+00 : f32
    %485 = vector.broadcast %cst_160 : f32 to vector<2x128xf32>
    %486 = arith.addf %485, %484 : vector<2x128xf32>
    %487 = arith.divf %485, %486 : vector<2x128xf32>
    %488 = vector.extract_strided_slice %481 {offsets = [0, 128], sizes = [2, 128], strides = [1, 1]} : vector<2x512xf32> to vector<2x128xf32>
    %489 = arith.negf %488 : vector<2x128xf32>
    %490 = math.exp %489 : vector<2x128xf32>
    %cst_161 = arith.constant 1.000000e+00 : f32
    %491 = vector.broadcast %cst_161 : f32 to vector<2x128xf32>
    %492 = arith.addf %491, %490 : vector<2x128xf32>
    %493 = arith.divf %491, %492 : vector<2x128xf32>
    %494 = vector.extract_strided_slice %481 {offsets = [0, 256], sizes = [2, 128], strides = [1, 1]} : vector<2x512xf32> to vector<2x128xf32>
    %495 = math.tanh %494 : vector<2x128xf32>
    %496 = vector.extract_strided_slice %481 {offsets = [0, 384], sizes = [2, 128], strides = [1, 1]} : vector<2x512xf32> to vector<2x128xf32>
    %497 = arith.negf %496 : vector<2x128xf32>
    %498 = math.exp %497 : vector<2x128xf32>
    %cst_162 = arith.constant 1.000000e+00 : f32
    %499 = vector.broadcast %cst_162 : f32 to vector<2x128xf32>
    %500 = arith.addf %499, %498 : vector<2x128xf32>
    %501 = arith.divf %499, %500 : vector<2x128xf32>
    %502 = arith.mulf %493, %473 : vector<2x128xf32>
    %503 = arith.mulf %487, %495 : vector<2x128xf32>
    %504 = arith.addf %502, %503 : vector<2x128xf32>
    %505 = math.tanh %504 : vector<2x128xf32>
    %506 = arith.mulf %501, %505 : vector<2x128xf32>
    %c7_i32_163 = arith.constant 7 : i32
    %c2_i32_164 = arith.constant 2 : i32
    %507 = arith.muli %c7_i32_163, %c2_i32_164 : i32
    %508 = arith.index_cast %507 : i32 to index
    %c0_165 = arith.constant 0 : index
    %509 = vector.load %arg10[%508, %c0_165] : memref<16x512xf32, #tpu.memory_space<vmem>>, vector<2x512xf32>
    %c0_166 = arith.constant 0 : index
    %c0_167 = arith.constant 0 : index
    %510 = vector.load %arg5[%c0_166, %c0_167] : memref<128x512xf32, #tpu.memory_space<vmem>>, vector<128x512xf32>
    %cst_168 = arith.constant dense<0.000000e+00> : vector<2x512xf32>
    %511 = tpu.matmul %506, %510, %cst_168 {dimension_numbers = #tpu.dot_dimension_numbers<[1], [0], [0], [1], [0, 0, 1, 1], [], []>} : vector<2x128xf32>, vector<128x512xf32>, vector<2x512xf32> -> vector<2x512xf32>
    %512 = arith.addf %509, %511 : vector<2x512xf32>
    %513 = vector.extract_strided_slice %512 {offsets = [0, 0], sizes = [2, 128], strides = [1, 1]} : vector<2x512xf32> to vector<2x128xf32>
    %514 = arith.negf %513 : vector<2x128xf32>
    %515 = math.exp %514 : vector<2x128xf32>
    %cst_169 = arith.constant 1.000000e+00 : f32
    %516 = vector.broadcast %cst_169 : f32 to vector<2x128xf32>
    %517 = arith.addf %516, %515 : vector<2x128xf32>
    %518 = arith.divf %516, %517 : vector<2x128xf32>
    %519 = vector.extract_strided_slice %512 {offsets = [0, 128], sizes = [2, 128], strides = [1, 1]} : vector<2x512xf32> to vector<2x128xf32>
    %520 = arith.negf %519 : vector<2x128xf32>
    %521 = math.exp %520 : vector<2x128xf32>
    %cst_170 = arith.constant 1.000000e+00 : f32
    %522 = vector.broadcast %cst_170 : f32 to vector<2x128xf32>
    %523 = arith.addf %522, %521 : vector<2x128xf32>
    %524 = arith.divf %522, %523 : vector<2x128xf32>
    %525 = vector.extract_strided_slice %512 {offsets = [0, 256], sizes = [2, 128], strides = [1, 1]} : vector<2x512xf32> to vector<2x128xf32>
    %526 = math.tanh %525 : vector<2x128xf32>
    %527 = vector.extract_strided_slice %512 {offsets = [0, 384], sizes = [2, 128], strides = [1, 1]} : vector<2x512xf32> to vector<2x128xf32>
    %528 = arith.negf %527 : vector<2x128xf32>
    %529 = math.exp %528 : vector<2x128xf32>
    %cst_171 = arith.constant 1.000000e+00 : f32
    %530 = vector.broadcast %cst_171 : f32 to vector<2x128xf32>
    %531 = arith.addf %530, %529 : vector<2x128xf32>
    %532 = arith.divf %530, %531 : vector<2x128xf32>
    %533 = arith.mulf %524, %504 : vector<2x128xf32>
    %534 = arith.mulf %518, %526 : vector<2x128xf32>
    %535 = arith.addf %533, %534 : vector<2x128xf32>
    %536 = math.tanh %535 : vector<2x128xf32>
    %537 = arith.mulf %532, %536 : vector<2x128xf32>
    %c8_i32_172 = arith.constant 8 : i32
    %c0_173 = arith.constant 0 : index
    %c0_174 = arith.constant 0 : index
    %538 = vector.load %arg7[%c0_173, %c0_174] : memref<128x128xf32, #tpu.memory_space<vmem>>, vector<128x128xf32>
    %cst_175 = arith.constant dense<0.000000e+00> : vector<2x128xf32>
    %539 = tpu.matmul %537, %538, %cst_175 {dimension_numbers = #tpu.dot_dimension_numbers<[1], [0], [0], [1], [0, 0, 1, 1], [], []>} : vector<2x128xf32>, vector<128x128xf32>, vector<2x128xf32> -> vector<2x128xf32>
    %c0_176 = arith.constant 0 : index
    %c0_177 = arith.constant 0 : index
    %540 = vector.load %arg8[%c0_176, %c0_177] : memref<1x128xf32, #tpu.memory_space<vmem>>, vector<1x128xf32>
    %541 = vector.broadcast %540 : vector<1x128xf32> to vector<2x128xf32>
    %542 = arith.addf %539, %541 : vector<2x128xf32>
    %cst_178 = arith.constant 0.000000e+00 : f32
    %543 = vector.broadcast %cst_178 : f32 to vector<2x128xf32>
    %544 = arith.maximumf %542, %543 : vector<2x128xf32>
    %c0_179 = arith.constant 0 : index
    %c0_180 = arith.constant 0 : index
    %545 = vector.load %arg9[%c0_179, %c0_180] : memref<2x128xf32, #tpu.memory_space<vmem>>, vector<2x128xf32>
    tpu.vector_store %arg9[%c0_179, %c0_180], %544 {strides = array<i32>} : memref<2x128xf32, #tpu.memory_space<vmem>>, vector<2x128xf32>,
    return
  }
}

</mosaic_0001>

<bundles_post_ra>
// kernel: lstm_fc_forward.1
= control target key start
LH: loop header
LB: loop body
LE: loop exit
PB: predicated region body
PF: predicated region fallthrough
CT: control target
= control target key end

     0   :  { %14 = vsyncpa [#allocation5], 0  ;;  %s6579_s0 = inlined_call_operand.vmem [shape: f32[16,16], index: 0, kind: input, shape index: {}]   ;;  %s6580_s1 = inlined_call_operand.hbm [shape: f32[16,512], index: 1, kind: input, shape index: {}]   ;;  %s6581_s2 = inlined_call_operand.hbm [shape: f32[128,512], index: 2, kind: input, shape index: {}]   ;;  %s6582_s3 = inlined_call_operand.vmem [shape: f32[1,512], index: 3, kind: input, shape index: {}]   ;;  %s6583_s4 = inlined_call_operand.hbm [shape: f32[128,512], index: 4, kind: input, shape index: {}]   ;;  %s6584_s5 = inlined_call_operand.hbm [shape: f32[128,512], index: 5, kind: input, shape index: {}]   ;;  %s6585_s6 = inlined_call_operand.vmem [shape: f32[1,512], index: 6, kind: input, shape index: {}]   ;;  %s6586_s7 = inlined_call_operand.hbm [shape: f32[128,128], index: 7, kind: input, shape index: {}]   ;;  %s6587_s8 = inlined_call_operand.vmem [shape: f32[1,128], index: 8, kind: input, shape index: {}]   ;;  %s6588_s9 = inlined_call_operand.hbm [shape: f32[2,128], index: 9, kind: output, shape index: {}]  }
   0x1   :  { %15 = vsyncpa [#allocation8], 0 }
   0x2   :  { %16 = vsyncpa [#allocation11], 0 }
   0x3   :  { %17 = vsyncpa [#allocation6], 0  ;;  %s4816_s30 = smov [#allocation7]   ;;  %s4817_s11 = smov [#allocation10]  }
   0x4   :  { %s37_s10 = sshll.u32 %s4816_s30, 4  ;;  %s63_s12 = sshll.u32 %s4817_s11, 4  ;;  %s38_s10 = int_to_ptr.vmem [resolvable:$true] %s37_s10  ;;  %s64_s12 = int_to_ptr.vmem [resolvable:$true] %s63_s12 }
   0x5   :  { %s4696_s13 = scalar_lea.vmem %s38_s10, 8192  ;;  %p4701_p1 = scmp.lt.s32.totalorder %s38_s10, %s38_s10 }
   0x6   :  { %p4697_p0 = scmp.ne.s32.totalorder %s38_s10, %s4696_s13  ;;  %p4702_p2 = scmp.lt.s32.totalorder %s4696_s13, %s4696_s13 }
   0x8   :  { %p4703_p3 = por %p4702_p2, %p4701_p1 }
   0xa   :  { %p4704_p4 = pnand %p4703_p3, %p4697_p0 }
   0xc   :  { %4707 = shalt.err (!%p4704_p4)
}
   0xd   :  { %s4818_s14 = smov 512   ;;  %s4819_s15 = smov 32  }
   0xe   :  { %43 = dma.hbm_to_vmem [thread:$0]  %s6581_s2, 8192, %s38_s10, [#allocation8], %s4818_s14, %s4818_s14, %s4819_s15  }
   0xf   :  { %s4716_s18 = scalar_lea.vmem %s64_s12, 8192  ;;  %p4721_p6 = scmp.lt.s32.totalorder %s64_s12, %s64_s12 }
  0x10   :  { %p4717_p5 = scmp.ne.s32.totalorder %s64_s12, %s4716_s18  ;;  %p4722_p7 = scmp.lt.s32.totalorder %s4716_s18, %s4716_s18 }
  0x12   :  { %p4723_p8 = por %p4722_p7, %p4721_p6 }
  0x14   :  { %p4724_p9 = pnand %p4723_p8, %p4717_p5 }
  0x16   :  { %4727 = shalt.err (!%p4724_p9)
}
  0x17   :  { %69 = dma.hbm_to_vmem [thread:$0]  %s6584_s5, 8192, %s64_s12, [#allocation11], %s4818_s14, %s4818_s14, %s4819_s15  }
  0x18   :  { %s4820_s21 = smov [#allocation4]   ;;  %s4821_s23 = smov [#allocation9]  }
  0x19   :  { %s25_s22 = sshll.u32 %s4820_s21, 4  ;;  %s51_s24 = sshll.u32 %s4821_s23, 4  ;;  %s26_s22 = int_to_ptr.vmem [resolvable:$true] %s25_s22  ;;  %s52_s24 = int_to_ptr.vmem [resolvable:$true] %s51_s24 }
  0x1a   :  { %s4736_s2 = scalar_lea.vmem %s26_s22, 1024  ;;  %p4741_p11 = scmp.lt.s32.totalorder %s26_s22, %s26_s22 }
  0x1b   :  { %p4737_p10 = scmp.ne.s32.totalorder %s26_s22, %s4736_s2  ;;  %p4742_p12 = scmp.lt.s32.totalorder %s4736_s2, %s4736_s2 }
  0x1d   :  { %p4743_p13 = por %p4742_p12, %p4741_p11 }
  0x1f   :  { %p4744_p0 = pnand %p4743_p13, %p4737_p10 }
  0x21   :  { %4747 = shalt.err (!%p4744_p0)
}
  0x22   :  { %31 = dma.hbm_to_vmem [thread:$0]  %s6580_s1, 1024, %s26_s22, [#allocation5], %s4818_s14, %s4818_s14, %s4819_s15  }
  0x23   :  { %s4756_s5 = scalar_lea.vmem %s52_s24, 8192  ;;  %p4761_p2 = scmp.lt.s32.totalorder %s52_s24, %s52_s24 }
  0x24   :  { %p4757_p1 = scmp.ne.s32.totalorder %s52_s24, %s4756_s5  ;;  %p4762_p3 = scmp.lt.s32.totalorder %s4756_s5, %s4756_s5 }
  0x26   :  { %p4763_p4 = por %p4762_p3, %p4761_p2 }
  0x28   :  { %p4764_p5 = pnand %p4763_p4, %p4757_p1 }
  0x2a   :  { %4767 = shalt.err (!%p4764_p5)
}
  0x2b   :  { %57 = dma.hbm_to_vmem [thread:$0]  %s6583_s4, 8192, %s52_s24, [#allocation8], %s4818_s14, %s4818_s14, %s4819_s15  }
  0x2c   :  { %s4822_s29 = smov [#allocation12]  }
  0x2d   :  { %s77_s30 = sshll.u32 %s4822_s29, 4  ;;  %s78_s30 = int_to_ptr.vmem [resolvable:$true] %s77_s30 }
  0x2e   :  { %s4776_s10 = scalar_lea.vmem %s78_s30, 2048  ;;  %p4781_p7 = scmp.lt.s32.totalorder %s78_s30, %s78_s30 }
  0x2f   :  { %p4777_p6 = scmp.ne.s32.totalorder %s78_s30, %s4776_s10  ;;  %p4782_p8 = scmp.lt.s32.totalorder %s4776_s10, %s4776_s10 }
  0x31   :  { %p4783_p9 = por %p4782_p8, %p4781_p7 }
  0x33   :  { %p4784_p10 = pnand %p4783_p9, %p4777_p6 }
  0x35   :  { %4787 = shalt.err (!%p4784_p10)
}
  0x36   :  { %s4823_s1 = smov 128   ;;  %s4824_s11 = smov 8  }
  0x37   :  { %83 = dma.hbm_to_vmem [thread:$0]  %s6586_s7, 2048, %s78_s30, [#allocation11], %s4823_s1, %s4823_s1, %s4824_s11  }
  0x38   :  { %4808 = dma.done.wait [#allocation5], 1024  }
  0x39   :  { %4809 = vsyncadd [#allocation5], 4294966272 }
  0x3a   :  { %4810 = dma.done.wait [#allocation8], 16384  }
  0x3b   :  { %4811 = vsyncadd [#allocation8], 4294950912 }
  0x3c   :  { %4812 = dma.done.wait [#allocation11], 10240  }
  0x3d   :  { %4813 = vsyncadd [#allocation11], 4294957056  ;;  %v6594_v0 = vmov 0.0   ;;  %v108_v1 = vld [vmem:[#allocation4 + $0x28] sm:$0xff]  ;;  %v107_v3 = vld [vmem:[#allocation4 + $0x20] sm:$0xff]  ;;  %vm133_vm0 = vcmask 130048  }
  0x3e   :  { %204 = vmatprep.mubr.f32.mxu1 %v6594_v0  ;;  %434 = vmatprep.mubr.f32.mxu0 %v6594_v0  ;;  %v4907_v2 = vld [vmem:[#allocation7 + $0x1e8] sm:$0xff]  ;;  %v4910_v4 = vld [vmem:[#allocation7 + $0x1e0] sm:$0xff]  ;;  %v101_v9 = vld [vmem:[%s6579_s0] sm:$0xff]  ;;  %vm4826_vm1 = vmmov 0   ;;  %s4827_s19 = smov [#allocation13]  }
  0x3f   :  { %6753 = vst [vmem:[#allocation18_spill] sm:$0xff] %v4907_v2  ;;  %168 = vmatprep.subr.mxu1 %v108_v1  ;;  %370 = vmatprep.subr.mxu0 %v4907_v2  ;;  %v104_v5 = vld [vmem:[#allocation4 + $0x8] sm:$0xff]  ;;  %v103_v7 = vld [vmem:[#allocation4] sm:$0xff]  ;;  %v110_v13 = vld [vmem:[#allocation4 + $0x38] sm:$0xff]  ;;  %s4240_s20 = sshll.u32 %s4827_s19, 4  ;;  %s4241_s20 = int_to_ptr.vmem [resolvable:$true] %s4240_s20 }
  0x40   :  { %v4912_v6 = vld [vmem:[#allocation7 + $0x1c8] sm:$0xff]  ;;  %169 = vmatpush1.msra.mxu1 %v107_v3  ;;  %371 = vmatpush1.msra.mxu0 %v4910_v4  ;;  %v4915_v8 = vld [vmem:[#allocation7 + $0x1c0] sm:$0xff]  ;;  %v109_v15 = vld [vmem:[#allocation4 + $0x30] sm:$0xff]  ;;  %s4788_s21 = scalar_lea.vmem %s4241_s20, 32  ;;  %p4793_p12 = scmp.lt.s32.totalorder %s4241_s20, %s4241_s20 }
  0x41   :  { %170 = vmatprep.subr.mxu1 %v104_v5  ;;  %372 = vmatprep.subr.mxu0 %v4912_v6  ;;  %v4921_v10 = vld [vmem:[#allocation7 + $0x1a8] sm:$0xff]  ;;  %v4923_v11 = vld [vmem:[#allocation7 + $0x1a0] sm:$0xff]  ;;  %v4937_v16 = vld [vmem:[%s6579_s0 + $0x8] sm:$0xff]  ;;  %p4789_p11 = scmp.ne.s32.totalorder %s4241_s20, %s4788_s21  ;;  %p4794_p13 = scmp.lt.s32.totalorder %s4788_s21, %s4788_s21 }
  0x42   :  { %171 = vmatpush1.msra.mxu1 %v103_v7  ;;  %373 = vmatpush1.msra.mxu0 %v4915_v8  ;;  %v4926_v12 = vld [vmem:[#allocation7 + $0x188] sm:$0xff]  ;;  %v4930_v14 = vld [vmem:[#allocation7 + $0x180] sm:$0xff]  ;;  %v106_v18 = vld [vmem:[#allocation4 + $0x18] sm:$0xff] }
  0x43   :  { %4251 = vmatmul.mubr.msk.f32.vlgmr.msra.gmra.mxu1 %vm133_vm0, %v101_v9  ;;  %374 = vmatprep.subr.mxu0 %v4921_v10  ;;  %v4939_v17 = vld [vmem:[#allocation7 + $0x168] sm:$0xff]  ;;  %v4942_v19 = vld [vmem:[#allocation7 + $0x160] sm:$0xff]  ;;  %v105_v20 = vld [vmem:[#allocation4 + $0x10] sm:$0xff]  ;;  %p4795_p0 = por %p4794_p13, %p4793_p12 }
  0x44   :  { %375 = vmatpush1.msra.mxu0 %v4923_v11  ;;  %210 = vmatprep.mubr.f32.mxu1 %v6594_v0  ;;  %v4945_v21 = vld [vmem:[#allocation7 + $0x148] sm:$0xff]  ;;  %v4950_v22 = vld [vmem:[#allocation7 + $0x140] sm:$0xff]  ;;  %v4953_v23 = vld [vmem:[#allocation7 + $0x1f8] sm:$0xff] }
  0x45   :  { %376 = vmatprep.subr.mxu0 %v4926_v12  ;;  %245 = vmatprep.subr.mxu1 %v110_v13  ;;  %v4956_v24 = vld [vmem:[#allocation7 + $0x128] sm:$0xff]  ;;  %v4958_v25 = vld [vmem:[#allocation7 + $0x1f0] sm:$0xff]  ;;  %v4962_v26 = vld [vmem:[#allocation7 + $0x120] sm:$0xff]  ;;  %p4796_p1 = pnand %p4795_p0, %p4789_p11 }
  0x46   :  { %377 = vmatpush1.msra.mxu0 %v4930_v14  ;;  %246 = vmatpush1.msra.mxu1 %v109_v15  ;;  %v4964_v27 = vld [vmem:[#allocation7 + $0x1d8] sm:$0xff]  ;;  %v4968_v28 = vld [vmem:[#allocation7 + $0x108] sm:$0xff]  ;;  %v4970_v29 = vld [vmem:[#allocation7 + $0x1d0] sm:$0xff] }
  0x47   :  { %4252 = vmatmul.mubr.msk.f32.gmra.mxu1 %vm133_vm0, %v4937_v16  ;;  %378 = vmatprep.subr.mxu0 %v4939_v17  ;;  %v4974_v30 = vld [vmem:[#allocation7 + $0x100] sm:$0xff]  ;;  %v4976_v31 = vld [vmem:[#allocation7 + $0x1b8] sm:$0xff]  ;;  %v4980_v32 = vld [vmem:[#allocation7 + $0xe8] sm:$0xff] }
  0x48   :  { %247 = vmatprep.subr.mxu1 %v106_v18  ;;  %379 = vmatpush1.msra.mxu0 %v4942_v19  ;;  %v4982_v33 = vld [vmem:[#allocation7 + $0x1b0] sm:$0xff]  ;;  %v4986_v34 = vld [vmem:[#allocation7 + $0xe0] sm:$0xff]  ;;  %v4988_v35 = vld [vmem:[#allocation7 + $0x198] sm:$0xff] }
  0x49   :  { %248 = vmatpush1.msra.mxu1 %v105_v20  ;;  %380 = vmatprep.subr.mxu0 %v4945_v21  ;;  %v4992_v36 = vld [vmem:[#allocation7 + $0xc8] sm:$0xff]  ;;  %v4994_v37 = vld [vmem:[#allocation7 + $0x190] sm:$0xff]  ;;  %v4998_v38 = vld [vmem:[#allocation7 + $0xc0] sm:$0xff] }
  0x4a   :  { %281 = vmatprep.mubr.f32.mxu1 %v6594_v0  ;;  %381 = vmatpush1.msra.mxu0 %v4950_v22  ;;  %v5000_v39 = vld [vmem:[#allocation7 + $0x178] sm:$0xff]  ;;  %v5004_v40 = vld [vmem:[#allocation7 + $0xa8] sm:$0xff]  ;;  %v5006_v41 = vld [vmem:[#allocation7 + $0x170] sm:$0xff] }
  0x4b   :  { %441 = vmatprep.subr.mxu1 %v4953_v23  ;;  %4253 = vmatmul.mubr.msk.f32.vlgmr.msra.gmra.mxu1 %vm133_vm0, %v101_v9  ;;  %v5010_v42 = vld [vmem:[#allocation7 + $0xa0] sm:$0xff]  ;;  %v5012_v43 = vld [vmem:[#allocation7 + $0x158] sm:$0xff]  ;;  %v5016_v44 = vld [vmem:[#allocation7 + $0x88] sm:$0xff] }
  0x4c   :  { %382 = vmatprep.subr.mxu0 %v4956_v24  ;;  %442 = vmatpush1.msra.mxu1 %v4958_v25  ;;  %v5018_v45 = vld [vmem:[#allocation7 + $0x150] sm:$0xff]  ;;  %v5022_v46 = vld [vmem:[#allocation7 + $0x80] sm:$0xff]  ;;  %v5024_v47 = vld [vmem:[#allocation7 + $0x138] sm:$0xff] }
  0x4d   :  { %383 = vmatpush1.msra.mxu0 %v4962_v26  ;;  %443 = vmatprep.subr.mxu1 %v4964_v27  ;;  %6754 = vst [vmem:[#allocation19_spill] sm:$0xff] %v5022_v46  ;;  %v5028_v48 = vld [vmem:[#allocation7 + $0x68] sm:$0xff]  ;;  %v5030_v49 = vld [vmem:[#allocation7 + $0x130] sm:$0xff]  ;;  %v5034_v50 = vld [vmem:[#allocation7 + $0x60] sm:$0xff] }
  0x4e   :  { %384 = vmatprep.subr.mxu0 %v4968_v28  ;;  %444 = vmatpush1.msra.mxu1 %v4970_v29  ;;  %6755 = vst [vmem:[#allocation20_spill] sm:$0xff] %v5028_v48  ;;  %6756 = vst [vmem:[#allocation21_spill] sm:$0xff] %v5034_v50  ;;  %v5036_v51 = vld [vmem:[#allocation7 + $0x118] sm:$0xff]  ;;  %v5040_v52 = vld [vmem:[#allocation7 + $0x48] sm:$0xff] }
  0x4f   :  { %385 = vmatpush1.msra.mxu0 %v4974_v30  ;;  %445 = vmatprep.subr.mxu1 %v4976_v31  ;;  %6757 = vst [vmem:[#allocation22_spill] sm:$0xff] %v5040_v52  ;;  %v5042_v53 = vld [vmem:[#allocation7 + $0x110] sm:$0xff]  ;;  %v5046_v54 = vld [vmem:[#allocation7 + $0x40] sm:$0xff]  ;;  %v5048_v55 = vld [vmem:[#allocation7 + $0xf8] sm:$0xff] }
  0x50   :  { %386 = vmatprep.subr.mxu0 %v4980_v32  ;;  %446 = vmatpush1.msra.mxu1 %v4982_v33  ;;  %6758 = vst [vmem:[#allocation23_spill] sm:$0xff] %v5046_v54  ;;  %v5052_v56 = vld [vmem:[#allocation7 + $0x28] sm:$0xff]  ;;  %v5054_v57 = vld [vmem:[#allocation7 + $0xf0] sm:$0xff]  ;;  %v5058_v58 = vld [vmem:[#allocation7 + $0x20] sm:$0xff] }
  0x51   :  { %387 = vmatpush1.msra.mxu0 %v4986_v34  ;;  %447 = vmatprep.subr.mxu1 %v4988_v35  ;;  %6759 = vst [vmem:[#allocation24_spill] sm:$0xff] %v5052_v56  ;;  %6760 = vst [vmem:[#allocation25_spill] sm:$0xff] %v5058_v58  ;;  %v5060_v59 = vld [vmem:[#allocation7 + $0xd8] sm:$0xff]  ;;  %v5064_v60 = vld [vmem:[#allocation7 + $0x8] sm:$0xff] }
  0x52   :  { %388 = vmatprep.subr.mxu0 %v4992_v36  ;;  %448 = vmatpush1.msra.mxu1 %v4994_v37  ;;  %6761 = vst [vmem:[#allocation26_spill] sm:$0xff] %v5064_v60  ;;  %v5066_v61 = vld [vmem:[#allocation7 + $0xd0] sm:$0xff]  ;;  %v5070_v62 = vld [vmem:[#allocation7] sm:$0xff]  ;;  %v5072_v63 = vld [vmem:[#allocation7 + $0xb8] sm:$0xff] }
  0x53   :  { %389 = vmatpush1.msra.mxu0 %v4998_v38  ;;  %449 = vmatprep.subr.mxu1 %v5000_v39  ;;  %6762 = vst [vmem:[#allocation27_spill] sm:$0xff] %v5070_v62  ;;  %v5076_v1 = vld [vmem:[#allocation7 + $0xb0] sm:$0xff]  ;;  %v5080_v3 = vld [vmem:[#allocation7 + $0x98] sm:$0xff] }
  0x54   :  { %390 = vmatprep.subr.mxu0 %v5004_v40  ;;  %450 = vmatpush1.msra.mxu1 %v5006_v41  ;;  %6763 = vst [vmem:[#allocation28_spill] sm:$0xff] %v5080_v3  ;;  %v5084_v5 = vld [vmem:[#allocation7 + $0x90] sm:$0xff]  ;;  %v5088_v7 = vld [vmem:[#allocation7 + $0x78] sm:$0xff] }
  0x55   :  { %391 = vmatpush1.msra.mxu0 %v5010_v42  ;;  %451 = vmatprep.subr.mxu1 %v5012_v43  ;;  %6764 = vst [vmem:[#allocation29_spill] sm:$0xff] %v5084_v5  ;;  %6765 = vst [vmem:[#allocation30_spill] sm:$0xff] %v5088_v7  ;;  %v5091_v9 = vld [vmem:[#allocation7 + $0x70] sm:$0xff]  ;;  %v5095_v13 = vld [vmem:[#allocation7 + $0x58] sm:$0xff] }
  0x56   :  { %392 = vmatprep.subr.mxu0 %v5016_v44  ;;  %452 = vmatpush1.msra.mxu1 %v5018_v45  ;;  %6766 = vst [vmem:[#allocation31_spill] sm:$0xff] %v5091_v9  ;;  %6767 = vst [vmem:[#allocation32_spill] sm:$0xff] %v5095_v13  ;;  %v5099_v15 = vld [vmem:[#allocation7 + $0x50] sm:$0xff]  ;;  %v5104_v18 = vld [vmem:[#allocation7 + $0x38] sm:$0xff] }
  0x57   :  { %393 = vmatpush1.msra.mxu0 %v5022_v46  ;;  %453 = vmatprep.subr.mxu1 %v5024_v47  ;;  %6768 = vst [vmem:[#allocation33_spill] sm:$0xff] %v5099_v15  ;;  %6769 = vst [vmem:[#allocation34_spill] sm:$0xff] %v5104_v18  ;;  %v5108_v20 = vld [vmem:[#allocation7 + $0x30] sm:$0xff] }
  0x58   :  { %394 = vmatprep.subr.mxu0 %v5028_v48  ;;  %454 = vmatpush1.msra.mxu1 %v5030_v49  ;;  %6770 = vst [vmem:[#allocation35_spill] sm:$0xff] %v5108_v20 }
  0x59   :  { %395 = vmatpush1.msra.mxu0 %v5034_v50  ;;  %455 = vmatprep.subr.mxu1 %v5036_v51 }
  0x5a   :  { %396 = vmatprep.subr.mxu0 %v5040_v52  ;;  %456 = vmatpush1.msra.mxu1 %v5042_v53 }
  0x5b   :  { %397 = vmatpush1.msra.mxu0 %v5046_v54  ;;  %457 = vmatprep.subr.mxu1 %v5048_v55 }
  0x5c   :  { %398 = vmatprep.subr.mxu0 %v5052_v56  ;;  %458 = vmatpush1.msra.mxu1 %v5054_v57 }
  0x5d   :  { %399 = vmatpush1.msra.mxu0 %v5058_v58  ;;  %459 = vmatprep.subr.mxu1 %v5060_v59 }
  0x5e   :  { %400 = vmatprep.subr.mxu0 %v5064_v60  ;;  %460 = vmatpush1.msra.mxu1 %v5066_v61 }
  0x5f   :  { %401 = vmatpush1.msra.mxu0 %v5070_v62  ;;  %461 = vmatprep.subr.mxu1 %v5072_v63 }
  0x60   :  { %435 = vmatmul.mubr.f32.vlgmr.msra.gmra.mxu0 %v6594_v0  ;;  %462 = vmatpush1.msra.mxu1 %v5076_v1 }
  0x61   :  { %463 = vmatprep.subr.mxu1 %v5080_v3  ;;  %287 = vmatprep.mubr.f32.mxu1 %v6594_v0 }
  0x62   :  { %464 = vmatpush1.msra.mxu1 %v5084_v5  ;;  %609 = vmatprep.subr.mxu0 %v4907_v2  ;;  %v5112_v2 = vld [vmem:[#allocation7 + $0x18] sm:$0xff] }
  0x63   :  { %465 = vmatprep.subr.mxu1 %v5088_v7  ;;  %4254 = vmatmul.mubr.msk.f32.gmra.mxu1 %vm133_vm0, %v4937_v16  ;;  %6771 = vst [vmem:[#allocation36_spill] sm:$0xff] %v5112_v2  ;;  %v5116_v16 = vld [vmem:[#allocation7 + $0x10] sm:$0xff] }
  0x64   :  { %466 = vmatpush1.msra.mxu1 %v5091_v9  ;;  %505 = vmatprep.mubr.f32.mxu1 %v6594_v0  ;;  %6772 = vst [vmem:[#allocation37_spill] sm:$0xff] %v5116_v16 }
  0x65   :  { %467 = vmatprep.subr.mxu1 %v5095_v13  ;;  %610 = vmatpush1.msra.mxu0 %v4910_v4 }
  0x66   :  { %468 = vmatpush1.msra.mxu1 %v5099_v15  ;;  %611 = vmatprep.subr.mxu0 %v4912_v6 }
  0x67   :  { %469 = vmatprep.subr.mxu1 %v5104_v18  ;;  %612 = vmatpush1.msra.mxu0 %v4915_v8 }
  0x68   :  { %470 = vmatpush1.msra.mxu1 %v5108_v20  ;;  %613 = vmatprep.subr.mxu0 %v4921_v10 }
  0x69   :  { %471 = vmatprep.subr.mxu1 %v5112_v2  ;;  %614 = vmatpush1.msra.mxu0 %v4923_v11 }
  0x6a   :  { %472 = vmatpush1.msra.mxu1 %v5116_v16  ;;  %615 = vmatprep.subr.mxu0 %v4926_v12 }
  0x6b   :  { %506 = vmatmul.mubr.f32.vlgmr.msra.gmra.mxu1 %v6594_v0  ;;  %680 = vmatprep.subr.mxu1 %v4953_v23 }
  0x6c   :  { %681 = vmatpush1.msra.mxu1 %v4958_v25  ;;  %616 = vmatpush1.msra.mxu0 %v4930_v14 }
  0x6d   :  { %682 = vmatprep.subr.mxu1 %v4964_v27  ;;  %617 = vmatprep.subr.mxu0 %v4939_v17 }
  0x6e   :  { %683 = vmatpush1.msra.mxu1 %v4970_v29  ;;  %618 = vmatpush1.msra.mxu0 %v4942_v19 }
  0x6f   :  { %684 = vmatprep.subr.mxu1 %v4976_v31  ;;  %619 = vmatprep.subr.mxu0 %v4945_v21 }
  0x70   :  { %685 = vmatpush1.msra.mxu1 %v4982_v33  ;;  %620 = vmatpush1.msra.mxu0 %v4950_v22 }
  0x71   :  { %686 = vmatprep.subr.mxu1 %v4988_v35  ;;  %621 = vmatprep.subr.mxu0 %v4956_v24 }
  0x72   :  { %687 = vmatpush1.msra.mxu1 %v4994_v37  ;;  %622 = vmatpush1.msra.mxu0 %v4962_v26 }
  0x73   :  { %688 = vmatprep.subr.mxu1 %v5000_v39  ;;  %623 = vmatprep.subr.mxu0 %v4968_v28 }
  0x74   :  { %689 = vmatpush1.msra.mxu1 %v5006_v41  ;;  %624 = vmatpush1.msra.mxu0 %v4974_v30 }
  0x75   :  { %690 = vmatprep.subr.mxu1 %v5012_v43  ;;  %625 = vmatprep.subr.mxu0 %v4980_v32 }
  0x76   :  { %691 = vmatpush1.msra.mxu1 %v5018_v45  ;;  %626 = vmatpush1.msra.mxu0 %v4986_v34 }
  0x77   :  { %692 = vmatprep.subr.mxu1 %v5024_v47  ;;  %627 = vmatprep.subr.mxu0 %v4992_v36 }
  0x78   :  { %693 = vmatpush1.msra.mxu1 %v5030_v49  ;;  %628 = vmatpush1.msra.mxu0 %v4998_v38 }
  0x79   :  { %694 = vmatprep.subr.mxu1 %v5036_v51  ;;  %629 = vmatprep.subr.mxu0 %v5004_v40 }
  0x7a   :  { %695 = vmatpush1.msra.mxu1 %v5042_v53  ;;  %630 = vmatpush1.msra.mxu0 %v5010_v42 }
  0x7b   :  { %696 = vmatprep.subr.mxu1 %v5048_v55  ;;  %631 = vmatprep.subr.mxu0 %v5016_v44 }
  0x7c   :  { %697 = vmatpush1.msra.mxu1 %v5054_v57  ;;  %632 = vmatpush1.msra.mxu0 %v5022_v46 }
  0x7d   :  { %698 = vmatprep.subr.mxu1 %v5060_v59  ;;  %633 = vmatprep.subr.mxu0 %v5028_v48 }
  0x7e   :  { %699 = vmatpush1.msra.mxu1 %v5066_v61  ;;  %634 = vmatpush1.msra.mxu0 %v5034_v50 }
  0x7f   :  { %700 = vmatprep.subr.mxu1 %v5072_v63  ;;  %635 = vmatprep.subr.mxu0 %v5040_v52 }
  0x80   :  { %701 = vmatpush1.msra.mxu1 %v5076_v1  ;;  %636 = vmatpush1.msra.mxu0 %v5046_v54 }
  0x81   :  { %702 = vmatprep.subr.mxu1 %v5080_v3  ;;  %637 = vmatprep.subr.mxu0 %v5052_v56  ;;  %v6773_v56 = vld [vmem:[#allocation18_spill] sm:$0xff] }
  0x82   :  { %703 = vmatpush1.msra.mxu1 %v5084_v5  ;;  %638 = vmatpush1.msra.mxu0 %v5058_v58 }
  0x83   :  { %704 = vmatprep.subr.mxu1 %v5088_v7  ;;  %639 = vmatprep.subr.mxu0 %v5064_v60 }
  0x84   :  { %705 = vmatpush1.msra.mxu1 %v5091_v9  ;;  %640 = vmatpush1.msra.mxu0 %v5070_v62  ;;  %v113_v62 = vlaneseq }
  0x85   :  { %706 = vmatprep.subr.mxu1 %v5095_v13  ;;  %673 = vmatprep.mubr.f32.mxu0 %v6594_v0 }
  0x86   :  { %707 = vmatpush1.msra.mxu1 %v5099_v15  ;;  %744 = vmatprep.mubr.f32.mxu1 %v6594_v0  ;;  %v5187_v60 = vshrl.u32 %v113_v62, 7  ;;  %v111_v0 = vld [vmem:[%s6582_s3] sm:$0xf] }
  0x87   :  { %708 = vmatprep.subr.mxu1 %v5104_v18  ;;  %866 = vmatprep.subr.mxu0 %v6773_v56 }
  0x88   :  { %709 = vmatpush1.msra.mxu1 %v5108_v20  ;;  %6774 = vst [vmem:[#allocation18_spill] sm:$0xff] %v5187_v60  ;;  %v6606_v58 = vsub.s32 0, %v5187_v60  ;;  %v6607_v18 = vsub.s32 1, %v5187_v60  ;;  %v6614_v54 = vsub.s32 3, %v5187_v60 }
  0x89   :  { %710 = vmatprep.subr.mxu1 %v5112_v2 }
  0x8a   :  { %711 = vmatpush1.msra.mxu1 %v5116_v16  ;;  %v116_v56 = vrot.slane %v111_v0, %v6606_v58  ;;  %v120_v2 = vrot.slane %v111_v0, %v6607_v18  ;;  %v128_v18 = vrot.slane %v111_v0, %v6614_v54 }
  0x8b   :  { %937 = vmatprep.subr.mxu1 %v4953_v23  ;;  %v6612_v23 = vsub.s32 2, %v5187_v60 }
  0x8d   :  { %v124_v9 = vrot.slane %v111_v0, %v6612_v23 }
 0x103   :  { %v206_v16 = vpop.f32.mrf.mxu1 }
 0x104   :  { %v207_v20 = vadd.f32 %v206_v16, %v116_v56 }
 0x105   :  { %v208_v62 = vpop.f32.mrf.mxu1 }
 0x106   :  { %294 = vst [vmem:[#allocation2 + $0x30] sm:$0xff] %v207_v20  ;;  %v209_v15 = vadd.f32 %v208_v62, %v120_v2 }
 0x107   :  { %v212_v13 = vpop.f32.mrf.mxu1 }
 0x108   :  { %295 = vst [vmem:[#allocation2] sm:$0xff] %v209_v15  ;;  %v213_v52 = vadd.f32 %v212_v13, %v116_v56 }
 0x109   :  { %v214_v50 = vpop.f32.mrf.mxu1 }
 0x10a   :  { %298 = vst [vmem:[#allocation2 + $0x8] sm:$0xff] %v213_v52  ;;  %v215_v58 = vadd.f32 %v214_v50, %v120_v2 }
 0x10b   :  { %v283_v16 = vpop.f32.mrf.mxu1 }
 0x10c   :  { %299 = vst [vmem:[#allocation2 + $0x20] sm:$0xff] %v215_v58  ;;  %v284_v7 = vadd.f32 %v283_v16, %v124_v9 }
 0x10d   :  { %v285_v48 = vpop.f32.mrf.mxu1  ;;  %v302_v62 = vld [vmem:[#allocation2 + $0x30] sm:$0x3] }
 0x10e   :  { %296 = vst [vmem:[#allocation2 + $0x18] sm:$0xff] %v284_v7  ;;  %v286_v20 = vadd.f32 %v285_v48, %v128_v18 }
 0x10f   :  { %v303_v13 = vld [vmem:[#allocation2] sm:$0x3] }
 0x110   :  { %297 = vst [vmem:[#allocation2 + $0x10] sm:$0xff] %v286_v20 }
 0x115   :  { %v304_v54 = vld [vmem:[#allocation2 + $0x18] sm:$0x3] }
 0x117   :  { %v305_v7 = vld [vmem:[#allocation2 + $0x10] sm:$0x3] }
 0x120   :  { %v436_v5 = vpop.f32.mrf.mxu0 }
 0x121   :  { %v512_v15 = vadd.f32 %v436_v5, %v302_v62 }
 0x122   :  { %v438_v56 = vpop.f32.mrf.mxu0 }
 0x123   :  { %v4255_v46 = vmul.f32 -1.442695, %v512_v15  ;;  %v513_v23 = vadd.f32 %v438_v56, %v303_v13  ;;  %v289_v3 = vpop.f32.mrf.mxu1 }
 0x124   :  { %v290_v52 = vadd.f32 %v289_v3, %v124_v9 }
 0x125   :  { %4368 = vpow2.f32 %v4255_v46  ;;  %v4256_v2 = vmul.f32 -1.442695, %v513_v23  ;;  %v291_v50 = vpop.f32.mrf.mxu1 }
 0x126   :  { %300 = vst [vmem:[#allocation2 + $0x28] sm:$0xff] %v290_v52  ;;  %v292_v0 = vadd.f32 %v291_v50, %v128_v18 }
 0x127   :  { %4370 = vpow2.f32 %v4256_v2 }
 0x128   :  { %301 = vst [vmem:[#allocation2 + $0x38] sm:$0xff] %v292_v0 }
 0x12b   :  { %v507_v58 = vpop.f32.mrf.mxu1 }
 0x12c   :  { %v514_v62 = vadd.f32 %v507_v58, %v304_v54 }
 0x12d   :  { %v509_v48 = vpop.f32.mrf.mxu1 }
 0x12e   :  { %v515_v16 = vadd.f32 %v509_v48, %v305_v7 }
 0x130   :  { %v4257_v20 = vmul.f32 -1.442695, %v515_v16 }
 0x132   :  { %v4369_v5 = vpop.eup %4368  ;;  %4372 = vpow2.f32 %v4257_v20  ;;  %v542_v20 = vld [vmem:[#allocation2] sm:$0xc] }
 0x133   :  { %v519_v60 = vadd.f32 1.0, %v4369_v5 }
 0x134   :  { %v4371_v15 = vpop.eup %4370 }
 0x135   :  { %4374 = vrcp.f32 %v519_v60  ;;  %v525_v3 = vadd.f32 1.0, %v4371_v15  ;;  %v541_v60 = vld [vmem:[#allocation2 + $0x30] sm:$0xc] }
 0x136   :  { %4376 = vtanh.f32 %v514_v62 }
 0x137   :  { %4378 = vrcp.f32 %v525_v3 }
 0x13f   :  { %v4373_v46 = vpop.eup %4372 }
 0x140   :  { %v532_v13 = vadd.f32 1.0, %v4373_v46 }
 0x142   :  { %v4375_v9 = vpop.eup %4374  ;;  %4380 = vrcp.f32 %v532_v13 }
 0x143   :  { %v4377_v18 = vpop.eup %4376 }
 0x144   :  { %v4379_v23 = vpop.eup %4378  ;;  %v536_v52 = vmul.f32 %v4377_v18, %v4375_v9  ;;  %v544_v9 = vld [vmem:[#allocation2 + $0x10] sm:$0xc] }
 0x145   :  { %v535_v56 = vmul.f32 0.0, %v4379_v23 }
 0x147   :  { %v5204_v2 = vadd.f32 %v536_v52, %v535_v56  ;;  %v543_v56 = vld [vmem:[#allocation2 + $0x18] sm:$0xc] }
 0x149   :  { %4382 = vtanh.f32 %v5204_v2 }
 0x14f   :  { %v4381_v54 = vpop.eup %4380 }
 0x156   :  { %v4383_v50 = vpop.eup %4382 }
 0x157   :  { %v539_v0 = vmul.f32 %v4383_v50, %v4381_v54 }
 0x159   :  { %540 = vst [vmem:[#allocation3] sm:$0x3] %v539_v0  ;;  %674 = vmatmul.mubr.f32.vlgmr.msra.gmra.mxu0 %v539_v0  ;;  %745 = vmatmul.mubr.f32.vlgmr.msra.gmra.mxu1 %v539_v0 }
 0x15a   :  { %867 = vmatpush1.msra.mxu0 %v4910_v4  ;;  %938 = vmatpush1.msra.mxu1 %v4958_v25  ;;  %v6775_v4 = vld [vmem:[#allocation28_spill] sm:$0xff] }
 0x15b   :  { %868 = vmatprep.subr.mxu0 %v4912_v6  ;;  %939 = vmatprep.subr.mxu1 %v4964_v27  ;;  %v6776_v6 = vld [vmem:[#allocation19_spill] sm:$0xff] }
 0x15c   :  { %869 = vmatpush1.msra.mxu0 %v4915_v8  ;;  %940 = vmatpush1.msra.mxu1 %v4970_v29  ;;  %v6777_v8 = vld [vmem:[#allocation29_spill] sm:$0xff] }
 0x15d   :  { %870 = vmatprep.subr.mxu0 %v4921_v10  ;;  %941 = vmatprep.subr.mxu1 %v4976_v31  ;;  %v6778_v10 = vld [vmem:[#allocation20_spill] sm:$0xff] }
 0x15e   :  { %871 = vmatpush1.msra.mxu0 %v4923_v11  ;;  %942 = vmatpush1.msra.mxu1 %v4982_v33  ;;  %v6779_v11 = vld [vmem:[#allocation30_spill] sm:$0xff] }
 0x15f   :  { %872 = vmatprep.subr.mxu0 %v4926_v12  ;;  %943 = vmatprep.subr.mxu1 %v4988_v35  ;;  %v6780_v12 = vld [vmem:[#allocation21_spill] sm:$0xff] }
 0x160   :  { %873 = vmatpush1.msra.mxu0 %v4930_v14  ;;  %944 = vmatpush1.msra.mxu1 %v4994_v37  ;;  %v6781_v14 = vld [vmem:[#allocation31_spill] sm:$0xff] }
 0x161   :  { %874 = vmatprep.subr.mxu0 %v4939_v17  ;;  %945 = vmatprep.subr.mxu1 %v5000_v39  ;;  %v6782_v17 = vld [vmem:[#allocation22_spill] sm:$0xff] }
 0x162   :  { %875 = vmatpush1.msra.mxu0 %v4942_v19  ;;  %946 = vmatpush1.msra.mxu1 %v5006_v41  ;;  %v6783_v19 = vld [vmem:[#allocation32_spill] sm:$0xff] }
 0x163   :  { %876 = vmatprep.subr.mxu0 %v4945_v21  ;;  %947 = vmatprep.subr.mxu1 %v5012_v43  ;;  %v6784_v21 = vld [vmem:[#allocation23_spill] sm:$0xff] }
 0x164   :  { %877 = vmatpush1.msra.mxu0 %v4950_v22  ;;  %948 = vmatpush1.msra.mxu1 %v5018_v45  ;;  %v6785_v22 = vld [vmem:[#allocation33_spill] sm:$0xff] }
 0x165   :  { %878 = vmatprep.subr.mxu0 %v4956_v24  ;;  %949 = vmatprep.subr.mxu1 %v5024_v47  ;;  %v6786_v24 = vld [vmem:[#allocation24_spill] sm:$0xff] }
 0x166   :  { %879 = vmatpush1.msra.mxu0 %v4962_v26  ;;  %950 = vmatpush1.msra.mxu1 %v5030_v49  ;;  %v6787_v26 = vld [vmem:[#allocation34_spill] sm:$0xff] }
 0x167   :  { %880 = vmatprep.subr.mxu0 %v4968_v28  ;;  %951 = vmatprep.subr.mxu1 %v5036_v51  ;;  %v6788_v28 = vld [vmem:[#allocation25_spill] sm:$0xff] }
 0x168   :  { %881 = vmatpush1.msra.mxu0 %v4974_v30  ;;  %952 = vmatpush1.msra.mxu1 %v5042_v53  ;;  %v6789_v30 = vld [vmem:[#allocation35_spill] sm:$0xff] }
 0x169   :  { %882 = vmatprep.subr.mxu0 %v4980_v32  ;;  %953 = vmatprep.subr.mxu1 %v5048_v55  ;;  %v6790_v32 = vld [vmem:[#allocation26_spill] sm:$0xff] }
 0x16a   :  { %883 = vmatpush1.msra.mxu0 %v4986_v34  ;;  %954 = vmatpush1.msra.mxu1 %v5054_v57  ;;  %v6791_v34 = vld [vmem:[#allocation36_spill] sm:$0xff] }
 0x16b   :  { %884 = vmatprep.subr.mxu0 %v4992_v36  ;;  %955 = vmatprep.subr.mxu1 %v5060_v59  ;;  %v6792_v36 = vld [vmem:[#allocation27_spill] sm:$0xff] }
 0x16c   :  { %885 = vmatpush1.msra.mxu0 %v4998_v38  ;;  %956 = vmatpush1.msra.mxu1 %v5066_v61  ;;  %v6793_v38 = vmov 0.0  }
 0x16d   :  { %886 = vmatprep.subr.mxu0 %v5004_v40  ;;  %957 = vmatprep.subr.mxu1 %v5072_v63  ;;  %v6794_v40 = vld [vmem:[#allocation37_spill] sm:$0xff] }
 0x16e   :  { %887 = vmatpush1.msra.mxu0 %v5010_v42  ;;  %958 = vmatpush1.msra.mxu1 %v5076_v1 }
 0x16f   :  { %888 = vmatprep.subr.mxu0 %v5016_v44  ;;  %959 = vmatprep.subr.mxu1 %v6775_v4 }
 0x170   :  { %889 = vmatpush1.msra.mxu0 %v6776_v6  ;;  %960 = vmatpush1.msra.mxu1 %v6777_v8 }
 0x171   :  { %890 = vmatprep.subr.mxu0 %v6778_v10  ;;  %961 = vmatprep.subr.mxu1 %v6779_v11  ;;  %v787_v11 = vrot.slane %v5204_v2, 6  ;;  %v5277_v2 = vld [vmem:[#allocation7 + $0x1e8] sm:$0xff] }
 0x172   :  { %891 = vmatpush1.msra.mxu0 %v6780_v12  ;;  %962 = vmatpush1.msra.mxu1 %v6781_v14  ;;  %6795 = vst [vmem:[#allocation28_spill] sm:$0xff] %v5277_v2 }
 0x173   :  { %892 = vmatprep.subr.mxu0 %v6782_v17  ;;  %963 = vmatprep.subr.mxu1 %v6783_v19 }
 0x174   :  { %893 = vmatpush1.msra.mxu0 %v6784_v21  ;;  %964 = vmatpush1.msra.mxu1 %v6785_v22 }
 0x175   :  { %894 = vmatprep.subr.mxu0 %v6786_v24  ;;  %965 = vmatprep.subr.mxu1 %v6787_v26 }
 0x176   :  { %895 = vmatpush1.msra.mxu0 %v6788_v28  ;;  %966 = vmatpush1.msra.mxu1 %v6789_v30  ;;  %v5279_v30 = vld [vmem:[#allocation7 + $0x1f8] sm:$0xff] }
 0x177   :  { %896 = vmatprep.subr.mxu0 %v6790_v32  ;;  %967 = vmatprep.subr.mxu1 %v6791_v34  ;;  %6796 = vst [vmem:[#allocation19_spill] sm:$0xff] %v5279_v30  ;;  %v5283_v32 = vld [vmem:[#allocation7 + $0x1e0] sm:$0xff]  ;;  %v5287_v34 = vld [vmem:[#allocation7 + $0x1c8] sm:$0xff] }
 0x178   :  { %897 = vmatpush1.msra.mxu0 %v6792_v36  ;;  %930 = vmatprep.mubr.f32.mxu0 %v6793_v38  ;;  %v5291_v36 = vld [vmem:[#allocation7 + $0x1c0] sm:$0xff] }
 0x179   :  { %968 = vmatpush1.msra.mxu1 %v6794_v40  ;;  %1001 = vmatprep.mubr.f32.mxu1 %v6793_v38  ;;  %v5295_v40 = vld [vmem:[#allocation7 + $0x1a8] sm:$0xff] }
 0x17a   :  { %1123 = vmatprep.subr.mxu0 %v5277_v2  ;;  %1194 = vmatprep.subr.mxu1 %v5279_v30 }
 0x219   :  { %v675_v42 = vpop.f32.mrf.mxu0  ;;  %v746_v48 = vpop.f32.mrf.mxu1 }
 0x21a   :  { %v755_v44 = vrot.slane %v675_v42, 6  ;;  %v757_v23 = vrot.slane %v746_v48, 6  ;;  %v5299_v42 = vld [vmem:[#allocation7 + $0x1a0] sm:$0xff]  ;;  %v5383_v48 = vld [vmem:[#allocation7 + $0x70] sm:$0xff] }
 0x21b   :  { %v677_v58 = vpop.f32.mrf.mxu0  ;;  %v748_v3 = vpop.f32.mrf.mxu1  ;;  %6804 = vst [vmem:[#allocation23_spill] sm:$0xff] %v5383_v48 }
 0x21c   :  { %v763_v7 = vadd.f32 %v755_v44, %v541_v60  ;;  %v756_v16 = vrot.slane %v677_v58, 6  ;;  %v758_v46 = vrot.slane %v748_v3, 6  ;;  %v765_v54 = vadd.f32 %v757_v23, %v543_v56  ;;  %v5331_v44 = vld [vmem:[#allocation7 + $0x108] sm:$0xff]  ;;  %v5371_v58 = vld [vmem:[#allocation7 + $0x90] sm:$0xff] }
 0x21d   :  { %v5347_v60 = vld [vmem:[#allocation7 + $0xc8] sm:$0xff]  ;;  %6800 = vst [vmem:[#allocation21_spill] sm:$0xff] %v5371_v58  ;;  %v5407_v3 = vld [vmem:[#allocation7 + $0x30] sm:$0xff] }
 0x21e   :  { %v4258_v5 = vmul.f32 -1.442695, %v763_v7  ;;  %v764_v62 = vadd.f32 %v756_v16, %v542_v20  ;;  %v766_v18 = vadd.f32 %v758_v46, %v544_v9  ;;  %v5377_v7 = vld [vmem:[#allocation7 + $0x78] sm:$0xff]  ;;  %v5395_v20 = vld [vmem:[#allocation7 + $0x50] sm:$0xff]  ;;  %6812 = vst [vmem:[#allocation27_spill] sm:$0xff] %v5407_v3  ;;  %v5411_v46 = vld [vmem:[#allocation7 + $0x8] sm:$0xff] }
 0x21f   :  { %6802 = vst [vmem:[#allocation22_spill] sm:$0xff] %v5377_v7  ;;  %v5389_v16 = vld [vmem:[#allocation7 + $0x58] sm:$0xff]  ;;  %6808 = vst [vmem:[#allocation25_spill] sm:$0xff] %v5395_v20  ;;  %v5419_v23 = vld [vmem:[#allocation7 + $0x10] sm:$0xff] }
 0x220   :  { %4384 = vpow2.f32 %v4258_v5  ;;  %v4259_v15 = vmul.f32 -1.442695, %v764_v62  ;;  %v4260_v13 = vmul.f32 -1.442695, %v766_v18  ;;  %6806 = vst [vmem:[#allocation24_spill] sm:$0xff] %v5389_v16  ;;  %v5399_v5 = vld [vmem:[#allocation7 + $0x28] sm:$0xff] }
 0x221   :  { %6809 = vst [vmem:[#allocation35_spill] sm:$0xff] %v5399_v5  ;;  %v5401_v62 = vld [vmem:[#allocation7 + $0x38] sm:$0xff]  ;;  %6813 = vst [vmem:[#allocation37_spill] sm:$0xff] %v5411_v46  ;;  %v5417_v18 = vld [vmem:[#allocation7] sm:$0xff] }
 0x222   :  { %4386 = vpow2.f32 %v4259_v15  ;;  %6810 = vst [vmem:[#allocation26_spill] sm:$0xff] %v5401_v62  ;;  %v5405_v15 = vld [vmem:[#allocation7 + $0x20] sm:$0xff]  ;;  %v5413_v9 = vld [vmem:[#allocation7 + $0x18] sm:$0xff]  ;;  %6815 = vst [vmem:[#allocation39_spill] sm:$0xff] %v5417_v18 }
 0x223   :  { %4388 = vpow2.f32 %v4260_v13  ;;  %6811 = vst [vmem:[#allocation36_spill] sm:$0xff] %v5405_v15  ;;  %6814 = vst [vmem:[#allocation38_spill] sm:$0xff] %v5413_v9 }
 0x224   :  { %6816 = vst [vmem:[#allocation40_spill] sm:$0xff] %v5419_v23 }
 0x22d   :  { %v4385_v52 = vpop.eup %4384 }
 0x22e   :  { %v770_v50 = vadd.f32 1.0, %v4385_v52  ;;  %v795_v52 = vld [vmem:[#allocation2 + $0x30] sm:$0x30] }
 0x22f   :  { %v4387_v0 = vpop.eup %4386 }
 0x230   :  { %4390 = vrcp.f32 %v770_v50  ;;  %v776_v4 = vadd.f32 1.0, %v4387_v0  ;;  %v4389_v6 = vpop.eup %4388 }
 0x231   :  { %4392 = vtanh.f32 %v765_v54  ;;  %v783_v14 = vadd.f32 1.0, %v4389_v6  ;;  %v796_v6 = vld [vmem:[#allocation2] sm:$0x30] }
 0x232   :  { %4394 = vrcp.f32 %v776_v4 }
 0x233   :  { %4396 = vrcp.f32 %v783_v14 }
 0x23d   :  { %v4391_v8 = vpop.eup %4390 }
 0x23e   :  { %v4393_v10 = vpop.eup %4392 }
 0x23f   :  { %v4395_v12 = vpop.eup %4394  ;;  %v790_v17 = vmul.f32 %v4393_v10, %v4391_v8 }
 0x240   :  { %v789_v19 = vmul.f32 %v4395_v12, %v787_v11  ;;  %v4397_v22 = vpop.eup %4396 }
 0x242   :  { %v5272_v21 = vadd.f32 %v790_v17, %v789_v19  ;;  %v798_v17 = vld [vmem:[#allocation2 + $0x10] sm:$0x30] }
 0x244   :  { %4398 = vtanh.f32 %v5272_v21 }
 0x251   :  { %v4399_v24 = vpop.eup %4398 }
 0x252   :  { %v793_v26 = vmul.f32 %v4399_v24, %v4397_v22 }
 0x254   :  { %794 = vst [vmem:[#allocation3] sm:$0xc] %v793_v26  ;;  %v864_v28 = vrot.slane %v793_v26, 2  ;;  %v797_v26 = vld [vmem:[#allocation2 + $0x18] sm:$0x30] }
 0x256   :  { %931 = vmatmul.mubr.f32.vlgmr.msra.gmra.mxu0 %v864_v28  ;;  %1002 = vmatmul.mubr.f32.vlgmr.msra.gmra.mxu1 %v864_v28 }
 0x257   :  { %1187 = vmatprep.mubr.f32.mxu0 %v6793_v38  ;;  %1258 = vmatprep.mubr.f32.mxu1 %v6793_v38 }
 0x258   :  { %1124 = vmatpush1.msra.mxu0 %v5283_v32  ;;  %1195 = vmatpush1.msra.mxu1 %v4958_v25  ;;  %v5303_v25 = vld [vmem:[#allocation7 + $0x188] sm:$0xff] }
 0x259   :  { %1125 = vmatprep.subr.mxu0 %v5287_v34  ;;  %1196 = vmatprep.subr.mxu1 %v4964_v27  ;;  %v5307_v27 = vld [vmem:[#allocation7 + $0x180] sm:$0xff] }
 0x25a   :  { %1126 = vmatpush1.msra.mxu0 %v5291_v36  ;;  %1197 = vmatpush1.msra.mxu1 %v4970_v29  ;;  %v5311_v29 = vld [vmem:[#allocation7 + $0x168] sm:$0xff] }
 0x25b   :  { %1127 = vmatprep.subr.mxu0 %v5295_v40  ;;  %1198 = vmatprep.subr.mxu1 %v4976_v31  ;;  %v5315_v31 = vld [vmem:[#allocation7 + $0x160] sm:$0xff] }
 0x25c   :  { %1128 = vmatpush1.msra.mxu0 %v5299_v42  ;;  %1199 = vmatpush1.msra.mxu1 %v4982_v33  ;;  %v5319_v33 = vld [vmem:[#allocation7 + $0x148] sm:$0xff] }
 0x25d   :  { %1129 = vmatprep.subr.mxu0 %v5303_v25  ;;  %1200 = vmatprep.subr.mxu1 %v4988_v35  ;;  %v5323_v35 = vld [vmem:[#allocation7 + $0x140] sm:$0xff] }
 0x25e   :  { %1130 = vmatpush1.msra.mxu0 %v5307_v27  ;;  %1201 = vmatpush1.msra.mxu1 %v4994_v37  ;;  %v5327_v37 = vld [vmem:[#allocation7 + $0x128] sm:$0xff] }
 0x25f   :  { %1131 = vmatprep.subr.mxu0 %v5311_v29  ;;  %1202 = vmatprep.subr.mxu1 %v5000_v39  ;;  %v5329_v39 = vld [vmem:[#allocation7 + $0x120] sm:$0xff] }
 0x260   :  { %1132 = vmatpush1.msra.mxu0 %v5315_v31  ;;  %1203 = vmatpush1.msra.mxu1 %v5006_v41  ;;  %v5335_v41 = vld [vmem:[#allocation7 + $0x100] sm:$0xff] }
 0x261   :  { %1133 = vmatprep.subr.mxu0 %v5319_v33  ;;  %1204 = vmatprep.subr.mxu1 %v5012_v43  ;;  %v5339_v43 = vld [vmem:[#allocation7 + $0xe8] sm:$0xff] }
 0x262   :  { %1134 = vmatpush1.msra.mxu0 %v5323_v35  ;;  %1205 = vmatpush1.msra.mxu1 %v5018_v45  ;;  %v5343_v45 = vld [vmem:[#allocation7 + $0xe0] sm:$0xff] }
 0x263   :  { %1135 = vmatprep.subr.mxu0 %v5327_v37  ;;  %1206 = vmatprep.subr.mxu1 %v5024_v47  ;;  %v5351_v47 = vld [vmem:[#allocation7 + $0xc0] sm:$0xff] }
 0x264   :  { %1136 = vmatpush1.msra.mxu0 %v5329_v39  ;;  %1207 = vmatpush1.msra.mxu1 %v5030_v49  ;;  %v5355_v49 = vld [vmem:[#allocation7 + $0xa8] sm:$0xff] }
 0x265   :  { %1137 = vmatprep.subr.mxu0 %v5331_v44  ;;  %1208 = vmatprep.subr.mxu1 %v5036_v51  ;;  %v5359_v51 = vld [vmem:[#allocation7 + $0xa0] sm:$0xff] }
 0x266   :  { %1138 = vmatpush1.msra.mxu0 %v5335_v41  ;;  %1209 = vmatpush1.msra.mxu1 %v5042_v53  ;;  %v5363_v53 = vld [vmem:[#allocation7 + $0x88] sm:$0xff] }
 0x267   :  { %1139 = vmatprep.subr.mxu0 %v5339_v43  ;;  %1210 = vmatprep.subr.mxu1 %v5048_v55  ;;  %6797 = vst [vmem:[#allocation29_spill] sm:$0xff] %v5363_v53  ;;  %v5365_v55 = vld [vmem:[#allocation7 + $0x98] sm:$0xff] }
 0x268   :  { %1140 = vmatpush1.msra.mxu0 %v5343_v45  ;;  %1211 = vmatpush1.msra.mxu1 %v5054_v57  ;;  %6798 = vst [vmem:[#allocation20_spill] sm:$0xff] %v5365_v55  ;;  %v5369_v57 = vld [vmem:[#allocation7 + $0x80] sm:$0xff] }
 0x269   :  { %1141 = vmatprep.subr.mxu0 %v5347_v60  ;;  %1212 = vmatprep.subr.mxu1 %v5060_v59  ;;  %6799 = vst [vmem:[#allocation30_spill] sm:$0xff] %v5369_v57  ;;  %v5375_v59 = vld [vmem:[#allocation7 + $0x68] sm:$0xff] }
 0x26a   :  { %1142 = vmatpush1.msra.mxu0 %v5351_v47  ;;  %1213 = vmatpush1.msra.mxu1 %v5066_v61  ;;  %6801 = vst [vmem:[#allocation31_spill] sm:$0xff] %v5375_v59  ;;  %v5381_v61 = vld [vmem:[#allocation7 + $0x60] sm:$0xff] }
 0x26b   :  { %1143 = vmatprep.subr.mxu0 %v5355_v49  ;;  %1214 = vmatprep.subr.mxu1 %v5072_v63  ;;  %6803 = vst [vmem:[#allocation32_spill] sm:$0xff] %v5381_v61  ;;  %v5387_v63 = vld [vmem:[#allocation7 + $0x48] sm:$0xff] }
 0x26c   :  { %1144 = vmatpush1.msra.mxu0 %v5359_v51  ;;  %1215 = vmatpush1.msra.mxu1 %v5076_v1  ;;  %6805 = vst [vmem:[#allocation33_spill] sm:$0xff] %v5387_v63  ;;  %v5393_v1 = vld [vmem:[#allocation7 + $0x40] sm:$0xff] }
 0x26d   :  { %1145 = vmatprep.subr.mxu0 %v5363_v53  ;;  %1216 = vmatprep.subr.mxu1 %v5365_v55  ;;  %6807 = vst [vmem:[#allocation34_spill] sm:$0xff] %v5393_v1 }
 0x26e   :  { %1146 = vmatpush1.msra.mxu0 %v5369_v57  ;;  %1217 = vmatpush1.msra.mxu1 %v5371_v58 }
 0x26f   :  { %1147 = vmatprep.subr.mxu0 %v5375_v59  ;;  %1218 = vmatprep.subr.mxu1 %v5377_v7 }
 0x270   :  { %1148 = vmatpush1.msra.mxu0 %v5381_v61  ;;  %1219 = vmatpush1.msra.mxu1 %v5383_v48 }
 0x271   :  { %1149 = vmatprep.subr.mxu0 %v5387_v63  ;;  %1220 = vmatprep.subr.mxu1 %v5389_v16 }
 0x272   :  { %1150 = vmatpush1.msra.mxu0 %v5393_v1  ;;  %1221 = vmatpush1.msra.mxu1 %v5395_v20 }
 0x273   :  { %1151 = vmatprep.subr.mxu0 %v5399_v5  ;;  %1222 = vmatprep.subr.mxu1 %v5401_v62 }
 0x274   :  { %1152 = vmatpush1.msra.mxu0 %v5405_v15  ;;  %1223 = vmatpush1.msra.mxu1 %v5407_v3 }
 0x275   :  { %1153 = vmatprep.subr.mxu0 %v5411_v46  ;;  %1224 = vmatprep.subr.mxu1 %v5413_v9 }
 0x276   :  { %1154 = vmatpush1.msra.mxu0 %v5417_v18  ;;  %1225 = vmatpush1.msra.mxu1 %v5419_v23 }
 0x277   :  { %1380 = vmatprep.subr.mxu0 %v5277_v2  ;;  %1451 = vmatprep.subr.mxu1 %v5279_v30 }
 0x316   :  { %v932_v13 = vpop.f32.mrf.mxu0  ;;  %v1003_v0 = vpop.f32.mrf.mxu1 }
 0x317   :  { %v1012_v56 = vrot.slane %v932_v13, 4  ;;  %v1014_v22 = vrot.slane %v1003_v0, 4 }
 0x318   :  { %v934_v54 = vpop.f32.mrf.mxu0  ;;  %v1005_v12 = vpop.f32.mrf.mxu1 }
 0x319   :  { %v1020_v50 = vadd.f32 %v1012_v56, %v795_v52  ;;  %v1013_v4 = vrot.slane %v934_v54, 4  ;;  %v1015_v14 = vrot.slane %v1005_v12, 4  ;;  %v1022_v13 = vadd.f32 %v1014_v22, %v797_v26  ;;  %v5476_v22 = vld [vmem:[#allocation7 + $0x1b8] sm:$0xff] }
 0x31a   :  { %v5482_v26 = vld [vmem:[#allocation7 + $0x198] sm:$0xff] }
 0x31b   :  { %v4261_v8 = vmul.f32 -1.442695, %v1020_v50  ;;  %v1021_v10 = vadd.f32 %v1013_v4, %v796_v6  ;;  %v1023_v19 = vadd.f32 %v1015_v14, %v798_v17  ;;  %v1044_v4 = vrot.slane %v5272_v21, 6  ;;  %v5467_v21 = vld [vmem:[#allocation7 + $0x1f0] sm:$0xff]  ;;  %v5470_v17 = vld [vmem:[#allocation7 + $0x1d8] sm:$0xff] }
 0x31d   :  { %4400 = vpow2.f32 %v4261_v8  ;;  %v4262_v11 = vmul.f32 -1.442695, %v1021_v10  ;;  %v4263_v24 = vmul.f32 -1.442695, %v1023_v19  ;;  %v5473_v19 = vld [vmem:[#allocation7 + $0x1d0] sm:$0xff] }
 0x31f   :  { %4402 = vpow2.f32 %v4262_v11 }
 0x320   :  { %4404 = vpow2.f32 %v4263_v24  ;;  %v5479_v24 = vld [vmem:[#allocation7 + $0x1b0] sm:$0xff] }
 0x32a   :  { %v4401_v28 = vpop.eup %4400 }
 0x32b   :  { %v1027_v30 = vadd.f32 1.0, %v4401_v28  ;;  %v5485_v28 = vld [vmem:[#allocation7 + $0x190] sm:$0xff] }
 0x32c   :  { %v4403_v23 = vpop.eup %4402 }
 0x32d   :  { %4406 = vrcp.f32 %v1027_v30  ;;  %v1033_v56 = vadd.f32 1.0, %v4403_v23  ;;  %v4405_v52 = vpop.eup %4404 }
 0x32e   :  { %4408 = vtanh.f32 %v1022_v13  ;;  %v1040_v8 = vadd.f32 1.0, %v4405_v52  ;;  %v5488_v13 = vld [vmem:[#allocation7 + $0x178] sm:$0xff] }
 0x32f   :  { %4410 = vrcp.f32 %v1033_v56  ;;  %v5491_v56 = vld [vmem:[#allocation7 + $0x170] sm:$0xff]  ;;  %v5494_v52 = vld [vmem:[#allocation7 + $0x158] sm:$0xff] }
 0x330   :  { %4412 = vrcp.f32 %v1040_v8  ;;  %v5507_v8 = vld [vmem:[#allocation7 + $0x110] sm:$0xff] }
 0x33a   :  { %v4407_v54 = vpop.eup %4406 }
 0x33b   :  { %v4409_v50 = vpop.eup %4408 }
 0x33c   :  { %v4411_v6 = vpop.eup %4410  ;;  %v1047_v10 = vmul.f32 %v4409_v50, %v4407_v54  ;;  %v5497_v54 = vld [vmem:[#allocation7 + $0x150] sm:$0xff]  ;;  %v5500_v50 = vld [vmem:[#allocation7 + $0x138] sm:$0xff] }
 0x33d   :  { %v1046_v0 = vmul.f32 %v4411_v6, %v1044_v4  ;;  %v4413_v12 = vpop.eup %4412  ;;  %v5502_v4 = vld [vmem:[#allocation7 + $0x130] sm:$0xff]  ;;  %v5504_v6 = vld [vmem:[#allocation7 + $0x118] sm:$0xff] }
 0x33f   :  { %v5430_v11 = vadd.f32 %v1047_v10, %v1046_v0  ;;  %v5510_v10 = vld [vmem:[#allocation7 + $0xf8] sm:$0xff]  ;;  %v5513_v0 = vld [vmem:[#allocation7 + $0xf0] sm:$0xff] }
 0x341   :  { %4414 = vtanh.f32 %v5430_v11 }
 0x34e   :  { %v4415_v14 = vpop.eup %4414 }
 0x34f   :  { %v1050_v30 = vmul.f32 %v4415_v14, %v4413_v12  ;;  %v5516_v12 = vld [vmem:[#allocation7 + $0xd8] sm:$0xff]  ;;  %v5519_v14 = vld [vmem:[#allocation7 + $0xd0] sm:$0xff] }
 0x351   :  { %1051 = vst [vmem:[#allocation3] sm:$0x30] %v1050_v30  ;;  %v1121_v23 = vrot.slane %v1050_v30, 4  ;;  %v5522_v30 = vld [vmem:[#allocation7 + $0xb8] sm:$0xff] }
 0x353   :  { %1188 = vmatmul.mubr.f32.vlgmr.msra.gmra.mxu0 %v1121_v23  ;;  %1259 = vmatmul.mubr.f32.vlgmr.msra.gmra.mxu1 %v1121_v23  ;;  %v5525_v23 = vld [vmem:[#allocation7 + $0xb0] sm:$0xff] }
 0x354   :  { %1381 = vmatpush1.msra.mxu0 %v5283_v32  ;;  %1444 = vmatprep.mubr.f32.mxu0 %v6793_v38 }
 0x355   :  { %1382 = vmatprep.subr.mxu0 %v5287_v34  ;;  %1515 = vmatprep.mubr.f32.mxu1 %v6793_v38  ;;  %v6818_v38 = vld [vmem:[#allocation19_spill] sm:$0xff] }
 0x356   :  { %1383 = vmatpush1.msra.mxu0 %v5291_v36  ;;  %1452 = vmatpush1.msra.mxu1 %v5467_v21 }
 0x357   :  { %1384 = vmatprep.subr.mxu0 %v5295_v40  ;;  %1453 = vmatprep.subr.mxu1 %v5470_v17 }
 0x358   :  { %1385 = vmatpush1.msra.mxu0 %v5299_v42  ;;  %1454 = vmatpush1.msra.mxu1 %v5473_v19 }
 0x359   :  { %1386 = vmatprep.subr.mxu0 %v5303_v25  ;;  %1455 = vmatprep.subr.mxu1 %v5476_v22 }
 0x35a   :  { %1387 = vmatpush1.msra.mxu0 %v5307_v27  ;;  %1456 = vmatpush1.msra.mxu1 %v5479_v24 }
 0x35b   :  { %1388 = vmatprep.subr.mxu0 %v5311_v29  ;;  %1457 = vmatprep.subr.mxu1 %v5482_v26 }
 0x35c   :  { %1389 = vmatpush1.msra.mxu0 %v5315_v31  ;;  %1458 = vmatpush1.msra.mxu1 %v5485_v28 }
 0x35d   :  { %1390 = vmatprep.subr.mxu0 %v5319_v33  ;;  %1459 = vmatprep.subr.mxu1 %v5488_v13 }
 0x35e   :  { %1391 = vmatpush1.msra.mxu0 %v5323_v35  ;;  %1460 = vmatpush1.msra.mxu1 %v5491_v56 }
 0x35f   :  { %1392 = vmatprep.subr.mxu0 %v5327_v37  ;;  %1461 = vmatprep.subr.mxu1 %v5494_v52 }
 0x360   :  { %1393 = vmatpush1.msra.mxu0 %v5329_v39  ;;  %1462 = vmatpush1.msra.mxu1 %v5497_v54 }
 0x361   :  { %1394 = vmatprep.subr.mxu0 %v5331_v44  ;;  %1463 = vmatprep.subr.mxu1 %v5500_v50 }
 0x362   :  { %1395 = vmatpush1.msra.mxu0 %v5335_v41  ;;  %1464 = vmatpush1.msra.mxu1 %v5502_v4 }
 0x363   :  { %1396 = vmatprep.subr.mxu0 %v5339_v43  ;;  %1465 = vmatprep.subr.mxu1 %v5504_v6 }
 0x364   :  { %1397 = vmatpush1.msra.mxu0 %v5343_v45  ;;  %1466 = vmatpush1.msra.mxu1 %v5507_v8 }
 0x365   :  { %1398 = vmatprep.subr.mxu0 %v5347_v60  ;;  %1467 = vmatprep.subr.mxu1 %v5510_v10 }
 0x366   :  { %1399 = vmatpush1.msra.mxu0 %v5351_v47  ;;  %1468 = vmatpush1.msra.mxu1 %v5513_v0 }
 0x367   :  { %1400 = vmatprep.subr.mxu0 %v5355_v49  ;;  %1469 = vmatprep.subr.mxu1 %v5516_v12 }
 0x368   :  { %1401 = vmatpush1.msra.mxu0 %v5359_v51  ;;  %1470 = vmatpush1.msra.mxu1 %v5519_v14 }
 0x369   :  { %1402 = vmatprep.subr.mxu0 %v5363_v53  ;;  %1471 = vmatprep.subr.mxu1 %v5522_v30 }
 0x36a   :  { %1403 = vmatpush1.msra.mxu0 %v5369_v57  ;;  %1472 = vmatpush1.msra.mxu1 %v5525_v23 }
 0x36b   :  { %1404 = vmatprep.subr.mxu0 %v5375_v59  ;;  %1473 = vmatprep.subr.mxu1 %v5365_v55 }
 0x36c   :  { %1405 = vmatpush1.msra.mxu0 %v5381_v61  ;;  %1474 = vmatpush1.msra.mxu1 %v5371_v58 }
 0x36d   :  { %1406 = vmatprep.subr.mxu0 %v5387_v63  ;;  %1475 = vmatprep.subr.mxu1 %v5377_v7 }
 0x36e   :  { %1407 = vmatpush1.msra.mxu0 %v5393_v1  ;;  %1476 = vmatpush1.msra.mxu1 %v5383_v48 }
 0x36f   :  { %1408 = vmatprep.subr.mxu0 %v5399_v5  ;;  %1477 = vmatprep.subr.mxu1 %v5389_v16  ;;  %v1053_v16 = vld [vmem:[#allocation2] sm:$0xc0] }
 0x370   :  { %1409 = vmatpush1.msra.mxu0 %v5405_v15  ;;  %1478 = vmatpush1.msra.mxu1 %v5395_v20  ;;  %v1052_v15 = vld [vmem:[#allocation2 + $0x30] sm:$0xc0] }
 0x371   :  { %1410 = vmatprep.subr.mxu0 %v5411_v46  ;;  %1479 = vmatprep.subr.mxu1 %v5401_v62 }
 0x372   :  { %1411 = vmatpush1.msra.mxu0 %v5417_v18  ;;  %1480 = vmatpush1.msra.mxu1 %v5407_v3 }
 0x373   :  { %1622 = vmatprep.subr.mxu0 %v5277_v2  ;;  %1481 = vmatprep.subr.mxu1 %v5413_v9  ;;  %v6817_v2 = vld [vmem:[#allocation40_spill] sm:$0xff]  ;;  %v1055_v9 = vld [vmem:[#allocation2 + $0x10] sm:$0xc0] }
 0x374   :  { %1482 = vmatpush1.msra.mxu1 %v6817_v2 }
 0x375   :  { %1693 = vmatprep.subr.mxu1 %v6818_v38  ;;  %v1054_v38 = vld [vmem:[#allocation2 + $0x18] sm:$0xc0] }
 0x413   :  { %v1189_v18 = vpop.f32.mrf.mxu0  ;;  %v1260_v63 = vpop.f32.mrf.mxu1 }
 0x414   :  { %v1269_v46 = vrot.slane %v1189_v18, 2  ;;  %v1271_v2 = vrot.slane %v1260_v63, 2 }
 0x415   :  { %v1191_v5 = vpop.f32.mrf.mxu0  ;;  %v1262_v7 = vpop.f32.mrf.mxu1 }
 0x416   :  { %v1277_v1 = vadd.f32 %v1269_v46, %v1052_v15  ;;  %v1270_v48 = vrot.slane %v1191_v5, 2  ;;  %v1272_v3 = vrot.slane %v1262_v7, 2  ;;  %v1279_v18 = vadd.f32 %v1271_v2, %v1054_v38  ;;  %v6821_v15 = vld [vmem:[#allocation30_spill] sm:$0xff]  ;;  %v6823_v46 = vld [vmem:[#allocation31_spill] sm:$0xff] }
 0x418   :  { %v4264_v61 = vmul.f32 -1.442695, %v1277_v1  ;;  %v1278_v20 = vadd.f32 %v1270_v48, %v1053_v16  ;;  %v1280_v59 = vadd.f32 %v1272_v3, %v1055_v9  ;;  %v1301_v1 = vrot.slane %v5430_v11, 6  ;;  %v6822_v3 = vld [vmem:[#allocation21_spill] sm:$0xff]  ;;  %v6824_v9 = vld [vmem:[#allocation22_spill] sm:$0xff]  ;;  %v6825_v11 = vld [vmem:[#allocation32_spill] sm:$0xff] }
 0x41a   :  { %4416 = vpow2.f32 %v4264_v61  ;;  %v4265_v62 = vmul.f32 -1.442695, %v1278_v20  ;;  %v4266_v58 = vmul.f32 -1.442695, %v1280_v59 }
 0x41c   :  { %4418 = vpow2.f32 %v4265_v62 }
 0x41d   :  { %4420 = vpow2.f32 %v4266_v58  ;;  %v6820_v58 = vld [vmem:[#allocation20_spill] sm:$0xff] }
 0x427   :  { %v4417_v57 = vpop.eup %4416 }
 0x428   :  { %v1284_v55 = vadd.f32 1.0, %v4417_v57  ;;  %v6819_v57 = vld [vmem:[#allocation29_spill] sm:$0xff] }
 0x429   :  { %v4419_v53 = vpop.eup %4418 }
 0x42a   :  { %4422 = vrcp.f32 %v1284_v55  ;;  %v1290_v5 = vadd.f32 1.0, %v4419_v53  ;;  %v4421_v48 = vpop.eup %4420 }
 0x42b   :  { %4424 = vtanh.f32 %v1279_v18  ;;  %v1297_v20 = vadd.f32 1.0, %v4421_v48  ;;  %v6826_v18 = vld [vmem:[#allocation23_spill] sm:$0xff]  ;;  %v6828_v48 = vld [vmem:[#allocation24_spill] sm:$0xff] }
 0x42c   :  { %4426 = vrcp.f32 %v1290_v5  ;;  %v6827_v5 = vld [vmem:[#allocation33_spill] sm:$0xff] }
 0x42d   :  { %4428 = vrcp.f32 %v1297_v20  ;;  %v6833_v20 = vld [vmem:[#allocation36_spill] sm:$0xff] }
 0x437   :  { %v4423_v61 = vpop.eup %4422 }
 0x438   :  { %v4425_v16 = vpop.eup %4424 }
 0x439   :  { %v4427_v7 = vpop.eup %4426  ;;  %v1304_v62 = vmul.f32 %v4425_v16, %v4423_v61  ;;  %v6829_v61 = vld [vmem:[#allocation34_spill] sm:$0xff]  ;;  %v6830_v16 = vld [vmem:[#allocation25_spill] sm:$0xff] }
 0x43a   :  { %v1303_v63 = vmul.f32 %v4427_v7, %v1301_v1  ;;  %v4429_v38 = vpop.eup %4428  ;;  %v6831_v1 = vld [vmem:[#allocation35_spill] sm:$0xff]  ;;  %v6832_v7 = vld [vmem:[#allocation26_spill] sm:$0xff] }
 0x43c   :  { %v5542_v59 = vadd.f32 %v1304_v62, %v1303_v63  ;;  %v6834_v62 = vld [vmem:[#allocation27_spill] sm:$0xff]  ;;  %v6835_v63 = vld [vmem:[#allocation37_spill] sm:$0xff] }
 0x43e   :  { %4430 = vtanh.f32 %v5542_v59 }
 0x44b   :  { %v4431_v2 = vpop.eup %4430 }
 0x44c   :  { %v1307_v55 = vmul.f32 %v4431_v2, %v4429_v38  ;;  %v6836_v38 = vld [vmem:[#allocation38_spill] sm:$0xff]  ;;  %v6837_v2 = vld [vmem:[#allocation39_spill] sm:$0xff] }
 0x44e   :  { %1308 = vst [vmem:[#allocation3] sm:$0xc0] %v1307_v55  ;;  %v1378_v53 = vrot.slane %v1307_v55, 6  ;;  %v6838_v55 = vmov 0.0  }
 0x450   :  { %1445 = vmatmul.mubr.f32.vlgmr.msra.gmra.mxu0 %v1378_v53  ;;  %1516 = vmatmul.mubr.f32.vlgmr.msra.gmra.mxu1 %v1378_v53  ;;  %v6839_v53 = vld [vmem:[#allocation40_spill] sm:$0xff] }
 0x451   :  { %1623 = vmatpush1.msra.mxu0 %v5283_v32  ;;  %1694 = vmatpush1.msra.mxu1 %v5467_v21 }
 0x452   :  { %1624 = vmatprep.subr.mxu0 %v5287_v34  ;;  %1695 = vmatprep.subr.mxu1 %v5470_v17 }
 0x453   :  { %1625 = vmatpush1.msra.mxu0 %v5291_v36  ;;  %1696 = vmatpush1.msra.mxu1 %v5473_v19 }
 0x454   :  { %1626 = vmatprep.subr.mxu0 %v5295_v40  ;;  %1697 = vmatprep.subr.mxu1 %v5476_v22 }
 0x455   :  { %1627 = vmatpush1.msra.mxu0 %v5299_v42  ;;  %1698 = vmatpush1.msra.mxu1 %v5479_v24 }
 0x456   :  { %1628 = vmatprep.subr.mxu0 %v5303_v25  ;;  %1699 = vmatprep.subr.mxu1 %v5482_v26 }
 0x457   :  { %1629 = vmatpush1.msra.mxu0 %v5307_v27  ;;  %1700 = vmatpush1.msra.mxu1 %v5485_v28 }
 0x458   :  { %1630 = vmatprep.subr.mxu0 %v5311_v29  ;;  %1701 = vmatprep.subr.mxu1 %v5488_v13 }
 0x459   :  { %1631 = vmatpush1.msra.mxu0 %v5315_v31  ;;  %1702 = vmatpush1.msra.mxu1 %v5491_v56 }
 0x45a   :  { %1632 = vmatprep.subr.mxu0 %v5319_v33  ;;  %1703 = vmatprep.subr.mxu1 %v5494_v52 }
 0x45b   :  { %1633 = vmatpush1.msra.mxu0 %v5323_v35  ;;  %1704 = vmatpush1.msra.mxu1 %v5497_v54 }
 0x45c   :  { %1634 = vmatprep.subr.mxu0 %v5327_v37  ;;  %1705 = vmatprep.subr.mxu1 %v5500_v50 }
 0x45d   :  { %1635 = vmatpush1.msra.mxu0 %v5329_v39  ;;  %1706 = vmatpush1.msra.mxu1 %v5502_v4 }
 0x45e   :  { %1636 = vmatprep.subr.mxu0 %v5331_v44  ;;  %1707 = vmatprep.subr.mxu1 %v5504_v6 }
 0x45f   :  { %1637 = vmatpush1.msra.mxu0 %v5335_v41  ;;  %1708 = vmatpush1.msra.mxu1 %v5507_v8 }
 0x460   :  { %1638 = vmatprep.subr.mxu0 %v5339_v43  ;;  %1709 = vmatprep.subr.mxu1 %v5510_v10 }
 0x461   :  { %1639 = vmatpush1.msra.mxu0 %v5343_v45  ;;  %1710 = vmatpush1.msra.mxu1 %v5513_v0 }
 0x462   :  { %1640 = vmatprep.subr.mxu0 %v5347_v60  ;;  %1711 = vmatprep.subr.mxu1 %v5516_v12 }
 0x463   :  { %1641 = vmatpush1.msra.mxu0 %v5351_v47  ;;  %1712 = vmatpush1.msra.mxu1 %v5519_v14 }
 0x464   :  { %1642 = vmatprep.subr.mxu0 %v5355_v49  ;;  %1713 = vmatprep.subr.mxu1 %v5522_v30 }
 0x465   :  { %1643 = vmatpush1.msra.mxu0 %v5359_v51  ;;  %1714 = vmatpush1.msra.mxu1 %v5525_v23 }
 0x466   :  { %1644 = vmatprep.subr.mxu0 %v6819_v57  ;;  %1715 = vmatprep.subr.mxu1 %v6820_v58 }
 0x467   :  { %1645 = vmatpush1.msra.mxu0 %v6821_v15  ;;  %1716 = vmatpush1.msra.mxu1 %v6822_v3 }
 0x468   :  { %1646 = vmatprep.subr.mxu0 %v6823_v46  ;;  %1717 = vmatprep.subr.mxu1 %v6824_v9 }
 0x469   :  { %1647 = vmatpush1.msra.mxu0 %v6825_v11  ;;  %1718 = vmatpush1.msra.mxu1 %v6826_v18  ;;  %v1312_v11 = vld [vmem:[#allocation2 + $0x38] sm:$0x3] }
 0x46a   :  { %1648 = vmatprep.subr.mxu0 %v6827_v5  ;;  %1719 = vmatprep.subr.mxu1 %v6828_v48 }
 0x46b   :  { %1649 = vmatpush1.msra.mxu0 %v6829_v61  ;;  %1720 = vmatpush1.msra.mxu1 %v6830_v16  ;;  %v6840_v16 = vld [vmem:[#allocation28_spill] sm:$0xff] }
 0x46c   :  { %1650 = vmatprep.subr.mxu0 %v6831_v1  ;;  %1721 = vmatprep.subr.mxu1 %v6832_v7  ;;  %v6841_v1 = vld [vmem:[#allocation19_spill] sm:$0xff]  ;;  %v1309_v7 = vld [vmem:[#allocation2 + $0x8] sm:$0x3] }
 0x46d   :  { %1651 = vmatpush1.msra.mxu0 %v6833_v20  ;;  %1722 = vmatpush1.msra.mxu1 %v6834_v62  ;;  %v1310_v62 = vld [vmem:[#allocation2 + $0x20] sm:$0x3] }
 0x46e   :  { %1652 = vmatprep.subr.mxu0 %v6835_v63  ;;  %1723 = vmatprep.subr.mxu1 %v6836_v38 }
 0x46f   :  { %1653 = vmatpush1.msra.mxu0 %v6837_v2  ;;  %1686 = vmatprep.mubr.f32.mxu0 %v6838_v55 }
 0x470   :  { %1724 = vmatpush1.msra.mxu1 %v6839_v53  ;;  %1757 = vmatprep.mubr.f32.mxu1 %v6838_v55  ;;  %v1311_v55 = vld [vmem:[#allocation2 + $0x28] sm:$0x3] }
 0x471   :  { %1879 = vmatprep.subr.mxu0 %v6840_v16  ;;  %1950 = vmatprep.subr.mxu1 %v6841_v1 }
 0x510   :  { %v1446_v20 = vpop.f32.mrf.mxu0  ;;  %v1517_v38 = vpop.f32.mrf.mxu1 }
 0x511   :  { %v1522_v61 = vadd.f32 %v1446_v20, %v1309_v7  ;;  %v1524_v16 = vadd.f32 %v1517_v38, %v1311_v55  ;;  %v1555_v38 = vld [vmem:[#allocation2 + $0x20] sm:$0xc] }
 0x512   :  { %v1448_v48 = vpop.f32.mrf.mxu0  ;;  %v1519_v18 = vpop.f32.mrf.mxu1 }
 0x513   :  { %v4267_v63 = vmul.f32 -1.442695, %v1522_v61  ;;  %v1523_v5 = vadd.f32 %v1448_v48, %v1310_v62  ;;  %v1525_v53 = vadd.f32 %v1519_v18, %v1312_v11 }
 0x515   :  { %4432 = vpow2.f32 %v4267_v63  ;;  %v4268_v2 = vmul.f32 -1.442695, %v1523_v5  ;;  %v4269_v9 = vmul.f32 -1.442695, %v1525_v53  ;;  %v1546_v5 = vrot.slane %v5542_v59, 6 }
 0x517   :  { %4434 = vpow2.f32 %v4268_v2 }
 0x518   :  { %4436 = vpow2.f32 %v4269_v9 }
 0x522   :  { %v4433_v46 = vpop.eup %4432 }
 0x523   :  { %v1529_v3 = vadd.f32 1.0, %v4433_v46 }
 0x524   :  { %v4435_v1 = vpop.eup %4434 }
 0x525   :  { %4438 = vrcp.f32 %v1529_v3  ;;  %v1535_v7 = vadd.f32 1.0, %v4435_v1  ;;  %v4437_v61 = vpop.eup %4436 }
 0x526   :  { %4440 = vtanh.f32 %v1524_v16  ;;  %v1542_v63 = vadd.f32 1.0, %v4437_v61  ;;  %v1557_v61 = vld [vmem:[#allocation2 + $0x38] sm:$0xc] }
 0x527   :  { %4442 = vrcp.f32 %v1535_v7 }
 0x528   :  { %4444 = vrcp.f32 %v1542_v63 }
 0x532   :  { %v4439_v48 = vpop.eup %4438 }
 0x533   :  { %v4441_v20 = vpop.eup %4440 }
 0x534   :  { %v4443_v62 = vpop.eup %4442  ;;  %v1549_v2 = vmul.f32 %v4441_v20, %v4439_v48 }
 0x535   :  { %v1548_v11 = vmul.f32 %v4443_v62, %v1546_v5  ;;  %v4445_v46 = vpop.eup %4444  ;;  %v1556_v62 = vld [vmem:[#allocation2 + $0x28] sm:$0xc] }
 0x537   :  { %v5612_v18 = vadd.f32 %v1549_v2, %v1548_v11 }
 0x539   :  { %4446 = vtanh.f32 %v5612_v18 }
 0x546   :  { %v4447_v9 = vpop.eup %4446 }
 0x547   :  { %v1552_v3 = vmul.f32 %v4447_v9, %v4445_v46 }
 0x549   :  { %1553 = vst [vmem:[#allocation3 + $0x8] sm:$0x3] %v1552_v3  ;;  %1687 = vmatmul.mubr.f32.vlgmr.msra.gmra.mxu0 %v1552_v3  ;;  %1758 = vmatmul.mubr.f32.vlgmr.msra.gmra.mxu1 %v1552_v3 }
 0x54a   :  { %1880 = vmatpush1.msra.mxu0 %v5283_v32  ;;  %1951 = vmatpush1.msra.mxu1 %v5467_v21  ;;  %v6842_v32 = vld [vmem:[#allocation21_spill] sm:$0xff] }
 0x54b   :  { %1881 = vmatprep.subr.mxu0 %v5287_v34  ;;  %1952 = vmatprep.subr.mxu1 %v5470_v17  ;;  %v6843_v34 = vld [vmem:[#allocation31_spill] sm:$0xff] }
 0x54c   :  { %1882 = vmatpush1.msra.mxu0 %v5291_v36  ;;  %1953 = vmatpush1.msra.mxu1 %v5473_v19  ;;  %v6844_v36 = vld [vmem:[#allocation22_spill] sm:$0xff] }
 0x54d   :  { %1883 = vmatprep.subr.mxu0 %v5295_v40  ;;  %1954 = vmatprep.subr.mxu1 %v5476_v22  ;;  %v6845_v40 = vld [vmem:[#allocation32_spill] sm:$0xff] }
 0x54e   :  { %1884 = vmatpush1.msra.mxu0 %v5299_v42  ;;  %1955 = vmatpush1.msra.mxu1 %v5479_v24  ;;  %v6846_v42 = vld [vmem:[#allocation23_spill] sm:$0xff] }
 0x54f   :  { %1885 = vmatprep.subr.mxu0 %v5303_v25  ;;  %1956 = vmatprep.subr.mxu1 %v5482_v26  ;;  %v6847_v25 = vld [vmem:[#allocation33_spill] sm:$0xff] }
 0x550   :  { %1886 = vmatpush1.msra.mxu0 %v5307_v27  ;;  %1957 = vmatpush1.msra.mxu1 %v5485_v28  ;;  %v6848_v27 = vld [vmem:[#allocation24_spill] sm:$0xff] }
 0x551   :  { %1887 = vmatprep.subr.mxu0 %v5311_v29  ;;  %1958 = vmatprep.subr.mxu1 %v5488_v13  ;;  %v6849_v29 = vld [vmem:[#allocation34_spill] sm:$0xff] }
 0x552   :  { %1888 = vmatpush1.msra.mxu0 %v5315_v31  ;;  %1959 = vmatpush1.msra.mxu1 %v5491_v56  ;;  %v6850_v31 = vld [vmem:[#allocation25_spill] sm:$0xff] }
 0x553   :  { %1889 = vmatprep.subr.mxu0 %v5319_v33  ;;  %1960 = vmatprep.subr.mxu1 %v5494_v52  ;;  %v6851_v33 = vld [vmem:[#allocation35_spill] sm:$0xff] }
 0x554   :  { %1890 = vmatpush1.msra.mxu0 %v5323_v35  ;;  %1961 = vmatpush1.msra.mxu1 %v5497_v54  ;;  %v6852_v35 = vld [vmem:[#allocation26_spill] sm:$0xff] }
 0x555   :  { %1891 = vmatprep.subr.mxu0 %v5327_v37  ;;  %1962 = vmatprep.subr.mxu1 %v5500_v50  ;;  %v6853_v37 = vld [vmem:[#allocation36_spill] sm:$0xff] }
 0x556   :  { %1892 = vmatpush1.msra.mxu0 %v5329_v39  ;;  %1963 = vmatpush1.msra.mxu1 %v5502_v4  ;;  %v6854_v39 = vld [vmem:[#allocation27_spill] sm:$0xff] }
 0x557   :  { %1893 = vmatprep.subr.mxu0 %v5331_v44  ;;  %1964 = vmatprep.subr.mxu1 %v5504_v6  ;;  %v6855_v44 = vld [vmem:[#allocation37_spill] sm:$0xff] }
 0x558   :  { %1894 = vmatpush1.msra.mxu0 %v5335_v41  ;;  %1965 = vmatpush1.msra.mxu1 %v5507_v8  ;;  %v6856_v41 = vld [vmem:[#allocation38_spill] sm:$0xff] }
 0x559   :  { %1895 = vmatprep.subr.mxu0 %v5339_v43  ;;  %1966 = vmatprep.subr.mxu1 %v5510_v10  ;;  %v6857_v43 = vld [vmem:[#allocation39_spill] sm:$0xff] }
 0x55a   :  { %1896 = vmatpush1.msra.mxu0 %v5343_v45  ;;  %1967 = vmatpush1.msra.mxu1 %v5513_v0  ;;  %v6858_v45 = vmov 0.0  }
 0x55b   :  { %1897 = vmatprep.subr.mxu0 %v5347_v60  ;;  %1968 = vmatprep.subr.mxu1 %v5516_v12  ;;  %v6859_v60 = vld [vmem:[#allocation40_spill] sm:$0xff] }
 0x55c   :  { %1898 = vmatpush1.msra.mxu0 %v5351_v47  ;;  %1969 = vmatpush1.msra.mxu1 %v5519_v14 }
 0x55d   :  { %1899 = vmatprep.subr.mxu0 %v5355_v49  ;;  %1970 = vmatprep.subr.mxu1 %v5522_v30 }
 0x55e   :  { %1900 = vmatpush1.msra.mxu0 %v5359_v51  ;;  %1971 = vmatpush1.msra.mxu1 %v5525_v23  ;;  %v1554_v51 = vld [vmem:[#allocation2 + $0x8] sm:$0xc] }
 0x55f   :  { %1901 = vmatprep.subr.mxu0 %v6819_v57  ;;  %1972 = vmatprep.subr.mxu1 %v6820_v58 }
 0x560   :  { %1902 = vmatpush1.msra.mxu0 %v6821_v15  ;;  %1973 = vmatpush1.msra.mxu1 %v6842_v32 }
 0x561   :  { %1903 = vmatprep.subr.mxu0 %v6843_v34  ;;  %1974 = vmatprep.subr.mxu1 %v6844_v36  ;;  %v1800_v36 = vrot.slane %v5612_v18, 6  ;;  %v2130_v18 = vld [vmem:[#allocation7 + $0x1e8] sm:$0xff] }
 0x562   :  { %1904 = vmatpush1.msra.mxu0 %v6845_v40  ;;  %1975 = vmatpush1.msra.mxu1 %v6846_v42 }
 0x563   :  { %1905 = vmatprep.subr.mxu0 %v6847_v25  ;;  %1976 = vmatprep.subr.mxu1 %v6848_v27 }
 0x564   :  { %1906 = vmatpush1.msra.mxu0 %v6849_v29  ;;  %1977 = vmatpush1.msra.mxu1 %v6850_v31 }
 0x565   :  { %1907 = vmatprep.subr.mxu0 %v6851_v33  ;;  %1978 = vmatprep.subr.mxu1 %v6852_v35 }
 0x566   :  { %1908 = vmatpush1.msra.mxu0 %v6853_v37  ;;  %1979 = vmatpush1.msra.mxu1 %v6854_v39  ;;  %v2132_v39 = vld [vmem:[#allocation7 + $0x1f8] sm:$0xff] }
 0x567   :  { %1909 = vmatprep.subr.mxu0 %v6855_v44  ;;  %1980 = vmatprep.subr.mxu1 %v6856_v41  ;;  %v2129_v44 = vld [vmem:[#allocation7 + $0x1e0] sm:$0xff]  ;;  %v2126_v41 = vld [vmem:[#allocation7 + $0x1c8] sm:$0xff] }
 0x568   :  { %1910 = vmatpush1.msra.mxu0 %v6857_v43  ;;  %1943 = vmatprep.mubr.f32.mxu0 %v6858_v45  ;;  %v2125_v43 = vld [vmem:[#allocation7 + $0x1c0] sm:$0xff] }
 0x569   :  { %1981 = vmatpush1.msra.mxu1 %v6859_v60  ;;  %2014 = vmatprep.mubr.f32.mxu1 %v6858_v45  ;;  %v2122_v60 = vld [vmem:[#allocation7 + $0x1a8] sm:$0xff] }
 0x56a   :  { %2136 = vmatprep.subr.mxu0 %v2130_v18  ;;  %2207 = vmatprep.subr.mxu1 %v2132_v39  ;;  %v1810_v18 = vld [vmem:[#allocation2 + $0x28] sm:$0x30] }
 0x609   :  { %v1688_v47 = vpop.f32.mrf.mxu0  ;;  %v1759_v58 = vpop.f32.mrf.mxu1 }
 0x60a   :  { %v1768_v49 = vrot.slane %v1688_v47, 6  ;;  %v1770_v20 = vrot.slane %v1759_v58, 6  ;;  %v2121_v47 = vld [vmem:[#allocation7 + $0x1a0] sm:$0xff]  ;;  %v2087_v58 = vld [vmem:[#allocation7 + $0x90] sm:$0xff] }
 0x60b   :  { %v1690_v59 = vpop.f32.mrf.mxu0  ;;  %v1761_v1 = vpop.f32.mrf.mxu1 }
 0x60c   :  { %v1776_v57 = vadd.f32 %v1768_v49, %v1554_v51  ;;  %v1769_v15 = vrot.slane %v1690_v59, 6  ;;  %v1771_v7 = vrot.slane %v1761_v1, 6  ;;  %v1778_v2 = vadd.f32 %v1770_v20, %v1556_v62  ;;  %v2118_v49 = vld [vmem:[#allocation7 + $0x188] sm:$0xff]  ;;  %v2101_v59 = vld [vmem:[#allocation7 + $0x100] sm:$0xff]  ;;  %v2075_v1 = vld [vmem:[#allocation7 + $0x30] sm:$0xff] }
 0x60d   :  { %v2102_v51 = vld [vmem:[#allocation7 + $0x108] sm:$0xff]  ;;  %v2071_v20 = vld [vmem:[#allocation7 + $0x10] sm:$0xff]  ;;  %v2387_v62 = vld [vmem:[#allocation9 + $0x1f8] sm:$0xff] }
 0x60e   :  { %v4270_v55 = vmul.f32 -1.442695, %v1776_v57  ;;  %v1777_v53 = vadd.f32 %v1769_v15, %v1555_v38  ;;  %v1779_v48 = vadd.f32 %v1771_v7, %v1557_v61  ;;  %v2088_v57 = vld [vmem:[#allocation7 + $0x98] sm:$0xff]  ;;  %v2081_v15 = vld [vmem:[#allocation7 + $0x60] sm:$0xff]  ;;  %v2078_v38 = vld [vmem:[#allocation7 + $0x48] sm:$0xff] }
 0x60f   :  { %v2070_v7 = vld [vmem:[#allocation7 + $0x8] sm:$0xff]  ;;  %v2072_v61 = vld [vmem:[#allocation7 + $0x18] sm:$0xff] }
 0x610   :  { %4448 = vpow2.f32 %v4270_v55  ;;  %v4271_v16 = vmul.f32 -1.442695, %v1777_v53  ;;  %v4272_v5 = vmul.f32 -1.442695, %v1779_v48  ;;  %v2077_v55 = vld [vmem:[#allocation7 + $0x40] sm:$0xff]  ;;  %v2079_v53 = vld [vmem:[#allocation7 + $0x50] sm:$0xff] }
 0x611   :  { %v2069_v48 = vld [vmem:[#allocation7] sm:$0xff] }
 0x612   :  { %4450 = vpow2.f32 %v4271_v16  ;;  %v2076_v16 = vld [vmem:[#allocation7 + $0x38] sm:$0xff] }
 0x613   :  { %4452 = vpow2.f32 %v4272_v5  ;;  %v2385_v5 = vld [vmem:[#allocation9 + $0x1e8] sm:$0xff] }
 0x61d   :  { %v4449_v63 = vpop.eup %4448 }
 0x61e   :  { %v1783_v11 = vadd.f32 1.0, %v4449_v63 }
 0x61f   :  { %v4451_v46 = vpop.eup %4450 }
 0x620   :  { %4454 = vrcp.f32 %v1783_v11  ;;  %v1789_v9 = vadd.f32 1.0, %v4451_v46  ;;  %v4453_v3 = vpop.eup %4452  ;;  %v1808_v11 = vld [vmem:[#allocation2 + $0x8] sm:$0x30] }
 0x621   :  { %4456 = vtanh.f32 %v1778_v2  ;;  %v1796_v42 = vadd.f32 1.0, %v4453_v3 }
 0x622   :  { %4458 = vrcp.f32 %v1789_v9 }
 0x623   :  { %4460 = vrcp.f32 %v1796_v42 }
 0x62d   :  { %v4455_v32 = vpop.eup %4454 }
 0x62e   :  { %v4457_v34 = vpop.eup %4456 }
 0x62f   :  { %v4459_v40 = vpop.eup %4458  ;;  %v1803_v25 = vmul.f32 %v4457_v34, %v4455_v32  ;;  %v1809_v34 = vld [vmem:[#allocation2 + $0x20] sm:$0x30] }
 0x630   :  { %v1802_v27 = vmul.f32 %v4459_v40, %v1800_v36  ;;  %v4461_v31 = vpop.eup %4460 }
 0x632   :  { %v5680_v29 = vadd.f32 %v1803_v25, %v1802_v27 }
 0x634   :  { %4462 = vtanh.f32 %v5680_v29 }
 0x641   :  { %v4463_v33 = vpop.eup %4462 }
 0x642   :  { %v1806_v35 = vmul.f32 %v4463_v33, %v4461_v31  ;;  %v1811_v31 = vld [vmem:[#allocation2 + $0x38] sm:$0x30] }
 0x644   :  { %1807 = vst [vmem:[#allocation3 + $0x8] sm:$0xc] %v1806_v35  ;;  %v1877_v37 = vrot.slane %v1806_v35, 2 }
 0x646   :  { %1944 = vmatmul.mubr.f32.vlgmr.msra.gmra.mxu0 %v1877_v37  ;;  %2015 = vmatmul.mubr.f32.vlgmr.msra.gmra.mxu1 %v1877_v37 }
 0x647   :  { %2200 = vmatprep.mubr.f32.mxu0 %v6858_v45  ;;  %2271 = vmatprep.mubr.f32.mxu1 %v6858_v45 }
 0x648   :  { %2137 = vmatpush1.msra.mxu0 %v2129_v44  ;;  %2208 = vmatpush1.msra.mxu1 %v5467_v21  ;;  %v2117_v21 = vld [vmem:[#allocation7 + $0x180] sm:$0xff] }
 0x649   :  { %2138 = vmatprep.subr.mxu0 %v2126_v41  ;;  %2209 = vmatprep.subr.mxu1 %v5470_v17  ;;  %v2114_v17 = vld [vmem:[#allocation7 + $0x168] sm:$0xff] }
 0x64a   :  { %2139 = vmatpush1.msra.mxu0 %v2125_v43  ;;  %2210 = vmatpush1.msra.mxu1 %v5473_v19  ;;  %v2113_v19 = vld [vmem:[#allocation7 + $0x160] sm:$0xff] }
 0x64b   :  { %2140 = vmatprep.subr.mxu0 %v2122_v60  ;;  %2211 = vmatprep.subr.mxu1 %v5476_v22  ;;  %v2110_v22 = vld [vmem:[#allocation7 + $0x148] sm:$0xff] }
 0x64c   :  { %2141 = vmatpush1.msra.mxu0 %v2121_v47  ;;  %2212 = vmatpush1.msra.mxu1 %v5479_v24  ;;  %v2109_v24 = vld [vmem:[#allocation7 + $0x140] sm:$0xff] }
 0x64d   :  { %2142 = vmatprep.subr.mxu0 %v2118_v49  ;;  %2213 = vmatprep.subr.mxu1 %v5482_v26  ;;  %v2106_v26 = vld [vmem:[#allocation7 + $0x128] sm:$0xff] }
 0x64e   :  { %2143 = vmatpush1.msra.mxu0 %v2117_v21  ;;  %2214 = vmatpush1.msra.mxu1 %v5485_v28  ;;  %v2105_v28 = vld [vmem:[#allocation7 + $0x120] sm:$0xff] }
 0x64f   :  { %2144 = vmatprep.subr.mxu0 %v2114_v17  ;;  %2215 = vmatprep.subr.mxu1 %v5488_v13  ;;  %v2098_v13 = vld [vmem:[#allocation7 + $0xe8] sm:$0xff]  ;;  %v2057_v17 = vrot.slane %v5680_v29, 6  ;;  %v2380_v29 = vld [vmem:[#allocation9 + $0x1c0] sm:$0xff] }
 0x650   :  { %2145 = vmatpush1.msra.mxu0 %v2113_v19  ;;  %2216 = vmatpush1.msra.mxu1 %v5491_v56  ;;  %v2097_v56 = vld [vmem:[#allocation7 + $0xe0] sm:$0xff] }
 0x651   :  { %2146 = vmatprep.subr.mxu0 %v2110_v22  ;;  %2217 = vmatprep.subr.mxu1 %v5494_v52  ;;  %v2094_v52 = vld [vmem:[#allocation7 + $0xc8] sm:$0xff] }
 0x652   :  { %2147 = vmatpush1.msra.mxu0 %v2109_v24  ;;  %2218 = vmatpush1.msra.mxu1 %v5497_v54  ;;  %v2093_v54 = vld [vmem:[#allocation7 + $0xc0] sm:$0xff] }
 0x653   :  { %2148 = vmatprep.subr.mxu0 %v2106_v26  ;;  %2219 = vmatprep.subr.mxu1 %v5500_v50  ;;  %v2090_v50 = vld [vmem:[#allocation7 + $0xa8] sm:$0xff] }
 0x654   :  { %2149 = vmatpush1.msra.mxu0 %v2105_v28  ;;  %2220 = vmatpush1.msra.mxu1 %v5502_v4  ;;  %v2089_v4 = vld [vmem:[#allocation7 + $0xa0] sm:$0xff] }
 0x655   :  { %2150 = vmatprep.subr.mxu0 %v2102_v51  ;;  %2221 = vmatprep.subr.mxu1 %v5504_v6  ;;  %v2086_v6 = vld [vmem:[#allocation7 + $0x88] sm:$0xff] }
 0x656   :  { %2151 = vmatpush1.msra.mxu0 %v2101_v59  ;;  %2222 = vmatpush1.msra.mxu1 %v5507_v8  ;;  %v2085_v8 = vld [vmem:[#allocation7 + $0x80] sm:$0xff] }
 0x657   :  { %2152 = vmatprep.subr.mxu0 %v2098_v13  ;;  %2223 = vmatprep.subr.mxu1 %v5510_v10  ;;  %v2082_v10 = vld [vmem:[#allocation7 + $0x68] sm:$0xff] }
 0x658   :  { %2153 = vmatpush1.msra.mxu0 %v2097_v56  ;;  %2224 = vmatpush1.msra.mxu1 %v5513_v0  ;;  %v2084_v0 = vld [vmem:[#allocation7 + $0x78] sm:$0xff] }
 0x659   :  { %2154 = vmatprep.subr.mxu0 %v2094_v52  ;;  %2225 = vmatprep.subr.mxu1 %v5516_v12  ;;  %v2083_v12 = vld [vmem:[#allocation7 + $0x70] sm:$0xff]  ;;  %v2384_v52 = vld [vmem:[#allocation9 + $0x1e0] sm:$0xff] }
 0x65a   :  { %2155 = vmatpush1.msra.mxu0 %v2093_v54  ;;  %2226 = vmatpush1.msra.mxu1 %v5519_v14  ;;  %v2080_v14 = vld [vmem:[#allocation7 + $0x58] sm:$0xff]  ;;  %v2386_v54 = vld [vmem:[#allocation9 + $0x1f0] sm:$0xff] }
 0x65b   :  { %2156 = vmatprep.subr.mxu0 %v2090_v50  ;;  %2227 = vmatprep.subr.mxu1 %v5522_v30  ;;  %v2074_v30 = vld [vmem:[#allocation7 + $0x28] sm:$0xff] }
 0x65c   :  { %2157 = vmatpush1.msra.mxu0 %v2089_v4  ;;  %2228 = vmatpush1.msra.mxu1 %v5525_v23  ;;  %v2073_v23 = vld [vmem:[#allocation7 + $0x20] sm:$0xff]  ;;  %v2381_v50 = vld [vmem:[#allocation9 + $0x1c8] sm:$0xff]  ;;  %v2383_v4 = vld [vmem:[#allocation9 + $0x1d8] sm:$0xff] }
 0x65d   :  { %2158 = vmatprep.subr.mxu0 %v2086_v6  ;;  %2229 = vmatprep.subr.mxu1 %v2088_v57  ;;  %v2382_v6 = vld [vmem:[#allocation9 + $0x1d0] sm:$0xff]  ;;  %v2377_v57 = vld [vmem:[#allocation9 + $0x1a8] sm:$0xff] }
 0x65e   :  { %2159 = vmatpush1.msra.mxu0 %v2085_v8  ;;  %2230 = vmatpush1.msra.mxu1 %v2087_v58  ;;  %v2379_v8 = vld [vmem:[#allocation9 + $0x1b8] sm:$0xff]  ;;  %v2376_v58 = vld [vmem:[#allocation9 + $0x1a0] sm:$0xff] }
 0x65f   :  { %2160 = vmatprep.subr.mxu0 %v2082_v10  ;;  %2231 = vmatprep.subr.mxu1 %v2084_v0  ;;  %v2378_v10 = vld [vmem:[#allocation9 + $0x1b0] sm:$0xff]  ;;  %v2373_v0 = vld [vmem:[#allocation9 + $0x188] sm:$0xff] }
 0x660   :  { %2161 = vmatpush1.msra.mxu0 %v2081_v15  ;;  %2232 = vmatpush1.msra.mxu1 %v2083_v12  ;;  %v2375_v15 = vld [vmem:[#allocation9 + $0x198] sm:$0xff]  ;;  %v2372_v12 = vld [vmem:[#allocation9 + $0x180] sm:$0xff] }
 0x661   :  { %2162 = vmatprep.subr.mxu0 %v2078_v38  ;;  %2233 = vmatprep.subr.mxu1 %v2080_v14  ;;  %v2374_v38 = vld [vmem:[#allocation9 + $0x190] sm:$0xff]  ;;  %v2369_v14 = vld [vmem:[#allocation9 + $0x168] sm:$0xff] }
 0x662   :  { %2163 = vmatpush1.msra.mxu0 %v2077_v55  ;;  %2234 = vmatpush1.msra.mxu1 %v2079_v53  ;;  %v2371_v55 = vld [vmem:[#allocation9 + $0x178] sm:$0xff]  ;;  %v2368_v53 = vld [vmem:[#allocation9 + $0x160] sm:$0xff] }
 0x663   :  { %2164 = vmatprep.subr.mxu0 %v2074_v30  ;;  %2235 = vmatprep.subr.mxu1 %v2076_v16  ;;  %v2370_v30 = vld [vmem:[#allocation9 + $0x170] sm:$0xff]  ;;  %v2365_v16 = vld [vmem:[#allocation9 + $0x148] sm:$0xff] }
 0x664   :  { %2165 = vmatpush1.msra.mxu0 %v2073_v23  ;;  %2236 = vmatpush1.msra.mxu1 %v2075_v1  ;;  %v2367_v23 = vld [vmem:[#allocation9 + $0x158] sm:$0xff]  ;;  %v2364_v1 = vld [vmem:[#allocation9 + $0x140] sm:$0xff] }
 0x665   :  { %2166 = vmatprep.subr.mxu0 %v2070_v7  ;;  %2237 = vmatprep.subr.mxu1 %v2072_v61  ;;  %v2366_v7 = vld [vmem:[#allocation9 + $0x150] sm:$0xff]  ;;  %v2361_v61 = vld [vmem:[#allocation9 + $0x128] sm:$0xff] }
 0x666   :  { %2167 = vmatpush1.msra.mxu0 %v2069_v48  ;;  %2238 = vmatpush1.msra.mxu1 %v2071_v20  ;;  %v2363_v48 = vld [vmem:[#allocation9 + $0x138] sm:$0xff]  ;;  %v2360_v20 = vld [vmem:[#allocation9 + $0x120] sm:$0xff] }
 0x667   :  { %2410 = vmatprep.subr.mxu0 %v2385_v5  ;;  %2487 = vmatprep.subr.mxu1 %v2387_v62  ;;  %v2362_v5 = vld [vmem:[#allocation9 + $0x130] sm:$0xff]  ;;  %v2357_v62 = vld [vmem:[#allocation9 + $0x108] sm:$0xff] }
 0x706   :  { %v1945_v63 = vpop.f32.mrf.mxu0  ;;  %v2016_v3 = vpop.f32.mrf.mxu1 }
 0x707   :  { %v2025_v2 = vrot.slane %v1945_v63, 4  ;;  %v2027_v35 = vrot.slane %v2016_v3, 4  ;;  %v2359_v63 = vld [vmem:[#allocation9 + $0x118] sm:$0xff]  ;;  %v2352_v3 = vld [vmem:[#allocation9 + $0xe0] sm:$0xff] }
 0x708   :  { %v1947_v46 = vpop.f32.mrf.mxu0  ;;  %v2018_v25 = vpop.f32.mrf.mxu1 }
 0x709   :  { %v2033_v9 = vadd.f32 %v2025_v2, %v1808_v11  ;;  %v2026_v32 = vrot.slane %v1947_v46, 4  ;;  %v2028_v27 = vrot.slane %v2018_v25, 4  ;;  %v2035_v44 = vadd.f32 %v2027_v35, %v1810_v18  ;;  %v2356_v2 = vld [vmem:[#allocation9 + $0x100] sm:$0xff]  ;;  %v2358_v11 = vld [vmem:[#allocation9 + $0x110] sm:$0xff]  ;;  %v2353_v46 = vld [vmem:[#allocation9 + $0xe8] sm:$0xff] }
 0x70a   :  { %v2345_v25 = vld [vmem:[#allocation9 + $0xa8] sm:$0xff]  ;;  %v2340_v18 = vld [vmem:[#allocation9 + $0x80] sm:$0xff] }
 0x70b   :  { %v4273_v36 = vmul.f32 -1.442695, %v2033_v9  ;;  %v2034_v40 = vadd.f32 %v2026_v32, %v1809_v34  ;;  %v2036_v33 = vadd.f32 %v2028_v27, %v1811_v31  ;;  %v2355_v9 = vld [vmem:[#allocation9 + $0xf8] sm:$0xff]  ;;  %v2354_v32 = vld [vmem:[#allocation9 + $0xf0] sm:$0xff]  ;;  %v2349_v34 = vld [vmem:[#allocation9 + $0xc8] sm:$0xff] }
 0x70c   :  { %v2347_v27 = vld [vmem:[#allocation9 + $0xb8] sm:$0xff]  ;;  %v2344_v31 = vld [vmem:[#allocation9 + $0xa0] sm:$0xff]  ;;  %v2341_v35 = vld [vmem:[#allocation9 + $0x88] sm:$0xff] }
 0x70d   :  { %4464 = vpow2.f32 %v4273_v36  ;;  %v4274_v42 = vmul.f32 -1.442695, %v2034_v40  ;;  %v4275_v37 = vmul.f32 -1.442695, %v2036_v33  ;;  %v2351_v36 = vld [vmem:[#allocation9 + $0xd8] sm:$0xff]  ;;  %v2348_v40 = vld [vmem:[#allocation9 + $0xc0] sm:$0xff] }
 0x70e   :  { %v2346_v33 = vld [vmem:[#allocation9 + $0xb0] sm:$0xff] }
 0x70f   :  { %4466 = vpow2.f32 %v4274_v42  ;;  %v2350_v42 = vld [vmem:[#allocation9 + $0xd0] sm:$0xff] }
 0x710   :  { %4468 = vpow2.f32 %v4275_v37  ;;  %v2343_v37 = vld [vmem:[#allocation9 + $0x98] sm:$0xff] }
 0x71a   :  { %v4465_v39 = vpop.eup %4464 }
 0x71b   :  { %v2040_v41 = vadd.f32 1.0, %v4465_v39  ;;  %v2342_v39 = vld [vmem:[#allocation9 + $0x90] sm:$0xff] }
 0x71c   :  { %v4467_v43 = vpop.eup %4466 }
 0x71d   :  { %4470 = vrcp.f32 %v2040_v41  ;;  %v2046_v60 = vadd.f32 1.0, %v4467_v43  ;;  %v4469_v47 = vpop.eup %4468  ;;  %v2339_v41 = vld [vmem:[#allocation9 + $0x78] sm:$0xff]  ;;  %v2336_v43 = vld [vmem:[#allocation9 + $0x60] sm:$0xff] }
 0x71e   :  { %4472 = vtanh.f32 %v2035_v44  ;;  %v2053_v22 = vadd.f32 1.0, %v4469_v47  ;;  %v2337_v44 = vld [vmem:[#allocation9 + $0x68] sm:$0xff] }
 0x71f   :  { %4474 = vrcp.f32 %v2046_v60  ;;  %v2338_v60 = vld [vmem:[#allocation9 + $0x70] sm:$0xff]  ;;  %v2333_v47 = vld [vmem:[#allocation9 + $0x48] sm:$0xff] }
 0x720   :  { %4476 = vrcp.f32 %v2053_v22  ;;  %v2331_v22 = vld [vmem:[#allocation9 + $0x38] sm:$0xff] }
 0x72a   :  { %v4471_v49 = vpop.eup %4470 }
 0x72b   :  { %v4473_v21 = vpop.eup %4472 }
 0x72c   :  { %v4475_v19 = vpop.eup %4474  ;;  %v2060_v24 = vmul.f32 %v4473_v21, %v4471_v49  ;;  %v2335_v49 = vld [vmem:[#allocation9 + $0x58] sm:$0xff]  ;;  %v2332_v21 = vld [vmem:[#allocation9 + $0x40] sm:$0xff] }
 0x72d   :  { %v2059_v26 = vmul.f32 %v4475_v19, %v2057_v17  ;;  %v4477_v51 = vpop.eup %4476  ;;  %v2334_v17 = vld [vmem:[#allocation9 + $0x50] sm:$0xff]  ;;  %v2329_v19 = vld [vmem:[#allocation9 + $0x28] sm:$0xff] }
 0x72f   :  { %v5707_v28 = vadd.f32 %v2060_v24, %v2059_v26  ;;  %v2328_v24 = vld [vmem:[#allocation9 + $0x20] sm:$0xff]  ;;  %v2330_v26 = vld [vmem:[#allocation9 + $0x30] sm:$0xff] }
 0x731   :  { %4478 = vtanh.f32 %v5707_v28 }
 0x73e   :  { %v4479_v59 = vpop.eup %4478 }
 0x73f   :  { %v2063_v13 = vmul.f32 %v4479_v59, %v4477_v51  ;;  %v2325_v51 = vld [vmem:[#allocation9 + $0x8] sm:$0xff]  ;;  %v2327_v59 = vld [vmem:[#allocation9 + $0x18] sm:$0xff] }
 0x741   :  { %2064 = vst [vmem:[#allocation3 + $0x8] sm:$0x30] %v2063_v13  ;;  %v2134_v56 = vrot.slane %v2063_v13, 4  ;;  %v2324_v13 = vld [vmem:[#allocation9] sm:$0xff] }
 0x743   :  { %2201 = vmatmul.mubr.f32.vlgmr.msra.gmra.mxu0 %v2134_v56  ;;  %2272 = vmatmul.mubr.f32.vlgmr.msra.gmra.mxu1 %v2134_v56  ;;  %v2326_v56 = vld [vmem:[#allocation9 + $0x10] sm:$0xff] }
 0x744   :  { %2411 = vmatpush1.msra.mxu0 %v2384_v52  ;;  %2488 = vmatpush1.msra.mxu1 %v2386_v54  ;;  %v2322_v52 = vld [vmem:[#allocation3] sm:$0xff]  ;;  %v5714_v54 = vld [vmem:[#allocation10 + $0x1e8] sm:$0xff] }
 0x745   :  { %2412 = vmatprep.subr.mxu0 %v2381_v50  ;;  %2489 = vmatprep.subr.mxu1 %v2383_v4  ;;  %6860 = vst [vmem:[#allocation29_spill] sm:$0xff] %v5714_v54  ;;  %v5716_v50 = vld [vmem:[#allocation10 + $0x1f8] sm:$0xff]  ;;  %v5720_v4 = vld [vmem:[#allocation10 + $0x1e0] sm:$0xff] }
 0x746   :  { %2413 = vmatpush1.msra.mxu0 %v2380_v29  ;;  %2490 = vmatpush1.msra.mxu1 %v2382_v6  ;;  %6861 = vst [vmem:[#allocation20_spill] sm:$0xff] %v5716_v50  ;;  %v5722_v29 = vld [vmem:[#allocation10 + $0x1f0] sm:$0xff]  ;;  %v5726_v6 = vld [vmem:[#allocation10 + $0x1c8] sm:$0xff] }
 0x747   :  { %2414 = vmatprep.subr.mxu0 %v2377_v57  ;;  %2491 = vmatprep.subr.mxu1 %v2379_v8  ;;  %v5728_v57 = vld [vmem:[#allocation10 + $0x1d8] sm:$0xff]  ;;  %v5732_v8 = vld [vmem:[#allocation10 + $0x1c0] sm:$0xff] }
 0x748   :  { %2415 = vmatpush1.msra.mxu0 %v2376_v58  ;;  %2492 = vmatpush1.msra.mxu1 %v2378_v10  ;;  %v5734_v58 = vld [vmem:[#allocation10 + $0x1d0] sm:$0xff]  ;;  %v5738_v10 = vld [vmem:[#allocation10 + $0x1a8] sm:$0xff] }
 0x749   :  { %2416 = vmatprep.subr.mxu0 %v2373_v0  ;;  %2493 = vmatprep.subr.mxu1 %v2375_v15  ;;  %v5740_v0 = vld [vmem:[#allocation10 + $0x1b8] sm:$0xff]  ;;  %v5744_v15 = vld [vmem:[#allocation10 + $0x1a0] sm:$0xff] }
 0x74a   :  { %2417 = vmatpush1.msra.mxu0 %v2372_v12  ;;  %2494 = vmatpush1.msra.mxu1 %v2374_v38  ;;  %v5746_v12 = vld [vmem:[#allocation10 + $0x1b0] sm:$0xff]  ;;  %v5750_v38 = vld [vmem:[#allocation10 + $0x188] sm:$0xff] }
 0x74b   :  { %2418 = vmatprep.subr.mxu0 %v2369_v14  ;;  %2495 = vmatprep.subr.mxu1 %v2371_v55  ;;  %v5752_v14 = vld [vmem:[#allocation10 + $0x198] sm:$0xff]  ;;  %v5756_v55 = vld [vmem:[#allocation10 + $0x180] sm:$0xff] }
 0x74c   :  { %2419 = vmatpush1.msra.mxu0 %v2368_v53  ;;  %2496 = vmatpush1.msra.mxu1 %v2370_v30  ;;  %v5758_v53 = vld [vmem:[#allocation10 + $0x190] sm:$0xff]  ;;  %v5762_v30 = vld [vmem:[#allocation10 + $0x168] sm:$0xff] }
 0x74d   :  { %2420 = vmatprep.subr.mxu0 %v2365_v16  ;;  %2497 = vmatprep.subr.mxu1 %v2367_v23  ;;  %v5764_v16 = vld [vmem:[#allocation10 + $0x178] sm:$0xff]  ;;  %v5768_v23 = vld [vmem:[#allocation10 + $0x160] sm:$0xff] }
 0x74e   :  { %2421 = vmatpush1.msra.mxu0 %v2364_v1  ;;  %2498 = vmatpush1.msra.mxu1 %v2366_v7  ;;  %v5770_v1 = vld [vmem:[#allocation10 + $0x170] sm:$0xff]  ;;  %v5774_v7 = vld [vmem:[#allocation10 + $0x148] sm:$0xff] }
 0x74f   :  { %2422 = vmatprep.subr.mxu0 %v2361_v61  ;;  %2499 = vmatprep.subr.mxu1 %v2363_v48  ;;  %v5776_v61 = vld [vmem:[#allocation10 + $0x158] sm:$0xff]  ;;  %v5780_v48 = vld [vmem:[#allocation10 + $0x140] sm:$0xff] }
 0x750   :  { %2423 = vmatpush1.msra.mxu0 %v2360_v20  ;;  %2500 = vmatpush1.msra.mxu1 %v2362_v5  ;;  %v5782_v20 = vld [vmem:[#allocation10 + $0x150] sm:$0xff]  ;;  %v5786_v5 = vld [vmem:[#allocation10 + $0x128] sm:$0xff] }
 0x751   :  { %2424 = vmatprep.subr.mxu0 %v2357_v62  ;;  %2501 = vmatprep.subr.mxu1 %v2359_v63  ;;  %v5788_v62 = vld [vmem:[#allocation10 + $0x138] sm:$0xff]  ;;  %v5792_v63 = vld [vmem:[#allocation10 + $0x120] sm:$0xff] }
 0x752   :  { %2425 = vmatpush1.msra.mxu0 %v2356_v2  ;;  %2502 = vmatpush1.msra.mxu1 %v2358_v11  ;;  %v5794_v2 = vld [vmem:[#allocation10 + $0x130] sm:$0xff]  ;;  %v5798_v11 = vld [vmem:[#allocation10 + $0x108] sm:$0xff] }
 0x753   :  { %2426 = vmatprep.subr.mxu0 %v2353_v46  ;;  %2503 = vmatprep.subr.mxu1 %v2355_v9  ;;  %v5800_v46 = vld [vmem:[#allocation10 + $0x118] sm:$0xff]  ;;  %v5804_v9 = vld [vmem:[#allocation10 + $0x100] sm:$0xff] }
 0x754   :  { %2427 = vmatpush1.msra.mxu0 %v2352_v3  ;;  %2504 = vmatpush1.msra.mxu1 %v2354_v32  ;;  %v5806_v3 = vld [vmem:[#allocation10 + $0x110] sm:$0xff]  ;;  %v5810_v32 = vld [vmem:[#allocation10 + $0xe8] sm:$0xff] }
 0x755   :  { %2428 = vmatprep.subr.mxu0 %v2349_v34  ;;  %2505 = vmatprep.subr.mxu1 %v2351_v36  ;;  %v5812_v34 = vld [vmem:[#allocation10 + $0xf8] sm:$0xff]  ;;  %v5816_v36 = vld [vmem:[#allocation10 + $0xe0] sm:$0xff] }
 0x756   :  { %2429 = vmatpush1.msra.mxu0 %v2348_v40  ;;  %2506 = vmatpush1.msra.mxu1 %v2350_v42  ;;  %v5818_v40 = vld [vmem:[#allocation10 + $0xf0] sm:$0xff]  ;;  %v5822_v42 = vld [vmem:[#allocation10 + $0xc8] sm:$0xff] }
 0x757   :  { %2430 = vmatprep.subr.mxu0 %v2345_v25  ;;  %2507 = vmatprep.subr.mxu1 %v2347_v27  ;;  %v5824_v25 = vld [vmem:[#allocation10 + $0xd8] sm:$0xff]  ;;  %v5828_v27 = vld [vmem:[#allocation10 + $0xc0] sm:$0xff] }
 0x758   :  { %2431 = vmatpush1.msra.mxu0 %v2344_v31  ;;  %2508 = vmatpush1.msra.mxu1 %v2346_v33  ;;  %v5830_v31 = vld [vmem:[#allocation10 + $0xd0] sm:$0xff]  ;;  %v5832_v33 = vld [vmem:[#allocation10 + $0xa8] sm:$0xff] }
 0x759   :  { %2432 = vmatprep.subr.mxu0 %v2341_v35  ;;  %2509 = vmatprep.subr.mxu1 %v2343_v37  ;;  %v5836_v35 = vld [vmem:[#allocation10 + $0xb8] sm:$0xff]  ;;  %v5838_v37 = vld [vmem:[#allocation10 + $0xa0] sm:$0xff] }
 0x75a   :  { %2433 = vmatpush1.msra.mxu0 %v2340_v18  ;;  %2510 = vmatpush1.msra.mxu1 %v2342_v39  ;;  %v5840_v18 = vld [vmem:[#allocation10 + $0xb0] sm:$0xff]  ;;  %v5844_v39 = vld [vmem:[#allocation10 + $0x88] sm:$0xff] }
 0x75b   :  { %2434 = vmatprep.subr.mxu0 %v2337_v44  ;;  %2511 = vmatprep.subr.mxu1 %v2339_v41  ;;  %6862 = vst [vmem:[#allocation30_spill] sm:$0xff] %v5840_v18  ;;  %6863 = vst [vmem:[#allocation28_spill] sm:$0xff] %v5844_v39  ;;  %v5846_v44 = vld [vmem:[#allocation10 + $0x98] sm:$0xff]  ;;  %v5848_v41 = vld [vmem:[#allocation10 + $0x80] sm:$0xff] }
 0x75c   :  { %2435 = vmatpush1.msra.mxu0 %v2336_v43  ;;  %2512 = vmatpush1.msra.mxu1 %v2338_v60  ;;  %6864 = vst [vmem:[#allocation19_spill] sm:$0xff] %v5846_v44  ;;  %6865 = vst [vmem:[#allocation21_spill] sm:$0xff] %v5848_v41  ;;  %v5852_v43 = vld [vmem:[#allocation10 + $0x90] sm:$0xff]  ;;  %v5854_v60 = vld [vmem:[#allocation10 + $0x68] sm:$0xff] }
 0x75d   :  { %2436 = vmatprep.subr.mxu0 %v2333_v47  ;;  %2513 = vmatprep.subr.mxu1 %v2335_v49  ;;  %6866 = vst [vmem:[#allocation31_spill] sm:$0xff] %v5852_v43  ;;  %6867 = vst [vmem:[#allocation22_spill] sm:$0xff] %v5854_v60  ;;  %v5856_v47 = vld [vmem:[#allocation10 + $0x78] sm:$0xff]  ;;  %v5860_v49 = vld [vmem:[#allocation10 + $0x60] sm:$0xff] }
 0x75e   :  { %2437 = vmatpush1.msra.mxu0 %v2332_v21  ;;  %2514 = vmatpush1.msra.mxu1 %v2334_v17  ;;  %6868 = vst [vmem:[#allocation32_spill] sm:$0xff] %v5856_v47  ;;  %6869 = vst [vmem:[#allocation23_spill] sm:$0xff] %v5860_v49  ;;  %v5862_v21 = vld [vmem:[#allocation10 + $0x70] sm:$0xff]  ;;  %v5866_v17 = vld [vmem:[#allocation10 + $0x48] sm:$0xff] }
 0x75f   :  { %2438 = vmatprep.subr.mxu0 %v2329_v19  ;;  %2515 = vmatprep.subr.mxu1 %v2331_v22  ;;  %6870 = vst [vmem:[#allocation33_spill] sm:$0xff] %v5862_v21  ;;  %6871 = vst [vmem:[#allocation24_spill] sm:$0xff] %v5866_v17  ;;  %v5868_v19 = vld [vmem:[#allocation10 + $0x58] sm:$0xff]  ;;  %v5872_v22 = vld [vmem:[#allocation10 + $0x40] sm:$0xff] }
 0x760   :  { %2439 = vmatpush1.msra.mxu0 %v2328_v24  ;;  %2516 = vmatpush1.msra.mxu1 %v2330_v26  ;;  %6872 = vst [vmem:[#allocation34_spill] sm:$0xff] %v5868_v19  ;;  %6873 = vst [vmem:[#allocation25_spill] sm:$0xff] %v5872_v22  ;;  %v5874_v24 = vld [vmem:[#allocation10 + $0x50] sm:$0xff]  ;;  %v5880_v26 = vld [vmem:[#allocation10 + $0x28] sm:$0xff] }
 0x761   :  { %2440 = vmatprep.subr.mxu0 %v2325_v51  ;;  %2517 = vmatprep.subr.mxu1 %v2327_v59  ;;  %6874 = vst [vmem:[#allocation35_spill] sm:$0xff] %v5874_v24  ;;  %6875 = vst [vmem:[#allocation26_spill] sm:$0xff] %v5880_v26  ;;  %v5882_v51 = vld [vmem:[#allocation10 + $0x38] sm:$0xff]  ;;  %v5884_v59 = vld [vmem:[#allocation10 + $0x20] sm:$0xff] }
 0x762   :  { %2441 = vmatpush1.msra.mxu0 %v2324_v13  ;;  %2474 = vmatprep.mubr.f32.mxu0 %v6858_v45  ;;  %6876 = vst [vmem:[#allocation36_spill] sm:$0xff] %v5882_v51  ;;  %6877 = vst [vmem:[#allocation27_spill] sm:$0xff] %v5884_v59  ;;  %v5888_v13 = vld [vmem:[#allocation10 + $0x30] sm:$0xff] }
 0x763   :  { %2518 = vmatpush1.msra.mxu1 %v2326_v56  ;;  %2551 = vmatprep.mubr.f32.mxu1 %v6858_v45  ;;  %6878 = vst [vmem:[#allocation37_spill] sm:$0xff] %v5888_v13  ;;  %v5890_v56 = vld [vmem:[#allocation10 + $0x8] sm:$0xff] }
 0x764   :  { %2475 = vmatmul.mubr.f32.vlgmr.msra.gmra.mxu0 %v2322_v52  ;;  %2552 = vmatmul.mubr.f32.vlgmr.msra.gmra.mxu1 %v2322_v52  ;;  %6879 = vst [vmem:[#allocation38_spill] sm:$0xff] %v5890_v56  ;;  %v5892_v52 = vld [vmem:[#allocation10 + $0x18] sm:$0xff] }
 0x765   :  { %2480 = vmatprep.mubr.f32.mxu0 %v6858_v45  ;;  %2557 = vmatprep.mubr.f32.mxu1 %v6858_v45  ;;  %6880 = vst [vmem:[#allocation39_spill] sm:$0xff] %v5892_v52 }
 0x766   :  { %2640 = vmatprep.subr.mxu0 %v5714_v54  ;;  %2711 = vmatprep.subr.mxu1 %v5716_v50 }
 0x767   :  { %2641 = vmatpush1.msra.mxu0 %v5720_v4  ;;  %2712 = vmatpush1.msra.mxu1 %v5722_v29 }
 0x768   :  { %2642 = vmatprep.subr.mxu0 %v5726_v6  ;;  %2713 = vmatprep.subr.mxu1 %v5728_v57 }
 0x769   :  { %2643 = vmatpush1.msra.mxu0 %v5732_v8  ;;  %2714 = vmatpush1.msra.mxu1 %v5734_v58 }
 0x76a   :  { %2644 = vmatprep.subr.mxu0 %v5738_v10  ;;  %2715 = vmatprep.subr.mxu1 %v5740_v0 }
 0x76b   :  { %2645 = vmatpush1.msra.mxu0 %v5744_v15  ;;  %2716 = vmatpush1.msra.mxu1 %v5746_v12 }
 0x76c   :  { %2646 = vmatprep.subr.mxu0 %v5750_v38  ;;  %2717 = vmatprep.subr.mxu1 %v5752_v14 }
 0x76d   :  { %2647 = vmatpush1.msra.mxu0 %v5756_v55  ;;  %2718 = vmatpush1.msra.mxu1 %v5758_v53 }
 0x76e   :  { %2648 = vmatprep.subr.mxu0 %v5762_v30  ;;  %2719 = vmatprep.subr.mxu1 %v5764_v16 }
 0x76f   :  { %2649 = vmatpush1.msra.mxu0 %v5768_v23  ;;  %2720 = vmatpush1.msra.mxu1 %v5770_v1 }
 0x770   :  { %2650 = vmatprep.subr.mxu0 %v5774_v7  ;;  %2721 = vmatprep.subr.mxu1 %v5776_v61 }
 0x771   :  { %2651 = vmatpush1.msra.mxu0 %v5780_v48  ;;  %2722 = vmatpush1.msra.mxu1 %v5782_v20 }
 0x772   :  { %2652 = vmatprep.subr.mxu0 %v5786_v5  ;;  %2723 = vmatprep.subr.mxu1 %v5788_v62 }
 0x773   :  { %2653 = vmatpush1.msra.mxu0 %v5792_v63  ;;  %2724 = vmatpush1.msra.mxu1 %v5794_v2 }
 0x774   :  { %2654 = vmatprep.subr.mxu0 %v5798_v11  ;;  %2725 = vmatprep.subr.mxu1 %v5800_v46 }
 0x775   :  { %2655 = vmatpush1.msra.mxu0 %v5804_v9  ;;  %2726 = vmatpush1.msra.mxu1 %v5806_v3 }
 0x776   :  { %2656 = vmatprep.subr.mxu0 %v5810_v32  ;;  %2727 = vmatprep.subr.mxu1 %v5812_v34 }
 0x777   :  { %2657 = vmatpush1.msra.mxu0 %v5816_v36  ;;  %2728 = vmatpush1.msra.mxu1 %v5818_v40 }
 0x778   :  { %2658 = vmatprep.subr.mxu0 %v5822_v42  ;;  %2729 = vmatprep.subr.mxu1 %v5824_v25 }
 0x779   :  { %2659 = vmatpush1.msra.mxu0 %v5828_v27  ;;  %2730 = vmatpush1.msra.mxu1 %v5830_v31 }
 0x77a   :  { %2660 = vmatprep.subr.mxu0 %v5832_v33  ;;  %2731 = vmatprep.subr.mxu1 %v5836_v35 }
 0x77b   :  { %2661 = vmatpush1.msra.mxu0 %v5838_v37  ;;  %2732 = vmatpush1.msra.mxu1 %v5840_v18 }
 0x77c   :  { %2662 = vmatprep.subr.mxu0 %v5844_v39  ;;  %2733 = vmatprep.subr.mxu1 %v5846_v44 }
 0x77d   :  { %2663 = vmatpush1.msra.mxu0 %v5848_v41  ;;  %2734 = vmatpush1.msra.mxu1 %v5852_v43 }
 0x77e   :  { %2664 = vmatprep.subr.mxu0 %v5854_v60  ;;  %2735 = vmatprep.subr.mxu1 %v5856_v47 }
 0x77f   :  { %2665 = vmatpush1.msra.mxu0 %v5860_v49  ;;  %2736 = vmatpush1.msra.mxu1 %v5862_v21 }
 0x780   :  { %2666 = vmatprep.subr.mxu0 %v5866_v17  ;;  %2737 = vmatprep.subr.mxu1 %v5868_v19  ;;  %v5896_v19 = vld [vmem:[#allocation10] sm:$0xff]  ;;  %v5898_v17 = vld [vmem:[#allocation10 + $0x10] sm:$0xff] }
 0x781   :  { %2667 = vmatpush1.msra.mxu0 %v5872_v22  ;;  %2738 = vmatpush1.msra.mxu1 %v5874_v24  ;;  %6881 = vst [vmem:[#allocation40_spill] sm:$0xff] %v5896_v19  ;;  %6882 = vst [vmem:[#allocation41_spill] sm:$0xff] %v5898_v17  ;;  %v2065_v24 = vld [vmem:[#allocation2 + $0x8] sm:$0xc0] }
 0x782   :  { %2668 = vmatprep.subr.mxu0 %v5880_v26  ;;  %2739 = vmatprep.subr.mxu1 %v5882_v51 }
 0x783   :  { %2669 = vmatpush1.msra.mxu0 %v5884_v59  ;;  %2740 = vmatpush1.msra.mxu1 %v5888_v13  ;;  %v2066_v13 = vld [vmem:[#allocation2 + $0x20] sm:$0xc0] }
 0x784   :  { %2670 = vmatprep.subr.mxu0 %v5890_v56  ;;  %2741 = vmatprep.subr.mxu1 %v5892_v52 }
 0x785   :  { %2671 = vmatpush1.msra.mxu0 %v5896_v19  ;;  %2742 = vmatpush1.msra.mxu1 %v5898_v17  ;;  %v2068_v17 = vld [vmem:[#allocation2 + $0x38] sm:$0xc0] }
 0x786   :  { %2814 = vmatprep.subr.mxu0 %v5714_v54  ;;  %2885 = vmatprep.subr.mxu1 %v5716_v50  ;;  %v2067_v50 = vld [vmem:[#allocation2 + $0x28] sm:$0xc0] }
 0x803   :  { %v2202_v51 = vpop.f32.mrf.mxu0  ;;  %v2273_v59 = vpop.f32.mrf.mxu1 }
 0x804   :  { %v2282_v26 = vrot.slane %v2202_v51, 2  ;;  %v2284_v54 = vrot.slane %v2273_v59, 2 }
 0x805   :  { %v2204_v22 = vpop.f32.mrf.mxu0  ;;  %v2275_v60 = vpop.f32.mrf.mxu1 }
 0x806   :  { %v2290_v21 = vadd.f32 %v2282_v26, %v2065_v24  ;;  %v2283_v49 = vrot.slane %v2204_v22, 2  ;;  %v2285_v19 = vrot.slane %v2275_v60, 2  ;;  %v2292_v51 = vadd.f32 %v2284_v54, %v2067_v50 }
 0x808   :  { %v4276_v47 = vmul.f32 -1.442695, %v2290_v21  ;;  %v2291_v56 = vadd.f32 %v2283_v49, %v2066_v13  ;;  %v2293_v43 = vadd.f32 %v2285_v19, %v2068_v17  ;;  %v6883_v49 = vld [vmem:[#allocation18_spill] sm:$0xff] }
 0x809   :  { %v6884_v60 = vsub.s32 0, %v6883_v49  ;;  %v6886_v54 = vsub.s32 1, %v6883_v49 }
 0x80a   :  { %4480 = vpow2.f32 %v4276_v47  ;;  %v4277_v52 = vmul.f32 -1.442695, %v2291_v56  ;;  %v4278_v41 = vmul.f32 -1.442695, %v2293_v43  ;;  %v2388_v47 = vld [vmem:[%s6585_s6] sm:$0xf] }
 0x80b   :  { %v5913_v21 = vrot.slane %v2388_v47, %v6884_v60  ;;  %v6885_v43 = vsub.s32 2, %v6883_v49  ;;  %v5921_v50 = vrot.slane %v2388_v47, %v6886_v54 }
 0x80c   :  { %4482 = vpow2.f32 %v4277_v52 }
 0x80d   :  { %4484 = vpow2.f32 %v4278_v41  ;;  %v5917_v17 = vrot.slane %v2388_v47, %v6885_v43 }
 0x817   :  { %v4481_v44 = vpop.eup %4480 }
 0x818   :  { %v2297_v39 = vadd.f32 1.0, %v4481_v44 }
 0x819   :  { %v4483_v18 = vpop.eup %4482 }
 0x81a   :  { %4486 = vrcp.f32 %v2297_v39  ;;  %v2303_v22 = vadd.f32 1.0, %v4483_v18  ;;  %v6887_v18 = vsub.s32 3, %v6883_v49  ;;  %v4485_v26 = vpop.eup %4484 }
 0x81b   :  { %4488 = vtanh.f32 %v2292_v51  ;;  %v2310_v60 = vadd.f32 1.0, %v4485_v26  ;;  %v6889_v26 = vld [vmem:[#allocation28_spill] sm:$0xff] }
 0x81c   :  { %4490 = vrcp.f32 %v2303_v22  ;;  %v5925_v39 = vrot.slane %v2388_v47, %v6887_v18  ;;  %v2314_v47 = vrot.slane %v5707_v28, 6  ;;  %v6888_v28 = vld [vmem:[#allocation30_spill] sm:$0xff] }
 0x81d   :  { %4492 = vrcp.f32 %v2310_v60  ;;  %v6898_v60 = vld [vmem:[#allocation34_spill] sm:$0xff] }
 0x824   :  { %v2476_v44 = vpop.f32.mrf.mxu0  ;;  %v2553_v41 = vpop.f32.mrf.mxu1 }
 0x825   :  { %v2477_v19 = vadd.f32 %v2476_v44, %v5913_v21  ;;  %v2554_v24 = vadd.f32 %v2553_v41, %v5917_v17 }
 0x826   :  { %v2478_v59 = vpop.f32.mrf.mxu0  ;;  %v2555_v13 = vpop.f32.mrf.mxu1 }
 0x827   :  { %v4487_v56 = vpop.eup %4486  ;;  %2564 = vst [vmem:[#allocation2 + $0x30] sm:$0xff] %v2477_v19  ;;  %2566 = vst [vmem:[#allocation2 + $0x18] sm:$0xff] %v2554_v24  ;;  %v2479_v52 = vadd.f32 %v2478_v59, %v5921_v50  ;;  %v2556_v51 = vadd.f32 %v2555_v13, %v5925_v39  ;;  %v6890_v59 = vld [vmem:[#allocation19_spill] sm:$0xff]  ;;  %v6891_v13 = vld [vmem:[#allocation21_spill] sm:$0xff] }
 0x828   :  { %v4489_v22 = vpop.eup %4488 }
 0x829   :  { %v4491_v49 = vpop.eup %4490  ;;  %2565 = vst [vmem:[#allocation2] sm:$0xff] %v2479_v52  ;;  %2567 = vst [vmem:[#allocation2 + $0x10] sm:$0xff] %v2556_v51  ;;  %v2317_v43 = vmul.f32 %v4489_v22, %v4487_v56  ;;  %v6892_v56 = vld [vmem:[#allocation31_spill] sm:$0xff]  ;;  %v6893_v52 = vld [vmem:[#allocation22_spill] sm:$0xff] }
 0x82a   :  { %v2316_v54 = vmul.f32 %v4491_v49, %v2314_v47  ;;  %v4493_v44 = vpop.eup %4492  ;;  %v6894_v51 = vld [vmem:[#allocation32_spill] sm:$0xff]  ;;  %v6895_v22 = vld [vmem:[#allocation23_spill] sm:$0xff]  ;;  %v6896_v47 = vld [vmem:[#allocation33_spill] sm:$0xff] }
 0x82b   :  { %v6897_v49 = vld [vmem:[#allocation24_spill] sm:$0xff] }
 0x82c   :  { %v2318_v18 = vadd.f32 %v2317_v43, %v2316_v54  ;;  %v6899_v43 = vld [vmem:[#allocation25_spill] sm:$0xff]  ;;  %v6900_v54 = vld [vmem:[#allocation35_spill] sm:$0xff] }
 0x82e   :  { %4494 = vtanh.f32 %v2318_v18  ;;  %v6901_v18 = vld [vmem:[#allocation26_spill] sm:$0xff] }
 0x83b   :  { %v4495_v41 = vpop.eup %4494 }
 0x83c   :  { %v2320_v19 = vmul.f32 %v4495_v41, %v4493_v44  ;;  %v6902_v44 = vld [vmem:[#allocation36_spill] sm:$0xff]  ;;  %v6903_v41 = vld [vmem:[#allocation27_spill] sm:$0xff] }
 0x83e   :  { %2321 = vst [vmem:[#allocation3 + $0x8] sm:$0xc0] %v2320_v19  ;;  %v6904_v19 = vld [vmem:[#allocation37_spill] sm:$0xff] }
 0x845   :  { %v2323_v24 = vld [vmem:[#allocation3 + $0x8] sm:$0xff] }
 0x846   :  { %2481 = vmatmul.mubr.f32.gmra.mxu0 %v2323_v24  ;;  %2558 = vmatmul.mubr.f32.gmra.mxu1 %v2323_v24  ;;  %v6905_v24 = vld [vmem:[#allocation38_spill] sm:$0xff] }
 0x847   :  { %2704 = vmatprep.mubr.f32.mxu0 %v6858_v45  ;;  %2775 = vmatprep.mubr.f32.mxu1 %v6858_v45 }
 0x84a   :  { %2705 = vmatmul.mubr.f32.vlgmr.msra.gmra.mxu0 %v6858_v45  ;;  %2776 = vmatmul.mubr.f32.vlgmr.msra.gmra.mxu1 %v6858_v45 }
 0x84b   :  { %2815 = vmatpush1.msra.mxu0 %v5720_v4  ;;  %2886 = vmatpush1.msra.mxu1 %v5722_v29 }
 0x84c   :  { %2816 = vmatprep.subr.mxu0 %v5726_v6  ;;  %2887 = vmatprep.subr.mxu1 %v5728_v57 }
 0x84d   :  { %2817 = vmatpush1.msra.mxu0 %v5732_v8  ;;  %2888 = vmatpush1.msra.mxu1 %v5734_v58 }
 0x84e   :  { %2818 = vmatprep.subr.mxu0 %v5738_v10  ;;  %2889 = vmatprep.subr.mxu1 %v5740_v0 }
 0x84f   :  { %2819 = vmatpush1.msra.mxu0 %v5744_v15  ;;  %2890 = vmatpush1.msra.mxu1 %v5746_v12 }
 0x850   :  { %2820 = vmatprep.subr.mxu0 %v5750_v38  ;;  %2891 = vmatprep.subr.mxu1 %v5752_v14 }
 0x851   :  { %2821 = vmatpush1.msra.mxu0 %v5756_v55  ;;  %2892 = vmatpush1.msra.mxu1 %v5758_v53 }
 0x852   :  { %2822 = vmatprep.subr.mxu0 %v5762_v30  ;;  %2893 = vmatprep.subr.mxu1 %v5764_v16 }
 0x853   :  { %2823 = vmatpush1.msra.mxu0 %v5768_v23  ;;  %2894 = vmatpush1.msra.mxu1 %v5770_v1 }
 0x854   :  { %2824 = vmatprep.subr.mxu0 %v5774_v7  ;;  %2895 = vmatprep.subr.mxu1 %v5776_v61 }
 0x855   :  { %2825 = vmatpush1.msra.mxu0 %v5780_v48  ;;  %2896 = vmatpush1.msra.mxu1 %v5782_v20 }
 0x856   :  { %2826 = vmatprep.subr.mxu0 %v5786_v5  ;;  %2897 = vmatprep.subr.mxu1 %v5788_v62 }
 0x857   :  { %2827 = vmatpush1.msra.mxu0 %v5792_v63  ;;  %2898 = vmatpush1.msra.mxu1 %v5794_v2 }
 0x858   :  { %2828 = vmatprep.subr.mxu0 %v5798_v11  ;;  %2899 = vmatprep.subr.mxu1 %v5800_v46 }
 0x859   :  { %2829 = vmatpush1.msra.mxu0 %v5804_v9  ;;  %2900 = vmatpush1.msra.mxu1 %v5806_v3 }
 0x85a   :  { %2830 = vmatprep.subr.mxu0 %v5810_v32  ;;  %2901 = vmatprep.subr.mxu1 %v5812_v34 }
 0x85b   :  { %2831 = vmatpush1.msra.mxu0 %v5816_v36  ;;  %2902 = vmatpush1.msra.mxu1 %v5818_v40 }
 0x85c   :  { %2832 = vmatprep.subr.mxu0 %v5822_v42  ;;  %2903 = vmatprep.subr.mxu1 %v5824_v25 }
 0x85d   :  { %2833 = vmatpush1.msra.mxu0 %v5828_v27  ;;  %2904 = vmatpush1.msra.mxu1 %v5830_v31 }
 0x85e   :  { %2834 = vmatprep.subr.mxu0 %v5832_v33  ;;  %2905 = vmatprep.subr.mxu1 %v5836_v35 }
 0x85f   :  { %2835 = vmatpush1.msra.mxu0 %v5838_v37  ;;  %2906 = vmatpush1.msra.mxu1 %v6888_v28 }
 0x860   :  { %2836 = vmatprep.subr.mxu0 %v6889_v26  ;;  %2907 = vmatprep.subr.mxu1 %v6890_v59 }
 0x861   :  { %2837 = vmatpush1.msra.mxu0 %v6891_v13  ;;  %2908 = vmatpush1.msra.mxu1 %v6892_v56 }
 0x862   :  { %2838 = vmatprep.subr.mxu0 %v6893_v52  ;;  %2909 = vmatprep.subr.mxu1 %v6894_v51 }
 0x863   :  { %2839 = vmatpush1.msra.mxu0 %v6895_v22  ;;  %2910 = vmatpush1.msra.mxu1 %v6896_v47  ;;  %v6906_v22 = vld [vmem:[#allocation39_spill] sm:$0xff]  ;;  %v6907_v47 = vld [vmem:[#allocation40_spill] sm:$0xff] }
 0x864   :  { %2840 = vmatprep.subr.mxu0 %v6897_v49  ;;  %2911 = vmatprep.subr.mxu1 %v6898_v60  ;;  %v6908_v60 = vld [vmem:[#allocation41_spill] sm:$0xff] }
 0x865   :  { %2841 = vmatpush1.msra.mxu0 %v6899_v43  ;;  %2912 = vmatpush1.msra.mxu1 %v6900_v54  ;;  %v6909_v54 = vld [vmem:[#allocation29_spill] sm:$0xff] }
 0x866   :  { %2842 = vmatprep.subr.mxu0 %v6901_v18  ;;  %2913 = vmatprep.subr.mxu1 %v6902_v44  ;;  %v6910_v18 = vld [vmem:[#allocation20_spill] sm:$0xff]  ;;  %v2572_v49 = vld [vmem:[#allocation2 + $0x30] sm:$0x3] }
 0x867   :  { %2843 = vmatpush1.msra.mxu0 %v6903_v41  ;;  %2914 = vmatpush1.msra.mxu1 %v6904_v19 }
 0x868   :  { %2844 = vmatprep.subr.mxu0 %v6905_v24  ;;  %2915 = vmatprep.subr.mxu1 %v6906_v22 }
 0x869   :  { %2845 = vmatpush1.msra.mxu0 %v6907_v47  ;;  %2878 = vmatprep.mubr.f32.mxu0 %v6858_v45 }
 0x86a   :  { %2916 = vmatpush1.msra.mxu1 %v6908_v60  ;;  %2949 = vmatprep.mubr.f32.mxu1 %v6858_v45 }
 0x86b   :  { %3006 = vmatprep.subr.mxu0 %v6909_v54  ;;  %3077 = vmatprep.subr.mxu1 %v6910_v18  ;;  %v2573_v18 = vld [vmem:[#allocation2] sm:$0x3] }
 0x906   :  { %v2482_v44 = vpop.f32.mrf.mxu0  ;;  %v2559_v41 = vpop.f32.mrf.mxu1 }
 0x907   :  { %v2483_v19 = vadd.f32 %v2482_v44, %v5913_v21  ;;  %v2560_v24 = vadd.f32 %v2559_v41, %v5917_v17  ;;  %v2575_v41 = vld [vmem:[#allocation2 + $0x10] sm:$0x3] }
 0x908   :  { %v2484_v43 = vpop.f32.mrf.mxu0  ;;  %v2561_v22 = vpop.f32.mrf.mxu1 }
 0x909   :  { %2568 = vst [vmem:[#allocation2 + $0x8] sm:$0xff] %v2483_v19  ;;  %2570 = vst [vmem:[#allocation2 + $0x28] sm:$0xff] %v2560_v24  ;;  %v2485_v47 = vadd.f32 %v2484_v43, %v5921_v50  ;;  %v2562_v60 = vadd.f32 %v2561_v22, %v5925_v39  ;;  %v2574_v50 = vld [vmem:[#allocation2 + $0x18] sm:$0x3] }
 0x90a   :  { %v2706_v45 = vpop.f32.mrf.mxu0  ;;  %v2777_v21 = vpop.f32.mrf.mxu1 }
 0x90b   :  { %2569 = vst [vmem:[#allocation2 + $0x20] sm:$0xff] %v2485_v47  ;;  %2571 = vst [vmem:[#allocation2 + $0x38] sm:$0xff] %v2562_v60  ;;  %v2782_v54 = vadd.f32 %v2706_v45, %v2572_v49  ;;  %v2784_v39 = vadd.f32 %v2777_v21, %v2574_v50  ;;  %v6915_v50 = vld [vmem:[#allocation23_spill] sm:$0xff] }
 0x90c   :  { %v2708_v51 = vpop.f32.mrf.mxu0  ;;  %v2779_v44 = vpop.f32.mrf.mxu1 }
 0x90d   :  { %v4279_v52 = vmul.f32 -1.442695, %v2782_v54  ;;  %v2783_v56 = vadd.f32 %v2708_v51, %v2573_v18  ;;  %v2785_v19 = vadd.f32 %v2779_v44, %v2575_v41  ;;  %v6912_v41 = vld [vmem:[#allocation31_spill] sm:$0xff] }
 0x90f   :  { %4496 = vpow2.f32 %v4279_v52  ;;  %v4280_v17 = vmul.f32 -1.442695, %v2783_v56  ;;  %v4281_v24 = vmul.f32 -1.442695, %v2785_v19  ;;  %v6913_v19 = vld [vmem:[#allocation22_spill] sm:$0xff] }
 0x911   :  { %4498 = vpow2.f32 %v4280_v17 }
 0x912   :  { %4500 = vpow2.f32 %v4281_v24  ;;  %v6914_v24 = vld [vmem:[#allocation32_spill] sm:$0xff] }
 0x91c   :  { %v4497_v43 = vpop.eup %4496 }
 0x91d   :  { %v2789_v22 = vadd.f32 1.0, %v4497_v43  ;;  %v6916_v43 = vld [vmem:[#allocation33_spill] sm:$0xff] }
 0x91e   :  { %v4499_v13 = vpop.eup %4498 }
 0x91f   :  { %4502 = vrcp.f32 %v2789_v22  ;;  %v2795_v45 = vadd.f32 1.0, %v4499_v13  ;;  %v4501_v47 = vpop.eup %4500  ;;  %v6911_v13 = vld [vmem:[#allocation21_spill] sm:$0xff]  ;;  %v6918_v22 = vld [vmem:[#allocation34_spill] sm:$0xff] }
 0x920   :  { %4504 = vtanh.f32 %v2784_v39  ;;  %v2802_v56 = vadd.f32 1.0, %v4501_v47  ;;  %v6917_v39 = vld [vmem:[#allocation24_spill] sm:$0xff]  ;;  %v6920_v47 = vld [vmem:[#allocation35_spill] sm:$0xff] }
 0x921   :  { %4506 = vrcp.f32 %v2795_v45  ;;  %v6919_v45 = vld [vmem:[#allocation25_spill] sm:$0xff] }
 0x922   :  { %4508 = vrcp.f32 %v2802_v56  ;;  %v6924_v56 = vld [vmem:[#allocation37_spill] sm:$0xff] }
 0x92c   :  { %v4503_v51 = vpop.eup %4502 }
 0x92d   :  { %v4505_v52 = vpop.eup %4504 }
 0x92e   :  { %v4507_v49 = vpop.eup %4506  ;;  %v2806_v54 = vmul.f32 %v4505_v52, %v4503_v51  ;;  %v6921_v51 = vld [vmem:[#allocation26_spill] sm:$0xff]  ;;  %v6922_v52 = vld [vmem:[#allocation36_spill] sm:$0xff] }
 0x92f   :  { %v2805_v60 = vmul.f32 0.0, %v4507_v49  ;;  %v4509_v21 = vpop.eup %4508  ;;  %v6923_v49 = vld [vmem:[#allocation27_spill] sm:$0xff] }
 0x931   :  { %v6006_v18 = vadd.f32 %v2806_v54, %v2805_v60  ;;  %v6925_v60 = vld [vmem:[#allocation38_spill] sm:$0xff]  ;;  %v6926_v54 = vld [vmem:[#allocation39_spill] sm:$0xff] }
 0x933   :  { %4510 = vtanh.f32 %v6006_v18 }
 0x940   :  { %v4511_v17 = vpop.eup %4510 }
 0x941   :  { %v2809_v44 = vmul.f32 %v4511_v17, %v4509_v21  ;;  %v6927_v21 = vld [vmem:[#allocation40_spill] sm:$0xff]  ;;  %v6928_v17 = vmov 0.0  }
 0x943   :  { %2879 = vmatmul.mubr.f32.vlgmr.msra.gmra.mxu0 %v2809_v44  ;;  %2950 = vmatmul.mubr.f32.vlgmr.msra.gmra.mxu1 %v2809_v44  ;;  %v6929_v44 = vld [vmem:[#allocation41_spill] sm:$0xff] }
 0x944   :  { %3007 = vmatpush1.msra.mxu0 %v5720_v4  ;;  %3078 = vmatpush1.msra.mxu1 %v5722_v29 }
 0x945   :  { %3008 = vmatprep.subr.mxu0 %v5726_v6  ;;  %3079 = vmatprep.subr.mxu1 %v5728_v57 }
 0x946   :  { %3009 = vmatpush1.msra.mxu0 %v5732_v8  ;;  %3080 = vmatpush1.msra.mxu1 %v5734_v58 }
 0x947   :  { %3010 = vmatprep.subr.mxu0 %v5738_v10  ;;  %3081 = vmatprep.subr.mxu1 %v5740_v0 }
 0x948   :  { %3011 = vmatpush1.msra.mxu0 %v5744_v15  ;;  %3082 = vmatpush1.msra.mxu1 %v5746_v12 }
 0x949   :  { %3012 = vmatprep.subr.mxu0 %v5750_v38  ;;  %3083 = vmatprep.subr.mxu1 %v5752_v14 }
 0x94a   :  { %3013 = vmatpush1.msra.mxu0 %v5756_v55  ;;  %3084 = vmatpush1.msra.mxu1 %v5758_v53 }
 0x94b   :  { %3014 = vmatprep.subr.mxu0 %v5762_v30  ;;  %3085 = vmatprep.subr.mxu1 %v5764_v16 }
 0x94c   :  { %3015 = vmatpush1.msra.mxu0 %v5768_v23  ;;  %3086 = vmatpush1.msra.mxu1 %v5770_v1 }
 0x94d   :  { %3016 = vmatprep.subr.mxu0 %v5774_v7  ;;  %3087 = vmatprep.subr.mxu1 %v5776_v61 }
 0x94e   :  { %3017 = vmatpush1.msra.mxu0 %v5780_v48  ;;  %3088 = vmatpush1.msra.mxu1 %v5782_v20 }
 0x94f   :  { %3018 = vmatprep.subr.mxu0 %v5786_v5  ;;  %3089 = vmatprep.subr.mxu1 %v5788_v62 }
 0x950   :  { %3019 = vmatpush1.msra.mxu0 %v5792_v63  ;;  %3090 = vmatpush1.msra.mxu1 %v5794_v2 }
 0x951   :  { %3020 = vmatprep.subr.mxu0 %v5798_v11  ;;  %3091 = vmatprep.subr.mxu1 %v5800_v46 }
 0x952   :  { %3021 = vmatpush1.msra.mxu0 %v5804_v9  ;;  %3092 = vmatpush1.msra.mxu1 %v5806_v3 }
 0x953   :  { %3022 = vmatprep.subr.mxu0 %v5810_v32  ;;  %3093 = vmatprep.subr.mxu1 %v5812_v34 }
 0x954   :  { %3023 = vmatpush1.msra.mxu0 %v5816_v36  ;;  %3094 = vmatpush1.msra.mxu1 %v5818_v40 }
 0x955   :  { %3024 = vmatprep.subr.mxu0 %v5822_v42  ;;  %3095 = vmatprep.subr.mxu1 %v5824_v25 }
 0x956   :  { %3025 = vmatpush1.msra.mxu0 %v5828_v27  ;;  %3096 = vmatpush1.msra.mxu1 %v5830_v31 }
 0x957   :  { %3026 = vmatprep.subr.mxu0 %v5832_v33  ;;  %3097 = vmatprep.subr.mxu1 %v5836_v35 }
 0x958   :  { %3027 = vmatpush1.msra.mxu0 %v5838_v37  ;;  %3098 = vmatpush1.msra.mxu1 %v6888_v28 }
 0x959   :  { %3028 = vmatprep.subr.mxu0 %v6889_v26  ;;  %3099 = vmatprep.subr.mxu1 %v6890_v59 }
 0x95a   :  { %3029 = vmatpush1.msra.mxu0 %v6911_v13  ;;  %3100 = vmatpush1.msra.mxu1 %v6912_v41 }
 0x95b   :  { %3030 = vmatprep.subr.mxu0 %v6913_v19  ;;  %3101 = vmatprep.subr.mxu1 %v6914_v24 }
 0x95c   :  { %3031 = vmatpush1.msra.mxu0 %v6915_v50  ;;  %3102 = vmatpush1.msra.mxu1 %v6916_v43 }
 0x95d   :  { %3032 = vmatprep.subr.mxu0 %v6917_v39  ;;  %3103 = vmatprep.subr.mxu1 %v6918_v22 }
 0x95e   :  { %3033 = vmatpush1.msra.mxu0 %v6919_v45  ;;  %3104 = vmatpush1.msra.mxu1 %v6920_v47  ;;  %v6930_v47 = vld [vmem:[#allocation29_spill] sm:$0xff]  ;;  %v2810_v45 = vld [vmem:[#allocation2 + $0x30] sm:$0xc] }
 0x95f   :  { %3034 = vmatprep.subr.mxu0 %v6921_v51  ;;  %3105 = vmatprep.subr.mxu1 %v6922_v52  ;;  %v6931_v51 = vld [vmem:[#allocation20_spill] sm:$0xff] }
 0x960   :  { %3035 = vmatpush1.msra.mxu0 %v6923_v49  ;;  %3106 = vmatpush1.msra.mxu1 %v6924_v56 }
 0x961   :  { %3036 = vmatprep.subr.mxu0 %v6925_v60  ;;  %3107 = vmatprep.subr.mxu1 %v6926_v54  ;;  %v2811_v54 = vld [vmem:[#allocation2] sm:$0xc] }
 0x962   :  { %3037 = vmatpush1.msra.mxu0 %v6927_v21  ;;  %3070 = vmatprep.mubr.f32.mxu0 %v6928_v17 }
 0x963   :  { %3108 = vmatpush1.msra.mxu1 %v6929_v44  ;;  %3141 = vmatprep.mubr.f32.mxu1 %v6928_v17  ;;  %v2813_v17 = vld [vmem:[#allocation2 + $0x10] sm:$0xc] }
 0x964   :  { %3198 = vmatprep.subr.mxu0 %v6930_v47  ;;  %3269 = vmatprep.subr.mxu1 %v6931_v51  ;;  %v2812_v51 = vld [vmem:[#allocation2 + $0x18] sm:$0xc] }
 0xa03   :  { %v2880_v52 = vpop.f32.mrf.mxu0  ;;  %v2951_v60 = vpop.f32.mrf.mxu1 }
 0xa04   :  { %v2960_v49 = vrot.slane %v2880_v52, 6  ;;  %v2962_v47 = vrot.slane %v2951_v60, 6 }
 0xa05   :  { %v2882_v56 = vpop.f32.mrf.mxu0  ;;  %v2953_v24 = vpop.f32.mrf.mxu1 }
 0xa06   :  { %v2968_v22 = vadd.f32 %v2960_v49, %v2810_v45  ;;  %v2961_v39 = vrot.slane %v2882_v56, 6  ;;  %v2963_v44 = vrot.slane %v2953_v24, 6  ;;  %v2970_v52 = vadd.f32 %v2962_v47, %v2812_v51 }
 0xa08   :  { %v4282_v43 = vmul.f32 -1.442695, %v2968_v22  ;;  %v2969_v21 = vadd.f32 %v2961_v39, %v2811_v54  ;;  %v2971_v19 = vadd.f32 %v2963_v44, %v2813_v17 }
 0xa0a   :  { %4512 = vpow2.f32 %v4282_v43  ;;  %v4283_v50 = vmul.f32 -1.442695, %v2969_v21  ;;  %v4284_v41 = vmul.f32 -1.442695, %v2971_v19  ;;  %v3000_v21 = vld [vmem:[#allocation2] sm:$0x30] }
 0xa0c   :  { %4514 = vpow2.f32 %v4283_v50  ;;  %v2992_v50 = vrot.slane %v6006_v18, 6 }
 0xa0d   :  { %4516 = vpow2.f32 %v4284_v41 }
 0xa17   :  { %v4513_v13 = vpop.eup %4512 }
 0xa18   :  { %v2975_v59 = vadd.f32 1.0, %v4513_v13 }
 0xa19   :  { %v4515_v26 = vpop.eup %4514 }
 0xa1a   :  { %4518 = vrcp.f32 %v2975_v59  ;;  %v2981_v45 = vadd.f32 1.0, %v4515_v26  ;;  %v4517_v39 = vpop.eup %4516 }
 0xa1b   :  { %4520 = vtanh.f32 %v2970_v52  ;;  %v2988_v49 = vadd.f32 1.0, %v4517_v39 }
 0xa1c   :  { %4522 = vrcp.f32 %v2981_v45 }
 0xa1d   :  { %4524 = vrcp.f32 %v2988_v49  ;;  %v3001_v49 = vld [vmem:[#allocation2 + $0x18] sm:$0x30] }
 0xa27   :  { %v4519_v43 = vpop.eup %4518 }
 0xa28   :  { %v4521_v22 = vpop.eup %4520 }
 0xa29   :  { %v4523_v24 = vpop.eup %4522  ;;  %v2995_v56 = vmul.f32 %v4521_v22, %v4519_v43  ;;  %v3002_v43 = vld [vmem:[#allocation2 + $0x10] sm:$0x30] }
 0xa2a   :  { %v2994_v60 = vmul.f32 %v4523_v24, %v2992_v50  ;;  %v4525_v13 = vpop.eup %4524 }
 0xa2c   :  { %v6076_v19 = vadd.f32 %v2995_v56, %v2994_v60 }
 0xa2e   :  { %4526 = vtanh.f32 %v6076_v19 }
 0xa3b   :  { %v4527_v41 = vpop.eup %4526 }
 0xa3c   :  { %v2998_v59 = vmul.f32 %v4527_v41, %v4525_v13 }
 0xa3e   :  { %v3004_v26 = vrot.slane %v2998_v59, 2 }
 0xa40   :  { %3071 = vmatmul.mubr.f32.vlgmr.msra.gmra.mxu0 %v3004_v26  ;;  %3142 = vmatmul.mubr.f32.vlgmr.msra.gmra.mxu1 %v3004_v26 }
 0xa41   :  { %3199 = vmatpush1.msra.mxu0 %v5720_v4  ;;  %3270 = vmatpush1.msra.mxu1 %v5722_v29  ;;  %v6932_v4 = vld [vmem:[#allocation28_spill] sm:$0xff]  ;;  %v6933_v29 = vld [vmem:[#allocation19_spill] sm:$0xff] }
 0xa42   :  { %3200 = vmatprep.subr.mxu0 %v5726_v6  ;;  %3271 = vmatprep.subr.mxu1 %v5728_v57  ;;  %v6934_v6 = vld [vmem:[#allocation21_spill] sm:$0xff]  ;;  %v6935_v57 = vld [vmem:[#allocation31_spill] sm:$0xff] }
 0xa43   :  { %3201 = vmatpush1.msra.mxu0 %v5732_v8  ;;  %3272 = vmatpush1.msra.mxu1 %v5734_v58  ;;  %v6936_v8 = vld [vmem:[#allocation22_spill] sm:$0xff]  ;;  %v6937_v58 = vld [vmem:[#allocation32_spill] sm:$0xff] }
 0xa44   :  { %3202 = vmatprep.subr.mxu0 %v5738_v10  ;;  %3273 = vmatprep.subr.mxu1 %v5740_v0  ;;  %v6938_v10 = vld [vmem:[#allocation23_spill] sm:$0xff]  ;;  %v6939_v0 = vld [vmem:[#allocation33_spill] sm:$0xff] }
 0xa45   :  { %3203 = vmatpush1.msra.mxu0 %v5744_v15  ;;  %3274 = vmatpush1.msra.mxu1 %v5746_v12  ;;  %v6940_v15 = vld [vmem:[#allocation24_spill] sm:$0xff]  ;;  %v6941_v12 = vld [vmem:[#allocation34_spill] sm:$0xff] }
 0xa46   :  { %3204 = vmatprep.subr.mxu0 %v5750_v38  ;;  %3275 = vmatprep.subr.mxu1 %v5752_v14  ;;  %v6942_v38 = vld [vmem:[#allocation25_spill] sm:$0xff]  ;;  %v6943_v14 = vld [vmem:[#allocation35_spill] sm:$0xff] }
 0xa47   :  { %3205 = vmatpush1.msra.mxu0 %v5756_v55  ;;  %3276 = vmatpush1.msra.mxu1 %v5758_v53  ;;  %v6944_v55 = vld [vmem:[#allocation26_spill] sm:$0xff]  ;;  %v6945_v53 = vld [vmem:[#allocation36_spill] sm:$0xff] }
 0xa48   :  { %3206 = vmatprep.subr.mxu0 %v5762_v30  ;;  %3277 = vmatprep.subr.mxu1 %v5764_v16  ;;  %v6946_v30 = vld [vmem:[#allocation27_spill] sm:$0xff]  ;;  %v6947_v16 = vld [vmem:[#allocation37_spill] sm:$0xff] }
 0xa49   :  { %3207 = vmatpush1.msra.mxu0 %v5768_v23  ;;  %3278 = vmatpush1.msra.mxu1 %v5770_v1  ;;  %v6948_v23 = vld [vmem:[#allocation38_spill] sm:$0xff]  ;;  %v6949_v1 = vld [vmem:[#allocation39_spill] sm:$0xff] }
 0xa4a   :  { %3208 = vmatprep.subr.mxu0 %v5774_v7  ;;  %3279 = vmatprep.subr.mxu1 %v5776_v61  ;;  %v6950_v7 = vld [vmem:[#allocation40_spill] sm:$0xff]  ;;  %v6951_v61 = vmov 0.0  }
 0xa4b   :  { %3209 = vmatpush1.msra.mxu0 %v5780_v48  ;;  %3280 = vmatpush1.msra.mxu1 %v5782_v20  ;;  %v6952_v48 = vld [vmem:[#allocation41_spill] sm:$0xff] }
 0xa4c   :  { %3210 = vmatprep.subr.mxu0 %v5786_v5  ;;  %3281 = vmatprep.subr.mxu1 %v5788_v62  ;;  %v6953_v20 = vld [vmem:[#allocation29_spill] sm:$0xff]  ;;  %v6954_v5 = vld [vmem:[#allocation20_spill] sm:$0xff] }
 0xa4d   :  { %3211 = vmatpush1.msra.mxu0 %v5792_v63  ;;  %3282 = vmatpush1.msra.mxu1 %v5794_v2  ;;  %v2999_v2 = vld [vmem:[#allocation2 + $0x30] sm:$0x30] }
 0xa4e   :  { %3212 = vmatprep.subr.mxu0 %v5798_v11  ;;  %3283 = vmatprep.subr.mxu1 %v5800_v46 }
 0xa4f   :  { %3213 = vmatpush1.msra.mxu0 %v5804_v9  ;;  %3284 = vmatpush1.msra.mxu1 %v5806_v3 }
 0xa50   :  { %3214 = vmatprep.subr.mxu0 %v5810_v32  ;;  %3285 = vmatprep.subr.mxu1 %v5812_v34 }
 0xa51   :  { %3215 = vmatpush1.msra.mxu0 %v5816_v36  ;;  %3286 = vmatpush1.msra.mxu1 %v5818_v40 }
 0xa52   :  { %3216 = vmatprep.subr.mxu0 %v5822_v42  ;;  %3287 = vmatprep.subr.mxu1 %v5824_v25 }
 0xa53   :  { %3217 = vmatpush1.msra.mxu0 %v5828_v27  ;;  %3288 = vmatpush1.msra.mxu1 %v5830_v31 }
 0xa54   :  { %3218 = vmatprep.subr.mxu0 %v5832_v33  ;;  %3289 = vmatprep.subr.mxu1 %v5836_v35 }
 0xa55   :  { %3219 = vmatpush1.msra.mxu0 %v5838_v37  ;;  %3290 = vmatpush1.msra.mxu1 %v6888_v28 }
 0xa56   :  { %3220 = vmatprep.subr.mxu0 %v6932_v4  ;;  %3291 = vmatprep.subr.mxu1 %v6933_v29 }
 0xa57   :  { %3221 = vmatpush1.msra.mxu0 %v6934_v6  ;;  %3292 = vmatpush1.msra.mxu1 %v6935_v57 }
 0xa58   :  { %3222 = vmatprep.subr.mxu0 %v6936_v8  ;;  %3293 = vmatprep.subr.mxu1 %v6937_v58 }
 0xa59   :  { %3223 = vmatpush1.msra.mxu0 %v6938_v10  ;;  %3294 = vmatpush1.msra.mxu1 %v6939_v0 }
 0xa5a   :  { %3224 = vmatprep.subr.mxu0 %v6940_v15  ;;  %3295 = vmatprep.subr.mxu1 %v6941_v12 }
 0xa5b   :  { %3225 = vmatpush1.msra.mxu0 %v6942_v38  ;;  %3296 = vmatpush1.msra.mxu1 %v6943_v14 }
 0xa5c   :  { %3226 = vmatprep.subr.mxu0 %v6944_v55  ;;  %3297 = vmatprep.subr.mxu1 %v6945_v53 }
 0xa5d   :  { %3227 = vmatpush1.msra.mxu0 %v6946_v30  ;;  %3298 = vmatpush1.msra.mxu1 %v6947_v16 }
 0xa5e   :  { %3228 = vmatprep.subr.mxu0 %v6948_v23  ;;  %3299 = vmatprep.subr.mxu1 %v6949_v1 }
 0xa5f   :  { %3229 = vmatpush1.msra.mxu0 %v6950_v7  ;;  %3262 = vmatprep.mubr.f32.mxu0 %v6951_v61 }
 0xa60   :  { %3300 = vmatpush1.msra.mxu1 %v6952_v48  ;;  %3333 = vmatprep.mubr.f32.mxu1 %v6951_v61 }
 0xa61   :  { %3390 = vmatprep.subr.mxu0 %v6953_v20  ;;  %3461 = vmatprep.subr.mxu1 %v6954_v5 }
 0xb00   :  { %v3072_v62 = vpop.f32.mrf.mxu0  ;;  %v3143_v51 = vpop.f32.mrf.mxu1 }
 0xb01   :  { %v3152_v63 = vrot.slane %v3072_v62, 4  ;;  %v3154_v50 = vrot.slane %v3143_v51, 4  ;;  %v3184_v62 = vrot.slane %v6076_v19, 6  ;;  %v6152_v19 = vld [vmem:[#allocation10 + $0x1f0] sm:$0xff] }
 0xb02   :  { %v3074_v18 = vpop.f32.mrf.mxu0  ;;  %v3145_v45 = vpop.f32.mrf.mxu1 }
 0xb03   :  { %v3160_v47 = vadd.f32 %v3152_v63, %v2999_v2  ;;  %v3153_v54 = vrot.slane %v3074_v18, 4  ;;  %v3155_v39 = vrot.slane %v3145_v45, 4  ;;  %v3162_v60 = vadd.f32 %v3154_v50, %v3001_v49  ;;  %v6155_v45 = vld [vmem:[#allocation10 + $0x1c8] sm:$0xff]  ;;  %v6173_v49 = vld [vmem:[#allocation10 + $0x1a0] sm:$0xff] }
 0xb04   :  { %v6167_v50 = vld [vmem:[#allocation10 + $0x1a8] sm:$0xff] }
 0xb05   :  { %v4285_v17 = vmul.f32 -1.442695, %v3160_v47  ;;  %v3161_v44 = vadd.f32 %v3153_v54, %v3000_v21  ;;  %v3163_v22 = vadd.f32 %v3155_v39, %v3002_v43  ;;  %v6158_v39 = vld [vmem:[#allocation10 + $0x1d8] sm:$0xff]  ;;  %v6161_v43 = vld [vmem:[#allocation10 + $0x1c0] sm:$0xff] }
 0xb07   :  { %4528 = vpow2.f32 %v4285_v17  ;;  %v4286_v52 = vmul.f32 -1.442695, %v3161_v44  ;;  %v4287_v24 = vmul.f32 -1.442695, %v3163_v22  ;;  %v6164_v22 = vld [vmem:[#allocation10 + $0x1d0] sm:$0xff] }
 0xb09   :  { %4530 = vpow2.f32 %v4286_v52  ;;  %v6149_v52 = vld [vmem:[#allocation10 + $0x1e0] sm:$0xff] }
 0xb0a   :  { %4532 = vpow2.f32 %v4287_v24  ;;  %v6170_v24 = vld [vmem:[#allocation10 + $0x1b8] sm:$0xff] }
 0xb14   :  { %v4529_v56 = vpop.eup %4528 }
 0xb15   :  { %v3167_v13 = vadd.f32 1.0, %v4529_v56  ;;  %v6176_v56 = vld [vmem:[#allocation10 + $0x1b0] sm:$0xff] }
 0xb16   :  { %v4531_v41 = vpop.eup %4530 }
 0xb17   :  { %4534 = vrcp.f32 %v3167_v13  ;;  %v3173_v59 = vadd.f32 1.0, %v4531_v41  ;;  %v4533_v26 = vpop.eup %4532  ;;  %v6182_v13 = vld [vmem:[#allocation10 + $0x198] sm:$0xff]  ;;  %v6185_v41 = vld [vmem:[#allocation10 + $0x180] sm:$0xff] }
 0xb18   :  { %4536 = vtanh.f32 %v3162_v60  ;;  %v3180_v2 = vadd.f32 1.0, %v4533_v26  ;;  %v6179_v60 = vld [vmem:[#allocation10 + $0x188] sm:$0xff] }
 0xb19   :  { %4538 = vrcp.f32 %v3173_v59  ;;  %v6188_v59 = vld [vmem:[#allocation10 + $0x190] sm:$0xff]  ;;  %v6191_v26 = vld [vmem:[#allocation10 + $0x168] sm:$0xff] }
 0xb1a   :  { %4540 = vrcp.f32 %v3180_v2  ;;  %v6206_v2 = vld [vmem:[#allocation10 + $0x158] sm:$0xff] }
 0xb24   :  { %v4535_v20 = vpop.eup %4534 }
 0xb25   :  { %v4537_v5 = vpop.eup %4536 }
 0xb26   :  { %v4539_v63 = vpop.eup %4538  ;;  %v3187_v18 = vmul.f32 %v4537_v5, %v4535_v20  ;;  %v6194_v20 = vld [vmem:[#allocation10 + $0x178] sm:$0xff]  ;;  %v6197_v5 = vld [vmem:[#allocation10 + $0x160] sm:$0xff] }
 0xb27   :  { %v3186_v47 = vmul.f32 %v4539_v63, %v3184_v62  ;;  %v4541_v54 = vpop.eup %4540  ;;  %v6200_v62 = vld [vmem:[#allocation10 + $0x170] sm:$0xff]  ;;  %v6203_v63 = vld [vmem:[#allocation10 + $0x148] sm:$0xff] }
 0xb29   :  { %v6146_v51 = vadd.f32 %v3187_v18, %v3186_v47  ;;  %v6209_v18 = vld [vmem:[#allocation10 + $0x140] sm:$0xff]  ;;  %v6212_v47 = vld [vmem:[#allocation10 + $0x150] sm:$0xff] }
 0xb2b   :  { %4542 = vtanh.f32 %v6146_v51 }
 0xb38   :  { %v4543_v21 = vpop.eup %4542 }
 0xb39   :  { %v3190_v17 = vmul.f32 %v4543_v21, %v4541_v54  ;;  %v6215_v54 = vld [vmem:[#allocation10 + $0x128] sm:$0xff]  ;;  %v6218_v21 = vld [vmem:[#allocation10 + $0x138] sm:$0xff] }
 0xb3b   :  { %v3196_v44 = vrot.slane %v3190_v17, 4  ;;  %v6221_v17 = vld [vmem:[#allocation10 + $0x120] sm:$0xff] }
 0xb3d   :  { %3263 = vmatmul.mubr.f32.vlgmr.msra.gmra.mxu0 %v3196_v44  ;;  %3334 = vmatmul.mubr.f32.vlgmr.msra.gmra.mxu1 %v3196_v44  ;;  %v6224_v44 = vld [vmem:[#allocation10 + $0x130] sm:$0xff] }
 0xb3e   :  { %3391 = vmatpush1.msra.mxu0 %v6149_v52  ;;  %3462 = vmatpush1.msra.mxu1 %v6152_v19 }
 0xb3f   :  { %3392 = vmatprep.subr.mxu0 %v6155_v45  ;;  %3463 = vmatprep.subr.mxu1 %v6158_v39 }
 0xb40   :  { %3393 = vmatpush1.msra.mxu0 %v6161_v43  ;;  %3464 = vmatpush1.msra.mxu1 %v6164_v22 }
 0xb41   :  { %3394 = vmatprep.subr.mxu0 %v6167_v50  ;;  %3465 = vmatprep.subr.mxu1 %v6170_v24 }
 0xb42   :  { %3395 = vmatpush1.msra.mxu0 %v6173_v49  ;;  %3466 = vmatpush1.msra.mxu1 %v6176_v56 }
 0xb43   :  { %3396 = vmatprep.subr.mxu0 %v6179_v60  ;;  %3467 = vmatprep.subr.mxu1 %v6182_v13 }
 0xb44   :  { %3397 = vmatpush1.msra.mxu0 %v6185_v41  ;;  %3468 = vmatpush1.msra.mxu1 %v6188_v59 }
 0xb45   :  { %3398 = vmatprep.subr.mxu0 %v6191_v26  ;;  %3469 = vmatprep.subr.mxu1 %v6194_v20 }
 0xb46   :  { %3399 = vmatpush1.msra.mxu0 %v6197_v5  ;;  %3470 = vmatpush1.msra.mxu1 %v6200_v62 }
 0xb47   :  { %3400 = vmatprep.subr.mxu0 %v6203_v63  ;;  %3471 = vmatprep.subr.mxu1 %v6206_v2 }
 0xb48   :  { %3401 = vmatpush1.msra.mxu0 %v6209_v18  ;;  %3472 = vmatpush1.msra.mxu1 %v6212_v47 }
 0xb49   :  { %3402 = vmatprep.subr.mxu0 %v6215_v54  ;;  %3473 = vmatprep.subr.mxu1 %v6218_v21 }
 0xb4a   :  { %3403 = vmatpush1.msra.mxu0 %v6221_v17  ;;  %3474 = vmatpush1.msra.mxu1 %v6224_v44 }
 0xb4b   :  { %3404 = vmatprep.subr.mxu0 %v5798_v11  ;;  %3475 = vmatprep.subr.mxu1 %v5800_v46  ;;  %v6265_v11 = vld [vmem:[#allocation10 + $0x1e8] sm:$0xff]  ;;  %v6268_v46 = vld [vmem:[#allocation10 + $0x1f8] sm:$0xff] }
 0xb4c   :  { %3405 = vmatpush1.msra.mxu0 %v5804_v9  ;;  %3476 = vmatpush1.msra.mxu1 %v5806_v3  ;;  %6955 = vst [vmem:[#allocation18_spill] sm:$0xff] %v6265_v11  ;;  %6956 = vst [vmem:[#allocation30_spill] sm:$0xff] %v6268_v46 }
 0xb4d   :  { %3406 = vmatprep.subr.mxu0 %v5810_v32  ;;  %3477 = vmatprep.subr.mxu1 %v5812_v34  ;;  %v3191_v32 = vld [vmem:[#allocation2 + $0x30] sm:$0xc0] }
 0xb4e   :  { %3407 = vmatpush1.msra.mxu0 %v5816_v36  ;;  %3478 = vmatpush1.msra.mxu1 %v5818_v40 }
 0xb4f   :  { %3408 = vmatprep.subr.mxu0 %v5822_v42  ;;  %3479 = vmatprep.subr.mxu1 %v5824_v25  ;;  %v3192_v25 = vld [vmem:[#allocation2] sm:$0xc0] }
 0xb50   :  { %3409 = vmatpush1.msra.mxu0 %v5828_v27  ;;  %3480 = vmatpush1.msra.mxu1 %v5830_v31 }
 0xb51   :  { %3410 = vmatprep.subr.mxu0 %v5832_v33  ;;  %3481 = vmatprep.subr.mxu1 %v5836_v35 }
 0xb52   :  { %3411 = vmatpush1.msra.mxu0 %v5838_v37  ;;  %3482 = vmatpush1.msra.mxu1 %v6888_v28  ;;  %v3194_v28 = vld [vmem:[#allocation2 + $0x10] sm:$0xc0] }
 0xb53   :  { %3412 = vmatprep.subr.mxu0 %v6932_v4  ;;  %3483 = vmatprep.subr.mxu1 %v6933_v29 }
 0xb54   :  { %3413 = vmatpush1.msra.mxu0 %v6934_v6  ;;  %3484 = vmatpush1.msra.mxu1 %v6935_v57  ;;  %v3193_v57 = vld [vmem:[#allocation2 + $0x18] sm:$0xc0] }
 0xb55   :  { %3414 = vmatprep.subr.mxu0 %v6936_v8  ;;  %3485 = vmatprep.subr.mxu1 %v6937_v58 }
 0xb56   :  { %3415 = vmatpush1.msra.mxu0 %v6938_v10  ;;  %3486 = vmatpush1.msra.mxu1 %v6939_v0 }
 0xb57   :  { %3416 = vmatprep.subr.mxu0 %v6940_v15  ;;  %3487 = vmatprep.subr.mxu1 %v6941_v12 }
 0xb58   :  { %3417 = vmatpush1.msra.mxu0 %v6942_v38  ;;  %3488 = vmatpush1.msra.mxu1 %v6943_v14 }
 0xb59   :  { %3418 = vmatprep.subr.mxu0 %v6944_v55  ;;  %3489 = vmatprep.subr.mxu1 %v6945_v53  ;;  %v3376_v55 = vrot.slane %v6146_v51, 6  ;;  %v6301_v51 = vld [vmem:[#allocation10 + $0x108] sm:$0xff] }
 0xb5a   :  { %3419 = vmatpush1.msra.mxu0 %v6946_v30  ;;  %3490 = vmatpush1.msra.mxu1 %v6947_v16 }
 0xb5b   :  { %3420 = vmatprep.subr.mxu0 %v6948_v23  ;;  %3491 = vmatprep.subr.mxu1 %v6949_v1 }
 0xb5c   :  { %3421 = vmatpush1.msra.mxu0 %v6950_v7  ;;  %3454 = vmatprep.mubr.f32.mxu0 %v6951_v61 }
 0xb5d   :  { %3492 = vmatpush1.msra.mxu1 %v6952_v48  ;;  %3525 = vmatprep.mubr.f32.mxu1 %v6951_v61 }
 0xb5e   :  { %3567 = vmatprep.subr.mxu0 %v6265_v11  ;;  %3638 = vmatprep.subr.mxu1 %v6268_v46 }
 0xbfd   :  { %v3264_v9 = vpop.f32.mrf.mxu0  ;;  %v3335_v40 = vpop.f32.mrf.mxu1 }
 0xbfe   :  { %v3344_v3 = vrot.slane %v3264_v9, 2  ;;  %v3346_v29 = vrot.slane %v3335_v40, 2  ;;  %v6313_v40 = vld [vmem:[#allocation10 + $0xe8] sm:$0xff] }
 0xbff   :  { %v3266_v34 = vpop.f32.mrf.mxu0  ;;  %v3337_v35 = vpop.f32.mrf.mxu1 }
 0xc00   :  { %v3352_v36 = vadd.f32 %v3344_v3, %v3191_v32  ;;  %v3345_v42 = vrot.slane %v3266_v34, 2  ;;  %v3347_v37 = vrot.slane %v3337_v35, 2  ;;  %v3354_v58 = vadd.f32 %v3346_v29, %v3193_v57  ;;  %v6304_v32 = vld [vmem:[#allocation10 + $0x118] sm:$0xff]  ;;  %v6307_v34 = vld [vmem:[#allocation10 + $0x100] sm:$0xff]  ;;  %v6349_v57 = vld [vmem:[#allocation10 + $0x88] sm:$0xff] }
 0xc01   :  { %v6331_v35 = vld [vmem:[#allocation10 + $0xc0] sm:$0xff]  ;;  %6957 = vst [vmem:[#allocation28_spill] sm:$0xff] %v6349_v57 }
 0xc02   :  { %v4288_v27 = vmul.f32 -1.442695, %v3352_v36  ;;  %v3353_v31 = vadd.f32 %v3345_v42, %v3192_v25  ;;  %v3355_v4 = vadd.f32 %v3347_v37, %v3194_v28  ;;  %v6310_v36 = vld [vmem:[#allocation10 + $0x110] sm:$0xff]  ;;  %v6316_v42 = vld [vmem:[#allocation10 + $0xf8] sm:$0xff]  ;;  %v6319_v25 = vld [vmem:[#allocation10 + $0xe0] sm:$0xff] }
 0xc03   :  { %v6334_v37 = vld [vmem:[#allocation10 + $0xd0] sm:$0xff]  ;;  %v6337_v28 = vld [vmem:[#allocation10 + $0xa8] sm:$0xff]  ;;  %v6343_v29 = vld [vmem:[#allocation10 + $0xa0] sm:$0xff] }
 0xc04   :  { %4544 = vpow2.f32 %v4288_v27  ;;  %v4289_v33 = vmul.f32 -1.442695, %v3353_v31  ;;  %v4290_v6 = vmul.f32 -1.442695, %v3355_v4  ;;  %v6322_v27 = vld [vmem:[#allocation10 + $0xf0] sm:$0xff]  ;;  %v6325_v31 = vld [vmem:[#allocation10 + $0xc8] sm:$0xff] }
 0xc05   :  { %v6340_v4 = vld [vmem:[#allocation10 + $0xb8] sm:$0xff] }
 0xc06   :  { %4546 = vpow2.f32 %v4289_v33  ;;  %v6328_v33 = vld [vmem:[#allocation10 + $0xd8] sm:$0xff] }
 0xc07   :  { %4548 = vpow2.f32 %v4290_v6  ;;  %v6346_v6 = vld [vmem:[#allocation10 + $0xb0] sm:$0xff] }
 0xc11   :  { %v4545_v8 = vpop.eup %4544 }
 0xc12   :  { %v3359_v10 = vadd.f32 1.0, %v4545_v8  ;;  %v6352_v8 = vld [vmem:[#allocation10 + $0x98] sm:$0xff] }
 0xc13   :  { %v4547_v0 = vpop.eup %4546  ;;  %6958 = vst [vmem:[#allocation19_spill] sm:$0xff] %v6352_v8 }
 0xc14   :  { %4550 = vrcp.f32 %v3359_v10  ;;  %v3365_v15 = vadd.f32 1.0, %v4547_v0  ;;  %v4549_v12 = vpop.eup %4548  ;;  %v6358_v10 = vld [vmem:[#allocation10 + $0x90] sm:$0xff]  ;;  %v6361_v0 = vld [vmem:[#allocation10 + $0x68] sm:$0xff] }
 0xc15   :  { %4552 = vtanh.f32 %v3354_v58  ;;  %v3372_v30 = vadd.f32 1.0, %v4549_v12  ;;  %v6355_v58 = vld [vmem:[#allocation10 + $0x80] sm:$0xff]  ;;  %6960 = vst [vmem:[#allocation31_spill] sm:$0xff] %v6358_v10  ;;  %6961 = vst [vmem:[#allocation22_spill] sm:$0xff] %v6361_v0 }
 0xc16   :  { %4554 = vrcp.f32 %v3365_v15  ;;  %6959 = vst [vmem:[#allocation21_spill] sm:$0xff] %v6355_v58  ;;  %v6364_v15 = vld [vmem:[#allocation10 + $0x78] sm:$0xff]  ;;  %v6367_v12 = vld [vmem:[#allocation10 + $0x60] sm:$0xff] }
 0xc17   :  { %4556 = vrcp.f32 %v3372_v30  ;;  %6962 = vst [vmem:[#allocation32_spill] sm:$0xff] %v6364_v15  ;;  %6963 = vst [vmem:[#allocation23_spill] sm:$0xff] %v6367_v12  ;;  %v6382_v30 = vld [vmem:[#allocation10 + $0x50] sm:$0xff] }
 0xc18   :  { %6968 = vst [vmem:[#allocation35_spill] sm:$0xff] %v6382_v30 }
 0xc21   :  { %v4551_v38 = vpop.eup %4550 }
 0xc22   :  { %v4553_v14 = vpop.eup %4552 }
 0xc23   :  { %v4555_v53 = vpop.eup %4554  ;;  %v3379_v16 = vmul.f32 %v4553_v14, %v4551_v38  ;;  %v6370_v38 = vld [vmem:[#allocation10 + $0x70] sm:$0xff]  ;;  %v6373_v14 = vld [vmem:[#allocation10 + $0x48] sm:$0xff] }
 0xc24   :  { %v3378_v23 = vmul.f32 %v4555_v53, %v3376_v55  ;;  %v4557_v7 = vpop.eup %4556  ;;  %6964 = vst [vmem:[#allocation33_spill] sm:$0xff] %v6370_v38  ;;  %6965 = vst [vmem:[#allocation24_spill] sm:$0xff] %v6373_v14  ;;  %v6376_v55 = vld [vmem:[#allocation10 + $0x58] sm:$0xff]  ;;  %v6379_v53 = vld [vmem:[#allocation10 + $0x40] sm:$0xff] }
 0xc25   :  { %6966 = vst [vmem:[#allocation34_spill] sm:$0xff] %v6376_v55  ;;  %6967 = vst [vmem:[#allocation25_spill] sm:$0xff] %v6379_v53 }
 0xc26   :  { %v6272_v1 = vadd.f32 %v3379_v16, %v3378_v23  ;;  %v6385_v16 = vld [vmem:[#allocation10 + $0x28] sm:$0xff]  ;;  %v6388_v23 = vld [vmem:[#allocation10 + $0x38] sm:$0xff] }
 0xc27   :  { %6969 = vst [vmem:[#allocation26_spill] sm:$0xff] %v6385_v16  ;;  %6970 = vst [vmem:[#allocation36_spill] sm:$0xff] %v6388_v23 }
 0xc28   :  { %4558 = vtanh.f32 %v6272_v1 }
 0xc35   :  { %v4559_v48 = vpop.eup %4558 }
 0xc36   :  { %v3382_v9 = vmul.f32 %v4559_v48, %v4557_v7  ;;  %v6391_v7 = vld [vmem:[#allocation10 + $0x20] sm:$0xff]  ;;  %v6394_v48 = vld [vmem:[#allocation10 + $0x30] sm:$0xff] }
 0xc37   :  { %6971 = vst [vmem:[#allocation27_spill] sm:$0xff] %v6391_v7  ;;  %6972 = vst [vmem:[#allocation37_spill] sm:$0xff] %v6394_v48 }
 0xc38   :  { %v3388_v3 = vrot.slane %v3382_v9, 6  ;;  %v6397_v9 = vld [vmem:[#allocation10 + $0x8] sm:$0xff] }
 0xc39   :  { %6973 = vst [vmem:[#allocation38_spill] sm:$0xff] %v6397_v9 }
 0xc3a   :  { %3455 = vmatmul.mubr.f32.vlgmr.msra.gmra.mxu0 %v3388_v3  ;;  %3526 = vmatmul.mubr.f32.vlgmr.msra.gmra.mxu1 %v3388_v3  ;;  %v6400_v3 = vld [vmem:[#allocation10 + $0x18] sm:$0xff] }
 0xc3b   :  { %3568 = vmatpush1.msra.mxu0 %v6149_v52  ;;  %3639 = vmatpush1.msra.mxu1 %v6152_v19  ;;  %6974 = vst [vmem:[#allocation39_spill] sm:$0xff] %v6400_v3 }
 0xc3c   :  { %3569 = vmatprep.subr.mxu0 %v6155_v45  ;;  %3640 = vmatprep.subr.mxu1 %v6158_v39 }
 0xc3d   :  { %3570 = vmatpush1.msra.mxu0 %v6161_v43  ;;  %3641 = vmatpush1.msra.mxu1 %v6164_v22 }
 0xc3e   :  { %3571 = vmatprep.subr.mxu0 %v6167_v50  ;;  %3642 = vmatprep.subr.mxu1 %v6170_v24 }
 0xc3f   :  { %3572 = vmatpush1.msra.mxu0 %v6173_v49  ;;  %3643 = vmatpush1.msra.mxu1 %v6176_v56 }
 0xc40   :  { %3573 = vmatprep.subr.mxu0 %v6179_v60  ;;  %3644 = vmatprep.subr.mxu1 %v6182_v13 }
 0xc41   :  { %3574 = vmatpush1.msra.mxu0 %v6185_v41  ;;  %3645 = vmatpush1.msra.mxu1 %v6188_v59 }
 0xc42   :  { %3575 = vmatprep.subr.mxu0 %v6191_v26  ;;  %3646 = vmatprep.subr.mxu1 %v6194_v20 }
 0xc43   :  { %3576 = vmatpush1.msra.mxu0 %v6197_v5  ;;  %3647 = vmatpush1.msra.mxu1 %v6200_v62 }
 0xc44   :  { %3577 = vmatprep.subr.mxu0 %v6203_v63  ;;  %3648 = vmatprep.subr.mxu1 %v6206_v2 }
 0xc45   :  { %3578 = vmatpush1.msra.mxu0 %v6209_v18  ;;  %3649 = vmatpush1.msra.mxu1 %v6212_v47 }
 0xc46   :  { %3579 = vmatprep.subr.mxu0 %v6215_v54  ;;  %3650 = vmatprep.subr.mxu1 %v6218_v21 }
 0xc47   :  { %3580 = vmatpush1.msra.mxu0 %v6221_v17  ;;  %3651 = vmatpush1.msra.mxu1 %v6224_v44 }
 0xc48   :  { %3581 = vmatprep.subr.mxu0 %v6301_v51  ;;  %3652 = vmatprep.subr.mxu1 %v6304_v32 }
 0xc49   :  { %3582 = vmatpush1.msra.mxu0 %v6307_v34  ;;  %3653 = vmatpush1.msra.mxu1 %v6310_v36 }
 0xc4a   :  { %3583 = vmatprep.subr.mxu0 %v6313_v40  ;;  %3654 = vmatprep.subr.mxu1 %v6316_v42 }
 0xc4b   :  { %3584 = vmatpush1.msra.mxu0 %v6319_v25  ;;  %3655 = vmatpush1.msra.mxu1 %v6322_v27 }
 0xc4c   :  { %3585 = vmatprep.subr.mxu0 %v6325_v31  ;;  %3656 = vmatprep.subr.mxu1 %v6328_v33 }
 0xc4d   :  { %3586 = vmatpush1.msra.mxu0 %v6331_v35  ;;  %3657 = vmatpush1.msra.mxu1 %v6334_v37 }
 0xc4e   :  { %3587 = vmatprep.subr.mxu0 %v6337_v28  ;;  %3658 = vmatprep.subr.mxu1 %v6340_v4 }
 0xc4f   :  { %3588 = vmatpush1.msra.mxu0 %v6343_v29  ;;  %3659 = vmatpush1.msra.mxu1 %v6346_v6 }
 0xc50   :  { %3589 = vmatprep.subr.mxu0 %v6349_v57  ;;  %3660 = vmatprep.subr.mxu1 %v6352_v8 }
 0xc51   :  { %3590 = vmatpush1.msra.mxu0 %v6355_v58  ;;  %3661 = vmatpush1.msra.mxu1 %v6358_v10 }
 0xc52   :  { %3591 = vmatprep.subr.mxu0 %v6361_v0  ;;  %3662 = vmatprep.subr.mxu1 %v6364_v15 }
 0xc53   :  { %3592 = vmatpush1.msra.mxu0 %v6367_v12  ;;  %3663 = vmatpush1.msra.mxu1 %v6370_v38  ;;  %v3386_v12 = vld [vmem:[#allocation2 + $0x38] sm:$0x3] }
 0xc54   :  { %3593 = vmatprep.subr.mxu0 %v6373_v14  ;;  %3664 = vmatprep.subr.mxu1 %v6376_v55 }
 0xc55   :  { %3594 = vmatpush1.msra.mxu0 %v6379_v53  ;;  %3665 = vmatpush1.msra.mxu1 %v6382_v30 }
 0xc56   :  { %3595 = vmatprep.subr.mxu0 %v6385_v16  ;;  %3666 = vmatprep.subr.mxu1 %v6388_v23  ;;  %v6403_v16 = vld [vmem:[#allocation10] sm:$0xff]  ;;  %v6407_v23 = vld [vmem:[#allocation10 + $0x10] sm:$0xff] }
 0xc57   :  { %3596 = vmatpush1.msra.mxu0 %v6391_v7  ;;  %3667 = vmatpush1.msra.mxu1 %v6394_v48  ;;  %6975 = vst [vmem:[#allocation40_spill] sm:$0xff] %v6403_v16  ;;  %6976 = vst [vmem:[#allocation41_spill] sm:$0xff] %v6407_v23 }
 0xc58   :  { %3597 = vmatprep.subr.mxu0 %v6397_v9  ;;  %3668 = vmatprep.subr.mxu1 %v6400_v3  ;;  %v3383_v9 = vld [vmem:[#allocation2 + $0x8] sm:$0x3]  ;;  %v3384_v3 = vld [vmem:[#allocation2 + $0x20] sm:$0x3] }
 0xc59   :  { %3598 = vmatpush1.msra.mxu0 %v6403_v16  ;;  %3631 = vmatprep.mubr.f32.mxu0 %v6951_v61 }
 0xc5a   :  { %3669 = vmatpush1.msra.mxu1 %v6407_v23  ;;  %3702 = vmatprep.mubr.f32.mxu1 %v6951_v61  ;;  %v3385_v61 = vld [vmem:[#allocation2 + $0x28] sm:$0x3] }
 0xc5b   :  { %3759 = vmatprep.subr.mxu0 %v6265_v11  ;;  %3830 = vmatprep.subr.mxu1 %v6268_v46 }
 0xcfa   :  { %v3456_v48 = vpop.f32.mrf.mxu0  ;;  %v3527_v16 = vpop.f32.mrf.mxu1 }
 0xcfb   :  { %v3532_v7 = vadd.f32 %v3456_v48, %v3383_v9  ;;  %v3534_v11 = vadd.f32 %v3527_v16, %v3385_v61  ;;  %v6981_v16 = vld [vmem:[#allocation33_spill] sm:$0xff] }
 0xcfc   :  { %v3458_v30 = vpop.f32.mrf.mxu0  ;;  %v3529_v38 = vpop.f32.mrf.mxu1 }
 0xcfd   :  { %v4291_v53 = vmul.f32 -1.442695, %v3532_v7  ;;  %v3533_v55 = vadd.f32 %v3458_v30, %v3384_v3  ;;  %v3535_v23 = vadd.f32 %v3529_v38, %v3386_v12 }
 0xcff   :  { %4560 = vpow2.f32 %v4291_v53  ;;  %v4292_v14 = vmul.f32 -1.442695, %v3533_v55  ;;  %v4293_v15 = vmul.f32 -1.442695, %v3535_v23  ;;  %v3556_v55 = vrot.slane %v6272_v1, 6  ;;  %v6979_v1 = vld [vmem:[#allocation32_spill] sm:$0xff] }
 0xd00   :  { %v6982_v23 = vld [vmem:[#allocation24_spill] sm:$0xff] }
 0xd01   :  { %4562 = vpow2.f32 %v4292_v14 }
 0xd02   :  { %4564 = vpow2.f32 %v4293_v15  ;;  %v6980_v15 = vld [vmem:[#allocation23_spill] sm:$0xff] }
 0xd0c   :  { %v4561_v0 = vpop.eup %4560 }
 0xd0d   :  { %v3539_v10 = vadd.f32 1.0, %v4561_v0 }
 0xd0e   :  { %v4563_v46 = vpop.eup %4562 }
 0xd0f   :  { %4566 = vrcp.f32 %v3539_v10  ;;  %v3545_v48 = vadd.f32 1.0, %v4563_v46  ;;  %v4565_v7 = vpop.eup %4564  ;;  %v6978_v46 = vld [vmem:[#allocation22_spill] sm:$0xff] }
 0xd10   :  { %4568 = vtanh.f32 %v3534_v11  ;;  %v3552_v9 = vadd.f32 1.0, %v4565_v7  ;;  %v6977_v11 = vld [vmem:[#allocation31_spill] sm:$0xff]  ;;  %v6984_v7 = vld [vmem:[#allocation25_spill] sm:$0xff] }
 0xd11   :  { %4570 = vrcp.f32 %v3545_v48  ;;  %v6983_v48 = vld [vmem:[#allocation34_spill] sm:$0xff] }
 0xd12   :  { %4572 = vrcp.f32 %v3552_v9  ;;  %v6989_v9 = vld [vmem:[#allocation37_spill] sm:$0xff] }
 0xd1c   :  { %v4567_v30 = vpop.eup %4566 }
 0xd1d   :  { %v4569_v53 = vpop.eup %4568 }
 0xd1e   :  { %v4571_v14 = vpop.eup %4570  ;;  %v3559_v3 = vmul.f32 %v4569_v53, %v4567_v30  ;;  %v6985_v30 = vld [vmem:[#allocation35_spill] sm:$0xff]  ;;  %v6986_v53 = vld [vmem:[#allocation26_spill] sm:$0xff] }
 0xd1f   :  { %v3558_v12 = vmul.f32 %v4571_v14, %v3556_v55  ;;  %v4573_v61 = vpop.eup %4572  ;;  %v6987_v55 = vld [vmem:[#allocation36_spill] sm:$0xff]  ;;  %v6988_v14 = vld [vmem:[#allocation27_spill] sm:$0xff] }
 0xd21   :  { %v6414_v38 = vadd.f32 %v3559_v3, %v3558_v12  ;;  %v6990_v3 = vld [vmem:[#allocation38_spill] sm:$0xff]  ;;  %v6991_v12 = vld [vmem:[#allocation39_spill] sm:$0xff] }
 0xd23   :  { %4574 = vtanh.f32 %v6414_v38 }
 0xd30   :  { %v4575_v0 = vpop.eup %4574 }
 0xd31   :  { %v3562_v10 = vmul.f32 %v4575_v0, %v4573_v61  ;;  %v6992_v61 = vld [vmem:[#allocation40_spill] sm:$0xff]  ;;  %v6993_v0 = vmov 0.0  }
 0xd33   :  { %3632 = vmatmul.mubr.f32.vlgmr.msra.gmra.mxu0 %v3562_v10  ;;  %3703 = vmatmul.mubr.f32.vlgmr.msra.gmra.mxu1 %v3562_v10  ;;  %v6994_v10 = vld [vmem:[#allocation41_spill] sm:$0xff] }
 0xd34   :  { %3760 = vmatpush1.msra.mxu0 %v6149_v52  ;;  %3831 = vmatpush1.msra.mxu1 %v6152_v19 }
 0xd35   :  { %3761 = vmatprep.subr.mxu0 %v6155_v45  ;;  %3832 = vmatprep.subr.mxu1 %v6158_v39 }
 0xd36   :  { %3762 = vmatpush1.msra.mxu0 %v6161_v43  ;;  %3833 = vmatpush1.msra.mxu1 %v6164_v22 }
 0xd37   :  { %3763 = vmatprep.subr.mxu0 %v6167_v50  ;;  %3834 = vmatprep.subr.mxu1 %v6170_v24 }
 0xd38   :  { %3764 = vmatpush1.msra.mxu0 %v6173_v49  ;;  %3835 = vmatpush1.msra.mxu1 %v6176_v56 }
 0xd39   :  { %3765 = vmatprep.subr.mxu0 %v6179_v60  ;;  %3836 = vmatprep.subr.mxu1 %v6182_v13 }
 0xd3a   :  { %3766 = vmatpush1.msra.mxu0 %v6185_v41  ;;  %3837 = vmatpush1.msra.mxu1 %v6188_v59 }
 0xd3b   :  { %3767 = vmatprep.subr.mxu0 %v6191_v26  ;;  %3838 = vmatprep.subr.mxu1 %v6194_v20 }
 0xd3c   :  { %3768 = vmatpush1.msra.mxu0 %v6197_v5  ;;  %3839 = vmatpush1.msra.mxu1 %v6200_v62 }
 0xd3d   :  { %3769 = vmatprep.subr.mxu0 %v6203_v63  ;;  %3840 = vmatprep.subr.mxu1 %v6206_v2 }
 0xd3e   :  { %3770 = vmatpush1.msra.mxu0 %v6209_v18  ;;  %3841 = vmatpush1.msra.mxu1 %v6212_v47 }
 0xd3f   :  { %3771 = vmatprep.subr.mxu0 %v6215_v54  ;;  %3842 = vmatprep.subr.mxu1 %v6218_v21 }
 0xd40   :  { %3772 = vmatpush1.msra.mxu0 %v6221_v17  ;;  %3843 = vmatpush1.msra.mxu1 %v6224_v44 }
 0xd41   :  { %3773 = vmatprep.subr.mxu0 %v6301_v51  ;;  %3844 = vmatprep.subr.mxu1 %v6304_v32 }
 0xd42   :  { %3774 = vmatpush1.msra.mxu0 %v6307_v34  ;;  %3845 = vmatpush1.msra.mxu1 %v6310_v36 }
 0xd43   :  { %3775 = vmatprep.subr.mxu0 %v6313_v40  ;;  %3846 = vmatprep.subr.mxu1 %v6316_v42 }
 0xd44   :  { %3776 = vmatpush1.msra.mxu0 %v6319_v25  ;;  %3847 = vmatpush1.msra.mxu1 %v6322_v27 }
 0xd45   :  { %3777 = vmatprep.subr.mxu0 %v6325_v31  ;;  %3848 = vmatprep.subr.mxu1 %v6328_v33 }
 0xd46   :  { %3778 = vmatpush1.msra.mxu0 %v6331_v35  ;;  %3849 = vmatpush1.msra.mxu1 %v6334_v37 }
 0xd47   :  { %3779 = vmatprep.subr.mxu0 %v6337_v28  ;;  %3850 = vmatprep.subr.mxu1 %v6340_v4 }
 0xd48   :  { %3780 = vmatpush1.msra.mxu0 %v6343_v29  ;;  %3851 = vmatpush1.msra.mxu1 %v6346_v6 }
 0xd49   :  { %3781 = vmatprep.subr.mxu0 %v6349_v57  ;;  %3852 = vmatprep.subr.mxu1 %v6352_v8 }
 0xd4a   :  { %3782 = vmatpush1.msra.mxu0 %v6355_v58  ;;  %3853 = vmatpush1.msra.mxu1 %v6977_v11 }
 0xd4b   :  { %3783 = vmatprep.subr.mxu0 %v6978_v46  ;;  %3854 = vmatprep.subr.mxu1 %v6979_v1 }
 0xd4c   :  { %3784 = vmatpush1.msra.mxu0 %v6980_v15  ;;  %3855 = vmatpush1.msra.mxu1 %v6981_v16 }
 0xd4d   :  { %3785 = vmatprep.subr.mxu0 %v6982_v23  ;;  %3856 = vmatprep.subr.mxu1 %v6983_v48 }
 0xd4e   :  { %3786 = vmatpush1.msra.mxu0 %v6984_v7  ;;  %3857 = vmatpush1.msra.mxu1 %v6985_v30  ;;  %v6995_v30 = vld [vmem:[#allocation18_spill] sm:$0xff]  ;;  %v3563_v7 = vld [vmem:[#allocation2 + $0x8] sm:$0xc] }
 0xd4f   :  { %3787 = vmatprep.subr.mxu0 %v6986_v53  ;;  %3858 = vmatprep.subr.mxu1 %v6987_v55  ;;  %v6996_v53 = vld [vmem:[#allocation30_spill] sm:$0xff] }
 0xd50   :  { %3788 = vmatpush1.msra.mxu0 %v6988_v14  ;;  %3859 = vmatpush1.msra.mxu1 %v6989_v9 }
 0xd51   :  { %3789 = vmatprep.subr.mxu0 %v6990_v3  ;;  %3860 = vmatprep.subr.mxu1 %v6991_v12  ;;  %v3564_v12 = vld [vmem:[#allocation2 + $0x20] sm:$0xc] }
 0xd52   :  { %3790 = vmatpush1.msra.mxu0 %v6992_v61  ;;  %3823 = vmatprep.mubr.f32.mxu0 %v6993_v0 }
 0xd53   :  { %3861 = vmatpush1.msra.mxu1 %v6994_v10  ;;  %3894 = vmatprep.mubr.f32.mxu1 %v6993_v0  ;;  %v3566_v0 = vld [vmem:[#allocation2 + $0x38] sm:$0xc] }
 0xd54   :  { %3951 = vmatprep.subr.mxu0 %v6995_v30  ;;  %4022 = vmatprep.subr.mxu1 %v6996_v53  ;;  %v3565_v53 = vld [vmem:[#allocation2 + $0x28] sm:$0xc] }
 0xdf3   :  { %v3633_v55 = vpop.f32.mrf.mxu0  ;;  %v3704_v3 = vpop.f32.mrf.mxu1 }
 0xdf4   :  { %v3713_v14 = vrot.slane %v3633_v55, 6  ;;  %v3715_v30 = vrot.slane %v3704_v3, 6 }
 0xdf5   :  { %v3635_v9 = vpop.f32.mrf.mxu0  ;;  %v3706_v1 = vpop.f32.mrf.mxu1 }
 0xdf6   :  { %v3721_v48 = vadd.f32 %v3713_v14, %v3563_v7  ;;  %v3714_v23 = vrot.slane %v3635_v9, 6  ;;  %v3716_v10 = vrot.slane %v3706_v1, 6  ;;  %v3723_v55 = vadd.f32 %v3715_v30, %v3565_v53 }
 0xdf8   :  { %v4294_v16 = vmul.f32 -1.442695, %v3721_v48  ;;  %v3722_v61 = vadd.f32 %v3714_v23, %v3564_v12  ;;  %v3724_v46 = vadd.f32 %v3716_v10, %v3566_v0 }
 0xdfa   :  { %4576 = vpow2.f32 %v4294_v16  ;;  %v4295_v15 = vmul.f32 -1.442695, %v3722_v61  ;;  %v4296_v11 = vmul.f32 -1.442695, %v3724_v46 }
 0xdfc   :  { %4578 = vpow2.f32 %v4295_v15  ;;  %v3745_v15 = vrot.slane %v6414_v38, 6 }
 0xdfd   :  { %4580 = vpow2.f32 %v4296_v11 }
 0xe07   :  { %v4577_v58 = vpop.eup %4576 }
 0xe08   :  { %v3728_v8 = vadd.f32 1.0, %v4577_v58 }
 0xe09   :  { %v4579_v57 = vpop.eup %4578 }
 0xe0a   :  { %4582 = vrcp.f32 %v3728_v8  ;;  %v3734_v7 = vadd.f32 1.0, %v4579_v57  ;;  %v4581_v23 = vpop.eup %4580 }
 0xe0b   :  { %4584 = vtanh.f32 %v3723_v55  ;;  %v3741_v14 = vadd.f32 1.0, %v4581_v23 }
 0xe0c   :  { %4586 = vrcp.f32 %v3734_v7 }
 0xe0d   :  { %4588 = vrcp.f32 %v3741_v14 }
 0xe17   :  { %v4583_v16 = vpop.eup %4582 }
 0xe18   :  { %v4585_v48 = vpop.eup %4584 }
 0xe19   :  { %v4587_v1 = vpop.eup %4586  ;;  %v3748_v9 = vmul.f32 %v4585_v48, %v4583_v16 }
 0xe1a   :  { %v3747_v3 = vmul.f32 %v4587_v1, %v3745_v15  ;;  %v4589_v58 = vpop.eup %4588 }
 0xe1c   :  { %v6484_v46 = vadd.f32 %v3748_v9, %v3747_v3  ;;  %v4151_v9 = vld [vmem:[#allocation12 + $0x78] sm:$0xff]  ;;  %v4150_v3 = vld [vmem:[#allocation12 + $0x70] sm:$0xff] }
 0xe1e   :  { %4590 = vtanh.f32 %v6484_v46  ;;  %v3937_v30 = vrot.slane %v6484_v46, 6  ;;  %v4149_v46 = vld [vmem:[#allocation12 + $0x68] sm:$0xff] }
 0xe2b   :  { %v4591_v11 = vpop.eup %4590 }
 0xe2c   :  { %v3751_v8 = vmul.f32 %v4591_v11, %v4589_v58  ;;  %v4148_v58 = vld [vmem:[#allocation12 + $0x60] sm:$0xff]  ;;  %v4147_v11 = vld [vmem:[#allocation12 + $0x58] sm:$0xff] }
 0xe2e   :  { %v3757_v57 = vrot.slane %v3751_v8, 2  ;;  %v4146_v8 = vld [vmem:[#allocation12 + $0x50] sm:$0xff] }
 0xe30   :  { %3824 = vmatmul.mubr.f32.vlgmr.msra.gmra.mxu0 %v3757_v57  ;;  %3895 = vmatmul.mubr.f32.vlgmr.msra.gmra.mxu1 %v3757_v57  ;;  %v4145_v57 = vld [vmem:[#allocation12 + $0x48] sm:$0xff] }
 0xe31   :  { %3952 = vmatpush1.msra.mxu0 %v6149_v52  ;;  %4023 = vmatpush1.msra.mxu1 %v6152_v19  ;;  %v6997_v52 = vld [vmem:[#allocation28_spill] sm:$0xff]  ;;  %v6998_v19 = vld [vmem:[#allocation19_spill] sm:$0xff] }
 0xe32   :  { %3953 = vmatprep.subr.mxu0 %v6155_v45  ;;  %4024 = vmatprep.subr.mxu1 %v6158_v39  ;;  %v6999_v45 = vld [vmem:[#allocation21_spill] sm:$0xff]  ;;  %v7000_v39 = vld [vmem:[#allocation31_spill] sm:$0xff] }
 0xe33   :  { %3954 = vmatpush1.msra.mxu0 %v6161_v43  ;;  %4025 = vmatpush1.msra.mxu1 %v6164_v22  ;;  %v7001_v43 = vld [vmem:[#allocation22_spill] sm:$0xff]  ;;  %v7002_v22 = vld [vmem:[#allocation32_spill] sm:$0xff] }
 0xe34   :  { %3955 = vmatprep.subr.mxu0 %v6167_v50  ;;  %4026 = vmatprep.subr.mxu1 %v6170_v24  ;;  %v7003_v50 = vld [vmem:[#allocation23_spill] sm:$0xff]  ;;  %v7004_v24 = vld [vmem:[#allocation33_spill] sm:$0xff] }
 0xe35   :  { %3956 = vmatpush1.msra.mxu0 %v6173_v49  ;;  %4027 = vmatpush1.msra.mxu1 %v6176_v56  ;;  %v7005_v49 = vld [vmem:[#allocation24_spill] sm:$0xff]  ;;  %v7006_v56 = vld [vmem:[#allocation34_spill] sm:$0xff] }
 0xe36   :  { %3957 = vmatprep.subr.mxu0 %v6179_v60  ;;  %4028 = vmatprep.subr.mxu1 %v6182_v13  ;;  %v7007_v60 = vld [vmem:[#allocation25_spill] sm:$0xff]  ;;  %v7008_v13 = vld [vmem:[#allocation35_spill] sm:$0xff] }
 0xe37   :  { %3958 = vmatpush1.msra.mxu0 %v6185_v41  ;;  %4029 = vmatpush1.msra.mxu1 %v6188_v59  ;;  %v7009_v41 = vld [vmem:[#allocation26_spill] sm:$0xff]  ;;  %v7010_v59 = vld [vmem:[#allocation36_spill] sm:$0xff] }
 0xe38   :  { %3959 = vmatprep.subr.mxu0 %v6191_v26  ;;  %4030 = vmatprep.subr.mxu1 %v6194_v20  ;;  %v7011_v26 = vld [vmem:[#allocation27_spill] sm:$0xff]  ;;  %v7012_v20 = vld [vmem:[#allocation37_spill] sm:$0xff] }
 0xe39   :  { %3960 = vmatpush1.msra.mxu0 %v6197_v5  ;;  %4031 = vmatpush1.msra.mxu1 %v6200_v62  ;;  %v7013_v5 = vld [vmem:[#allocation38_spill] sm:$0xff]  ;;  %v7014_v62 = vld [vmem:[#allocation39_spill] sm:$0xff] }
 0xe3a   :  { %3961 = vmatprep.subr.mxu0 %v6203_v63  ;;  %4032 = vmatprep.subr.mxu1 %v6206_v2  ;;  %v7015_v63 = vld [vmem:[#allocation40_spill] sm:$0xff]  ;;  %v7016_v2 = vmov 0.0  }
 0xe3b   :  { %3962 = vmatpush1.msra.mxu0 %v6209_v18  ;;  %4033 = vmatpush1.msra.mxu1 %v6212_v47  ;;  %v7017_v18 = vld [vmem:[#allocation41_spill] sm:$0xff] }
 0xe3c   :  { %3963 = vmatprep.subr.mxu0 %v6215_v54  ;;  %4034 = vmatprep.subr.mxu1 %v6218_v21  ;;  %v3752_v21 = vld [vmem:[#allocation2 + $0x8] sm:$0x30] }
 0xe3d   :  { %3964 = vmatpush1.msra.mxu0 %v6221_v17  ;;  %4035 = vmatpush1.msra.mxu1 %v6224_v44 }
 0xe3e   :  { %3965 = vmatprep.subr.mxu0 %v6301_v51  ;;  %4036 = vmatprep.subr.mxu1 %v6304_v32 }
 0xe3f   :  { %3966 = vmatpush1.msra.mxu0 %v6307_v34  ;;  %4037 = vmatpush1.msra.mxu1 %v6310_v36  ;;  %v3753_v34 = vld [vmem:[#allocation2 + $0x20] sm:$0x30] }
 0xe40   :  { %3967 = vmatprep.subr.mxu0 %v6313_v40  ;;  %4038 = vmatprep.subr.mxu1 %v6316_v42 }
 0xe41   :  { %3968 = vmatpush1.msra.mxu0 %v6319_v25  ;;  %4039 = vmatpush1.msra.mxu1 %v6322_v27 }
 0xe42   :  { %3969 = vmatprep.subr.mxu0 %v6325_v31  ;;  %4040 = vmatprep.subr.mxu1 %v6328_v33  ;;  %v3755_v31 = vld [vmem:[#allocation2 + $0x38] sm:$0x30] }
 0xe43   :  { %3970 = vmatpush1.msra.mxu0 %v6331_v35  ;;  %4041 = vmatpush1.msra.mxu1 %v6334_v37 }
 0xe44   :  { %3971 = vmatprep.subr.mxu0 %v6337_v28  ;;  %4042 = vmatprep.subr.mxu1 %v6340_v4  ;;  %v3754_v28 = vld [vmem:[#allocation2 + $0x28] sm:$0x30] }
 0xe45   :  { %3972 = vmatpush1.msra.mxu0 %v6343_v29  ;;  %4043 = vmatpush1.msra.mxu1 %v6346_v6 }
 0xe46   :  { %3973 = vmatprep.subr.mxu0 %v6997_v52  ;;  %4044 = vmatprep.subr.mxu1 %v6998_v19  ;;  %v4144_v52 = vld [vmem:[#allocation12 + $0x40] sm:$0xff]  ;;  %v4143_v19 = vld [vmem:[#allocation12 + $0x38] sm:$0xff] }
 0xe47   :  { %3974 = vmatpush1.msra.mxu0 %v6999_v45  ;;  %4045 = vmatpush1.msra.mxu1 %v7000_v39  ;;  %v4142_v45 = vld [vmem:[#allocation12 + $0x30] sm:$0xff]  ;;  %v4141_v39 = vld [vmem:[#allocation12 + $0x28] sm:$0xff] }
 0xe48   :  { %3975 = vmatprep.subr.mxu0 %v7001_v43  ;;  %4046 = vmatprep.subr.mxu1 %v7002_v22  ;;  %v4140_v43 = vld [vmem:[#allocation12 + $0x20] sm:$0xff]  ;;  %v4139_v22 = vld [vmem:[#allocation12 + $0x18] sm:$0xff] }
 0xe49   :  { %3976 = vmatpush1.msra.mxu0 %v7003_v50  ;;  %4047 = vmatpush1.msra.mxu1 %v7004_v24  ;;  %v4138_v50 = vld [vmem:[#allocation12 + $0x10] sm:$0xff]  ;;  %v4137_v24 = vld [vmem:[#allocation12 + $0x8] sm:$0xff] }
 0xe4a   :  { %3977 = vmatprep.subr.mxu0 %v7005_v49  ;;  %4048 = vmatprep.subr.mxu1 %v7006_v56  ;;  %v4136_v49 = vld [vmem:[#allocation12] sm:$0xff] }
 0xe4b   :  { %3978 = vmatpush1.msra.mxu0 %v7007_v60  ;;  %4049 = vmatpush1.msra.mxu1 %v7008_v13  ;;  %v3944_v13 = vld [vmem:[#allocation2 + $0x8] sm:$0xc0] }
 0xe4c   :  { %3979 = vmatprep.subr.mxu0 %v7009_v41  ;;  %4050 = vmatprep.subr.mxu1 %v7010_v59 }
 0xe4d   :  { %3980 = vmatpush1.msra.mxu0 %v7011_v26  ;;  %4051 = vmatpush1.msra.mxu1 %v7012_v20 }
 0xe4e   :  { %3981 = vmatprep.subr.mxu0 %v7013_v5  ;;  %4052 = vmatprep.subr.mxu1 %v7014_v62  ;;  %v3945_v5 = vld [vmem:[#allocation2 + $0x20] sm:$0xc0] }
 0xe4f   :  { %3982 = vmatpush1.msra.mxu0 %v7015_v63  ;;  %4015 = vmatprep.mubr.f32.mxu0 %v7016_v2 }
 0xe50   :  { %4053 = vmatpush1.msra.mxu1 %v7017_v18  ;;  %4086 = vmatprep.mubr.f32.mxu1 %v7016_v2 }
 0xe51   :  { %4321 = vmatprep.subr.mxu0 %v7016_v2 }
 0xef0   :  { %v3825_v47 = vpop.f32.mrf.mxu0  ;;  %v3896_v51 = vpop.f32.mrf.mxu1 }
 0xef1   :  { %v3905_v54 = vrot.slane %v3825_v47, 4  ;;  %v3907_v35 = vrot.slane %v3896_v51, 4  ;;  %v3946_v51 = vld [vmem:[#allocation2 + $0x28] sm:$0xc0] }
 0xef2   :  { %v3827_v17 = vpop.f32.mrf.mxu0  ;;  %v3898_v25 = vpop.f32.mrf.mxu1 }
 0xef3   :  { %v3913_v44 = vadd.f32 %v3905_v54, %v3752_v21  ;;  %v3906_v32 = vrot.slane %v3827_v17, 4  ;;  %v3908_v27 = vrot.slane %v3898_v25, 4  ;;  %v3915_v29 = vadd.f32 %v3907_v35, %v3754_v28  ;;  %v3947_v21 = vld [vmem:[#allocation2 + $0x38] sm:$0xc0] }
 0xef5   :  { %v4297_v36 = vmul.f32 -1.442695, %v3913_v44  ;;  %v3914_v40 = vadd.f32 %v3906_v32, %v3753_v34  ;;  %v3916_v33 = vadd.f32 %v3908_v27, %v3755_v31 }
 0xef7   :  { %4592 = vpow2.f32 %v4297_v36  ;;  %v4298_v42 = vmul.f32 -1.442695, %v3914_v40  ;;  %v4299_v37 = vmul.f32 -1.442695, %v3916_v33 }
 0xef9   :  { %4594 = vpow2.f32 %v4298_v42 }
 0xefa   :  { %4596 = vpow2.f32 %v4299_v37 }
 0xf04   :  { %v4593_v4 = vpop.eup %4592 }
 0xf05   :  { %v3920_v6 = vadd.f32 1.0, %v4593_v4 }
 0xf06   :  { %v4595_v38 = vpop.eup %4594 }
 0xf07   :  { %4598 = vrcp.f32 %v3920_v6  ;;  %v3926_v12 = vadd.f32 1.0, %v4595_v38  ;;  %v4597_v61 = vpop.eup %4596 }
 0xf08   :  { %4600 = vtanh.f32 %v3915_v29  ;;  %v3933_v55 = vadd.f32 1.0, %v4597_v61 }
 0xf09   :  { %4602 = vrcp.f32 %v3926_v12 }
 0xf0a   :  { %4604 = vrcp.f32 %v3933_v55 }
 0xf14   :  { %v4599_v0 = vpop.eup %4598 }
 0xf15   :  { %v4601_v10 = vpop.eup %4600 }
 0xf16   :  { %v4603_v53 = vpop.eup %4602  ;;  %v3940_v7 = vmul.f32 %v4601_v10, %v4599_v0  ;;  %v4303_v0 = vld [vmem:[%s6587_s8] ss:$0 sm:$0xff] }
 0xf17   :  { %v3939_v23 = vmul.f32 %v4603_v53, %v3937_v30  ;;  %v4605_v48 = vpop.eup %4604 }
 0xf19   :  { %v6553_v16 = vadd.f32 %v3940_v7, %v3939_v23 }
 0xf1b   :  { %4606 = vtanh.f32 %v6553_v16  ;;  %v4129_v33 = vrot.slane %v6553_v16, 6 }
 0xf28   :  { %v4607_v15 = vpop.eup %4606 }
 0xf29   :  { %v3943_v1 = vmul.f32 %v4607_v15, %v4605_v48 }
 0xf2b   :  { %v3949_v14 = vrot.slane %v3943_v1, 4 }
 0xf2d   :  { %4016 = vmatmul.mubr.f32.vlgmr.msra.gmra.mxu0 %v3949_v14  ;;  %4087 = vmatmul.mubr.f32.vlgmr.msra.gmra.mxu1 %v3949_v14 }
 0xf2e   :  { %4322 = vmatpush3.msra.mxu0 %v4151_v9  ;;  %4353 = vmatprep.mubr.msk.f32.mxu0 %vm4826_vm1, %v7016_v2 }
 0xf2f   :  { %4323 = vmatprep.subr.mxu0 %v7016_v2 }
 0xf30   :  { %4324 = vmatpush3.msra.mxu0 %v4150_v3 }
 0xf31   :  { %4325 = vmatprep.subr.mxu0 %v7016_v2 }
 0xf32   :  { %4326 = vmatpush3.msra.mxu0 %v4149_v46 }
 0xf33   :  { %4327 = vmatprep.subr.mxu0 %v7016_v2 }
 0xf34   :  { %4328 = vmatpush3.msra.mxu0 %v4148_v58 }
 0xf35   :  { %4329 = vmatprep.subr.mxu0 %v7016_v2 }
 0xf36   :  { %4330 = vmatpush3.msra.mxu0 %v4147_v11 }
 0xf37   :  { %4331 = vmatprep.subr.mxu0 %v7016_v2 }
 0xf38   :  { %4332 = vmatpush3.msra.mxu0 %v4146_v8 }
 0xf39   :  { %4333 = vmatprep.subr.mxu0 %v7016_v2 }
 0xf3a   :  { %4334 = vmatpush3.msra.mxu0 %v4145_v57 }
 0xf3b   :  { %4335 = vmatprep.subr.mxu0 %v7016_v2 }
 0xf3c   :  { %4336 = vmatpush3.msra.mxu0 %v4144_v52 }
 0xf3d   :  { %4337 = vmatprep.subr.mxu0 %v7016_v2 }
 0xf3e   :  { %4338 = vmatpush3.msra.mxu0 %v4143_v19 }
 0xf3f   :  { %4339 = vmatprep.subr.mxu0 %v7016_v2 }
 0xf40   :  { %4340 = vmatpush3.msra.mxu0 %v4142_v45 }
 0xf41   :  { %4341 = vmatprep.subr.mxu0 %v7016_v2 }
 0xf42   :  { %4342 = vmatpush3.msra.mxu0 %v4141_v39 }
 0xf43   :  { %4343 = vmatprep.subr.mxu0 %v7016_v2 }
 0xf44   :  { %4344 = vmatpush3.msra.mxu0 %v4140_v43 }
 0xf45   :  { %4345 = vmatprep.subr.mxu0 %v7016_v2 }
 0xf46   :  { %4346 = vmatpush3.msra.mxu0 %v4139_v22 }
 0xf47   :  { %4347 = vmatprep.subr.mxu0 %v7016_v2 }
 0xf48   :  { %4348 = vmatpush3.msra.mxu0 %v4138_v50 }
 0xf49   :  { %4349 = vmatprep.subr.mxu0 %v7016_v2 }
 0xf4a   :  { %4350 = vmatpush3.msra.mxu0 %v4137_v24 }
 0xf4b   :  { %4351 = vmatprep.subr.mxu0 %v7016_v2 }
 0xf4c   :  { %4352 = vmatpush3.msra.mxu0 %v4136_v49 }
 0xfed   :  { %v4017_v56 = vpop.f32.mrf.mxu0  ;;  %v4088_v26 = vpop.f32.mrf.mxu1 }
 0xfee   :  { %v4097_v60 = vrot.slane %v4017_v56, 2  ;;  %v4099_v44 = vrot.slane %v4088_v26, 2 }
 0xfef   :  { %v4019_v41 = vpop.f32.mrf.mxu0  ;;  %v4090_v47 = vpop.f32.mrf.mxu1 }
 0xff0   :  { %v4105_v59 = vadd.f32 %v4097_v60, %v3944_v13  ;;  %v4098_v20 = vrot.slane %v4019_v41, 2  ;;  %v4100_v54 = vrot.slane %v4090_v47, 2  ;;  %v4107_v34 = vadd.f32 %v4099_v44, %v3946_v51 }
 0xff2   :  { %v4300_v62 = vmul.f32 -1.442695, %v4105_v59  ;;  %v4106_v63 = vadd.f32 %v4098_v20, %v3945_v5  ;;  %v4108_v17 = vadd.f32 %v4100_v54, %v3947_v21 }
 0xff4   :  { %4608 = vpow2.f32 %v4300_v62  ;;  %v4301_v18 = vmul.f32 -1.442695, %v4106_v63  ;;  %v4302_v2 = vmul.f32 -1.442695, %v4108_v17 }
 0xff6   :  { %4610 = vpow2.f32 %v4301_v18 }
 0xff7   :  { %4612 = vpow2.f32 %v4302_v2 }
0x1001   :  { %v4609_v32 = vpop.eup %4608 }
0x1002   :  { %v4112_v36 = vadd.f32 1.0, %v4609_v32 }
0x1003   :  { %v4611_v40 = vpop.eup %4610 }
0x1004   :  { %4614 = vrcp.f32 %v4112_v36  ;;  %v4118_v42 = vadd.f32 1.0, %v4611_v40  ;;  %v4613_v25 = vpop.eup %4612 }
0x1005   :  { %4616 = vtanh.f32 %v4107_v34  ;;  %v4125_v37 = vadd.f32 1.0, %v4613_v25 }
0x1006   :  { %4618 = vrcp.f32 %v4118_v42 }
0x1007   :  { %4620 = vrcp.f32 %v4125_v37 }
0x1011   :  { %v4615_v27 = vpop.eup %4614 }
0x1012   :  { %v4617_v31 = vpop.eup %4616 }
0x1013   :  { %v4619_v35 = vpop.eup %4618  ;;  %v4132_v28 = vmul.f32 %v4617_v31, %v4615_v27 }
0x1014   :  { %v4131_v4 = vmul.f32 %v4619_v35, %v4129_v33  ;;  %v4621_v6 = vpop.eup %4620 }
0x1016   :  { %v4133_v29 = vadd.f32 %v4132_v28, %v4131_v4 }
0x1018   :  { %4622 = vtanh.f32 %v4133_v29 }
0x1025   :  { %v4623_v38 = vpop.eup %4622 }
0x1026   :  { %v4135_v12 = vmul.f32 %v4623_v38, %v4621_v6 }
0x1028   :  { %v4160_v61 = vrot.slane %v4135_v12, 6 }
0x102a   :  { %4354 = vmatmul.mubr.f32.vlgmr.msra.gmra.mxu0 %v4160_v61 }
0x10ea   :  { %v4228_v10 = vpop.f32.mrf.mxu0 }
0x10eb   :  { %v4229_v30 = vadd.f32 %v4303_v0, %v4228_v10 }
0x10ec   :  { %v4355_v53 = vpop.f32.mrf.mxu0 }
0x10ed   :  { %v4232_v55 = vmax.f32 %v4229_v30, 0.0 }
0x10ef   :  { %4233 = vst [vmem:[#allocation13] sm:$0x3] %v4232_v55 }
0x10f0   :  { %4799 = shalt.err (!%p4796_p1)
}
0x10f1   :  { %4243 = dma.vmem_to_hbm [thread:$0]  %s4241_s20, 32, %s6588_s9, [#allocation6]  }
0x10f2   :  { %4814 = dma.done.wait [#allocation6], 32  }
0x10f3   :  { %4815 = vsyncadd [#allocation6], 4294967264 }
0x10f4   :  { %4247 = vsyncpa [#allocation5], 1 }
0x10f5   :  { %4248 = vsyncpa [#allocation8], 1 }
0x10f6   :  { %4249 = vsyncpa [#allocation11], 1 }
0x10f7   :  { %4250 = vsyncpa [#allocation6], 1 }

</bundles_post_ra>
